<compile_context>
chip_gen: v7x
topology: tpu7x:2x2x1
jax: 0.10.0
libtpu: 0.0.40
codegen_flags: <defaults>
</compile_context>

<pallas_src>
import jax
import jax.numpy as jnp
from jax.experimental import pallas as pl
from jax.experimental.pallas import tpu as pltpu


def log_anomaly_kernel(xs_ref, xq_ref,
                       s_wih0_ref, s_whh0_ref, s_b0_ref, s_w1_ref, s_b1_ref,
                       q_wih0_ref, q_whh0_ref, q_b0_ref, q_w1_ref, q_b1_ref,
                       wfc_ref, bfc_ref,
                       logits_ref, probs_ref, emb_ref):
    T, Bb, E = xs_ref.shape
    H = s_whh0_ref.shape[0]
    G = 4 * H
    f32 = jnp.float32
    mdt = s_whh0_ref.dtype          # MXU operand dtype (bf16 default); acc stays fp32

    # ---- hoisted layer-0 input projections (both LSTMs, off the recurrence) ----
    xs_flat = xs_ref[...].reshape(T * Bb, E).astype(mdt)
    xw_s = (jnp.dot(xs_flat, s_wih0_ref[...], preferred_element_type=f32)
            + s_b0_ref[...])                                   # (T*Bb, 4H)
    # quantitative LSTM has input dim 1: hoisted broadcast-mul, no matmul
    xw_q = (xq_ref[...] * q_wih0_ref[...].reshape(1, 1, G)
            + q_b0_ref[...].reshape(1, 1, G))                  # (T, Bb, 4H)

    # ---- hoisted weight loads; fused layer-1 weights pre-split so the per-step
    #      lane-concat of [h0_new, h1_prev] disappears from the critical path ----
    s_whh0 = s_whh0_ref[...]
    s_w1_ih = s_w1_ref[0:H, :]
    s_w1_hh = s_w1_ref[H:2 * H, :]
    s_b1 = jnp.broadcast_to(s_b1_ref[...], (Bb, G))
    q_whh0 = q_whh0_ref[...]
    q_w1_ih = q_w1_ref[0:H, :]
    q_w1_hh = q_w1_ref[H:2 * H, :]
    q_b1 = jnp.broadcast_to(q_b1_ref[...], (Bb, G))

    def cell(gates, c):
        # Full (Bb, 4H) tile sigmoid/tanh: 2 EUP pushes per cell, then lane slices.
        sig = jax.nn.sigmoid(gates)
        th = jnp.tanh(gates)
        i = sig[:, 0 * H:1 * H]
        f = sig[:, 1 * H:2 * H]
        g = th[:, 2 * H:3 * H]          # g gate from tanh (NOT sigmoid)
        o = sig[:, 3 * H:4 * H]
        c_new = f * c + i * g
        h_new = o * jnp.tanh(c_new)
        return h_new, c_new

    zeros = jnp.zeros((Bb, H), f32)
    h0s = c0s = h1s = c1s = zeros        # lstm0 (semantic), layers 0 / 1
    h0q = c0q = h1q = c1q = zeros        # lstm1 (quantitative), layers 0 / 1

    # TODO(synk): inter-layer dropout (p=0.5) is training-only; eval forward is identity.
    # T is small & static -> static unroll.  (Switch to lax.fori_loop(..., unroll=True)
    # if T grows and the bundle dump shows vreg spills.)
    for t in range(T):
        lo, hi = t * Bb, (t + 1) * Bb
        # ---- semantic LSTM ----
        g0 = xw_s[lo:hi] + jnp.dot(h0s.astype(mdt), s_whh0, preferred_element_type=f32)
        h0s, c0s = cell(g0, c0s)
        g1 = (jnp.dot(h0s.astype(mdt), s_w1_ih, preferred_element_type=f32)
              + jnp.dot(h1s.astype(mdt), s_w1_hh, preferred_element_type=f32)
              + s_b1)
        h1s, c1s = cell(g1, c1s)

        # ---- quantitative LSTM ----
        g0 = xw_q[t] + jnp.dot(h0q.astype(mdt), q_whh0, preferred_element_type=f32)
        h0q, c0q = cell(g0, c0q)
        g1 = (jnp.dot(h0q.astype(mdt), q_w1_ih, preferred_element_type=f32)
              + jnp.dot(h1q.astype(mdt), q_w1_hh, preferred_element_type=f32)
              + q_b1)
        h1q, c1q = cell(g1, c1q)

    # ---- lane-dense embeddings store (padded to a 128-lane multiple) ----
    Pe = emb_ref.shape[1]
    emb_parts = [h1s, h1q]
    if Pe > 2 * H:
        emb_parts.append(jnp.zeros((Bb, Pe - 2 * H), f32))
    emb_ref[...] = jnp.concatenate(emb_parts, axis=-1)

    # ---- fc + softmax (fc dot split over the two halves -> no lane concat) ----
    wdt = wfc_ref.dtype
    logits = (jnp.dot(h1s.astype(wdt), wfc_ref[0:H, :], preferred_element_type=f32)
              + jnp.dot(h1q.astype(wdt), wfc_ref[H:2 * H, :], preferred_element_type=f32)
              + bfc_ref[...])                                  # (Bb, Vp) lane-dense
    logits_ref[...] = logits

    m = jnp.max(logits, axis=-1, keepdims=True)
    e = jnp.exp(logits - m)                                    # padded cols -> exactly 0
    probs_ref[...] = e / jnp.sum(e, axis=-1, keepdims=True)


def _pick_batch_block(B, mxu_dtype):
    """Largest batch block that (a) divides B, (b) is a multiple of the sublane
    packing (16 for bf16 operands, 8 for f32), (c) is capped at 256, and
    (d) leaves >= 2 grid blocks when B is large enough (v7x megacore)."""
    sub = 16 if jnp.dtype(mxu_dtype) == jnp.dtype(jnp.bfloat16) else 8
    cap = max(sub, min(256, B // 2 if B >= 2 * sub else B))
    for cand in range(cap, 0, -1):
        if B % cand == 0 and cand % sub == 0:
            return cand
    return B   # fallback: single full-batch block (legal; may cost a relayout)


def log_anomaly_forward(params, quantitative, semantic=None, sequential=None,
                        use_semantic=True, mxu_dtype=jnp.bfloat16,
                        batch_block=None):
    """Eval-mode forward of LogAnomaly.

    quantitative: (B, T, 1) float     -- lstm1 input
    semantic:     (B, T, E) float     -- lstm0 input if use_semantic=True
    sequential:   (B, T)    int32     -- token ids, embedded in glue otherwise
    Returns (logits (B,V), probabilities (B,V), embeddings (B,2H)).
    """
    if use_semantic:
        x_sem = semantic.astype(jnp.float32)
    else:
        # Data-dependent embedding gather has no cheap BlockSpec form: plain JAX glue.
        x_sem = jnp.take(params["embedding"], sequential, axis=0).astype(jnp.float32)

    B, T, E = x_sem.shape
    H = params["s_whh0"].shape[0]
    G = 4 * H
    V = params["wfc"].shape[1]
    Vp = ((V + 127) // 128) * 128                 # lane-dense logits/probs slab
    Pe = ((2 * H + 127) // 128) * 128             # lane-dense embeddings slab

    # time-major so per-step access inside the kernel is a leading-axis index
    xs = jnp.transpose(x_sem, (1, 0, 2))                              # (T, B, E)
    xq = jnp.transpose(quantitative.astype(jnp.float32), (1, 0, 2))   # (T, B, 1)

    md = jnp.dtype(mxu_dtype)
    s_wih0 = params["s_wih0"].astype(md)
    s_whh0 = params["s_whh0"].astype(md)
    s_w1 = params["s_w1"].astype(md)
    q_whh0 = params["q_whh0"].astype(md)
    q_w1 = params["q_w1"].astype(md)
    # Pad fc to 128-lane multiple; padded classes get -1e30 logits -> softmax 0.
    wfc = jnp.zeros((2 * H, Vp), md).at[:, :V].set(params["wfc"].astype(md))
    bfc = jnp.full((1, Vp), -1e30, jnp.float32).at[:, :V].set(params["bfc"])

    if batch_block is None:
        batch_block = _pick_batch_block(B, md)
    bb = batch_block
    assert B % bb == 0, "batch size must be divisible by batch_block"
    grid = (B // bb,)

    args = (xs, xq,
            s_wih0, s_whh0, params["s_b0"], s_w1, params["s_b1"],
            params["q_wih0"], q_whh0, params["q_b0"], q_w1, params["q_b1"],
            wfc, bfc)

    def wspec(shape):
        return pl.BlockSpec(shape, lambda i: (0, 0))

    in_specs = [
        pl.BlockSpec((T, bb, E), lambda i: (0, i, 0)),   # semantic (time-major)
        pl.BlockSpec((T, bb, 1), lambda i: (0, i, 0)),   # quantitative (time-major)
        wspec((E, G)), wspec((H, G)), wspec((1, G)), wspec((2 * H, G)), wspec((1, G)),
        wspec((1, G)), wspec((H, G)), wspec((1, G)), wspec((2 * H, G)), wspec((1, G)),
        wspec((2 * H, Vp)), wspec((1, Vp)),
    ]
    out_specs = (
        pl.BlockSpec((bb, Vp), lambda i: (i, 0)),        # logits (padded)
        pl.BlockSpec((bb, Vp), lambda i: (i, 0)),        # probs (padded)
        pl.BlockSpec((bb, Pe), lambda i: (i, 0)),        # embeddings (padded)
    )
    out_shape = (jax.ShapeDtypeStruct((B, Vp), jnp.float32),
                 jax.ShapeDtypeStruct((B, Vp), jnp.float32),
                 jax.ShapeDtypeStruct((B, Pe), jnp.float32))

    # Advisory cost estimate: helps XLA schedule the transpose / embedding-gather
    # glue around the custom call instead of serializing on it.
    weight_bytes = sum(int(a.size) * jnp.dtype(a.dtype).itemsize for a in args[2:])
    flops = int(2 * B * T * (E * G + H * G + 2 * H * G        # semantic
                             + H * G + 2 * H * G)             # quantitative
                + 2 * B * 2 * H * Vp)                         # fc
    transcendentals = int(B * T * 4 * (2 * G + H))            # 4 cells/step
    bytes_accessed = int(xs.size * 4 + xq.size * 4 + weight_bytes
                         + B * (2 * Vp + Pe) * 4)
    cost = pl.CostEstimate(flops=flops, transcendentals=transcendentals,
                           bytes_accessed=bytes_accessed)

    # VMEM budget: double-buffered input/output blocks + resident weights.
    block_bytes = T * bb * (E + 1) * 4 + bb * (2 * Vp + Pe) * 4
    vmem_est = 2 * (block_bytes + weight_bytes)
    cp_kwargs = dict(dimension_semantics=("parallel",))       # batch blocks independent
    if vmem_est > 30 * 2 ** 20:
        # v7x has only 64 MiB VMEM (32 MiB default scoped limit): raise explicitly.
        cp_kwargs["vmem_limit_bytes"] = int(min(100 * 2 ** 20, 2 * vmem_est))

    logits_p, probs_p, emb_p = pl.pallas_call(
        log_anomaly_kernel,
        grid=grid,
        in_specs=in_specs,
        out_specs=out_specs,
        out_shape=out_shape,
        cost_estimate=cost,
        compiler_params=pltpu.CompilerParams(**cp_kwargs),
    )(*args)

    return logits_p[:, :V], probs_p[:, :V], emb_p[:, :2 * H]


def init_params(key, vocab_size=32, embedding_dim=32, hidden_size=32):
    """Deterministic init mirroring the module's parameter shapes.

    LSTM / Linear use PyTorch's default uniform(-1/sqrt(fan), 1/sqrt(fan)); the
    embedding (only used when use_semantic=False) uses uniform_() like the module.
    Layer-1 W_ih and W_hh are pre-concatenated; b_ih + b_hh are folded.
    """
    H, E, V = hidden_size, embedding_dim, vocab_size
    G = 4 * H
    keys = iter(jax.random.split(key, 24))

    def u(shape, bound):
        return jax.random.uniform(next(keys), shape, jnp.float32, -bound, bound)

    bl = 1.0 / (H ** 0.5)            # nn.LSTM default bound
    bf = 1.0 / ((2 * H) ** 0.5)      # nn.Linear(2H, V) default bound

    def lstm(prefix, in_dim):
        return {
            prefix + "wih0": u((in_dim, G), bl),                       # layer-0 W_ih^T
            prefix + "whh0": u((H, G), bl),                            # layer-0 W_hh^T
            prefix + "b0":   u((1, G), bl) + u((1, G), bl),            # b_ih0 + b_hh0
            prefix + "w1":   jnp.concatenate([u((H, G), bl),           # layer-1 [W_ih^T;
                                              u((H, G), bl)], axis=0), #           W_hh^T]
            prefix + "b1":   u((1, G), bl) + u((1, G), bl),            # b_ih1 + b_hh1
        }

    params = {}
    params.update(lstm("s_", E))     # lstm0 (semantic input, size E)
    params.update(lstm("q_", 1))     # lstm1 (quantitative input, size 1)
    params["wfc"] = u((2 * H, V), bf)
    params["bfc"] = u((1, V), bf)
    params["embedding"] = jax.random.uniform(next(keys), (V + 1, E), jnp.float32)
    return params


# ---------------- pure-JAX reference (fp32, highest matmul precision) ----------------

def _lstm_cell_ref(g, c, H):
    i = jax.nn.sigmoid(g[:, 0 * H:1 * H])
    f = jax.nn.sigmoid(g[:, 1 * H:2 * H])
    gg = jnp.tanh(g[:, 2 * H:3 * H])
    o = jax.nn.sigmoid(g[:, 3 * H:4 * H])
    c_new = f * c + i * gg
    return o * jnp.tanh(c_new), c_new


def log_anomaly_reference(params, quantitative, semantic):
    hp = jax.lax.Precision.HIGHEST
    H = params["s_whh0"].shape[0]
    x_s = semantic.astype(jnp.float32)
    x_q = quantitative.astype(jnp.float32)
    B, T, _ = x_s.shape

    def run(x, wih0, whh0, b0, w1, b1):
        h0 = c0 = h1 = c1 = jnp.zeros((B, H), jnp.float32)
        for t in range(T):
            g0 = (jnp.dot(x[:, t, :], wih0, precision=hp)
                  + jnp.dot(h0, whh0, precision=hp) + b0)
            h0, c0 = _lstm_cell_ref(g0, c0, H)
            g1 = jnp.dot(jnp.concatenate([h0, h1], -1), w1, precision=hp) + b1
            h1, c1 = _lstm_cell_ref(g1, c1, H)
        return h1

    hs = run(x_s, params["s_wih0"], params["s_whh0"], params["s_b0"],
             params["s_w1"], params["s_b1"])
    hq = run(x_q, params["q_wih0"], params["q_whh0"], params["q_b0"],
             params["q_w1"], params["q_b1"])
    multi = jnp.concatenate([hs, hq], -1)
    logits = jnp.dot(multi, params["wfc"], precision=hp) + params["bfc"]
    return logits, jax.nn.softmax(logits, axis=-1), multi


if __name__ == "__main__":
    B, T = 32, 8
    vocab_size, embedding_dim, hidden_size = 32, 32, 32

    key = jax.random.PRNGKey(0)
    k_sem, k_q, k_par = jax.random.split(key, 3)
    semantic = jax.random.normal(k_sem, (B, T, embedding_dim), jnp.float32)
    quantitative = jax.random.normal(k_q, (B, T, 1), jnp.float32)
    params = init_params(k_par, vocab_size, embedding_dim, hidden_size)

    ref_logits, ref_probs, ref_emb = log_anomaly_reference(params, quantitative, semantic)

    # fp32-MXU path: tight agreement with the pure-JAX reference
    lg32, pr32, em32 = jax.block_until_ready(
        log_anomaly_forward(params, quantitative, semantic=semantic,
                            mxu_dtype=jnp.float32))
    assert lg32.shape == (B, vocab_size) and pr32.shape == (B, vocab_size)
    assert em32.shape == (B, 2 * hidden_size)
    assert bool(jnp.allclose(lg32, ref_logits, atol=1e-2, rtol=1e-2))
    assert bool(jnp.allclose(pr32, ref_probs, atol=1e-3))
    assert bool(jnp.allclose(em32, ref_emb, atol=1e-2))

    # default bf16-MXU path (fp32 accumulation / cell state / softmax): loose agreement
    logits, probs, embeddings = jax.block_until_ready(
        log_anomaly_forward(params, quantitative, semantic=semantic))
    assert logits.shape == (B, vocab_size)
    assert probs.shape == (B, vocab_size)
    assert embeddings.shape == (B, 2 * hidden_size)
    assert bool(jnp.all(jnp.isfinite(logits)))
    # softmax rows must sum to 1 (padded classes contribute exactly 0)
    assert bool(jnp.all(jnp.abs(jnp.sum(probs, axis=-1) - 1.0) < 1e-5))
    assert bool(jnp.allclose(logits, ref_logits, atol=1e-1, rtol=1e-1))
    assert bool(jnp.allclose(probs, ref_probs, atol=5e-2))
    assert bool(jnp.allclose(embeddings, ref_emb, atol=1e-1))

    print("KERNEL_OK")
</pallas_src>

<mosaic_0001>
module attributes {stable_mosaic.version = 11 : i64} {
  func.func @log_anomaly_kernel(%arg0: i32, %arg1: memref<8x16x32xf32, #tpu.memory_space<vmem>>, %arg2: memref<8x16x1xf32, #tpu.memory_space<vmem>>, %arg3: memref<32x128xf32, #tpu.memory_space<vmem>>, %arg4: memref<32x128xf32, #tpu.memory_space<vmem>>, %arg5: memref<1x128xf32, #tpu.memory_space<vmem>>, %arg6: memref<64x128xf32, #tpu.memory_space<vmem>>, %arg7: memref<1x128xf32, #tpu.memory_space<vmem>>, %arg8: memref<1x128xf32, #tpu.memory_space<vmem>>, %arg9: memref<32x128xf32, #tpu.memory_space<vmem>>, %arg10: memref<1x128xf32, #tpu.memory_space<vmem>>, %arg11: memref<64x128xf32, #tpu.memory_space<vmem>>, %arg12: memref<1x128xf32, #tpu.memory_space<vmem>>, %arg13: memref<64x128xf32, #tpu.memory_space<vmem>>, %arg14: memref<1x128xf32, #tpu.memory_space<vmem>>, %arg15: memref<16x128xf32, #tpu.memory_space<vmem>>, %arg16: memref<16x128xf32, #tpu.memory_space<vmem>>, %arg17: memref<16x128xf32, #tpu.memory_space<vmem>>) attributes {dimension_semantics = [#tpu.dimension_semantics<parallel>], iteration_bounds = array<i64: 2>, scalar_prefetch = 0 : i64, scratch_operands = 0 : i64, tpu.core_type = #tpu.core_type<tc>, window_params = [{transform_indices = @transform_0, window_bounds = array<i64: 8, 16, 32>}, {transform_indices = @transform_1, window_bounds = array<i64: 8, 16, 1>}, {pipeline_mode = #tpu.pipeline_mode<synchronous>, transform_indices = @transform_2, window_bounds = array<i64: 32, 128>}, {pipeline_mode = #tpu.pipeline_mode<synchronous>, transform_indices = @transform_3, window_bounds = array<i64: 32, 128>}, {pipeline_mode = #tpu.pipeline_mode<synchronous>, transform_indices = @transform_4, window_bounds = array<i64: 1, 128>}, {pipeline_mode = #tpu.pipeline_mode<synchronous>, transform_indices = @transform_5, window_bounds = array<i64: 64, 128>}, {pipeline_mode = #tpu.pipeline_mode<synchronous>, transform_indices = @transform_6, window_bounds = array<i64: 1, 128>}, {pipeline_mode = #tpu.pipeline_mode<synchronous>, transform_indices = @transform_7, window_bounds = array<i64: 1, 128>}, {pipeline_mode = #tpu.pipeline_mode<synchronous>, transform_indices = @transform_8, window_bounds = array<i64: 32, 128>}, {pipeline_mode = #tpu.pipeline_mode<synchronous>, transform_indices = @transform_9, window_bounds = array<i64: 1, 128>}, {pipeline_mode = #tpu.pipeline_mode<synchronous>, transform_indices = @transform_10, window_bounds = array<i64: 64, 128>}, {pipeline_mode = #tpu.pipeline_mode<synchronous>, transform_indices = @transform_11, window_bounds = array<i64: 1, 128>}, {pipeline_mode = #tpu.pipeline_mode<synchronous>, transform_indices = @transform_12, window_bounds = array<i64: 64, 128>}, {pipeline_mode = #tpu.pipeline_mode<synchronous>, transform_indices = @transform_13, window_bounds = array<i64: 1, 128>}, {transform_indices = @transform_14, window_bounds = array<i64: 16, 128>}, {transform_indices = @transform_15, window_bounds = array<i64: 16, 128>}, {transform_indices = @transform_16, window_bounds = array<i64: 16, 128>}]} {
    %c0 = arith.constant 0 : index
    %c0_0 = arith.constant 0 : index
    %c0_1 = arith.constant 0 : index
    %0 = vector.load %arg1[%c0, %c0_0, %c0_1] : memref<8x16x32xf32, #tpu.memory_space<vmem>>, vector<8x16x32xf32>
    %1 = vector.shape_cast %0 : vector<8x16x32xf32> to vector<128x32xf32>
    %c0_2 = arith.constant 0 : index
    %c0_3 = arith.constant 0 : index
    %2 = vector.load %arg3[%c0_2, %c0_3] : memref<32x128xf32, #tpu.memory_space<vmem>>, vector<32x128xf32>
    %cst = arith.constant dense<0.000000e+00> : vector<128x128xf32>
    %3 = tpu.matmul %1, %2, %cst {dimension_numbers = #tpu.dot_dimension_numbers<[1], [0], [0], [1], [0, 0, 1, 1], [], []>} : vector<128x32xf32>, vector<32x128xf32>, vector<128x128xf32> -> vector<128x128xf32>
    %c0_4 = arith.constant 0 : index
    %c0_5 = arith.constant 0 : index
    %4 = vector.load %arg5[%c0_4, %c0_5] : memref<1x128xf32, #tpu.memory_space<vmem>>, vector<1x128xf32>
    %5 = vector.broadcast %4 : vector<1x128xf32> to vector<128x128xf32>
    %6 = arith.addf %3, %5 : vector<128x128xf32>
    %c0_6 = arith.constant 0 : index
    %c0_7 = arith.constant 0 : index
    %c0_8 = arith.constant 0 : index
    %7 = vector.load %arg2[%c0_6, %c0_7, %c0_8] : memref<8x16x1xf32, #tpu.memory_space<vmem>>, vector<8x16x1xf32>
    %c0_9 = arith.constant 0 : index
    %c0_10 = arith.constant 0 : index
    %8 = vector.load %arg8[%c0_9, %c0_10] : memref<1x128xf32, #tpu.memory_space<vmem>>, vector<1x128xf32>
    %9 = vector.shape_cast %8 : vector<1x128xf32> to vector<1x1x128xf32>
    %10 = vector.broadcast %7 : vector<8x16x1xf32> to vector<8x16x128xf32>
    %11 = vector.broadcast %9 : vector<1x1x128xf32> to vector<8x16x128xf32>
    %12 = arith.mulf %10, %11 : vector<8x16x128xf32>
    %c0_11 = arith.constant 0 : index
    %c0_12 = arith.constant 0 : index
    %13 = vector.load %arg10[%c0_11, %c0_12] : memref<1x128xf32, #tpu.memory_space<vmem>>, vector<1x128xf32>
    %14 = vector.shape_cast %13 : vector<1x128xf32> to vector<1x1x128xf32>
    %15 = vector.broadcast %14 : vector<1x1x128xf32> to vector<8x16x128xf32>
    %16 = arith.addf %12, %15 : vector<8x16x128xf32>
    %c0_13 = arith.constant 0 : index
    %c0_14 = arith.constant 0 : index
    %17 = vector.load %arg4[%c0_13, %c0_14] : memref<32x128xf32, #tpu.memory_space<vmem>>, vector<32x128xf32>
    %c0_15 = arith.constant 0 : index
    %c0_16 = arith.constant 0 : index
    %18 = vector.load %arg6[%c0_15, %c0_16] : memref<64x128xf32, #tpu.memory_space<vmem>>, vector<32x128xf32>
    %c32 = arith.constant 32 : index
    %c0_17 = arith.constant 0 : index
    %19 = vector.load %arg6[%c32, %c0_17] : memref<64x128xf32, #tpu.memory_space<vmem>>, vector<32x128xf32>
    %c0_18 = arith.constant 0 : index
    %c0_19 = arith.constant 0 : index
    %20 = vector.load %arg7[%c0_18, %c0_19] : memref<1x128xf32, #tpu.memory_space<vmem>>, vector<1x128xf32>
    %21 = vector.shape_cast %20 : vector<1x128xf32> to vector<1x128xf32>
    %22 = vector.broadcast %21 : vector<1x128xf32> to vector<16x128xf32>
    %c0_20 = arith.constant 0 : index
    %c0_21 = arith.constant 0 : index
    %23 = vector.load %arg9[%c0_20, %c0_21] : memref<32x128xf32, #tpu.memory_space<vmem>>, vector<32x128xf32>
    %c0_22 = arith.constant 0 : index
    %c0_23 = arith.constant 0 : index
    %24 = vector.load %arg11[%c0_22, %c0_23] : memref<64x128xf32, #tpu.memory_space<vmem>>, vector<32x128xf32>
    %c32_24 = arith.constant 32 : index
    %c0_25 = arith.constant 0 : index
    %25 = vector.load %arg11[%c32_24, %c0_25] : memref<64x128xf32, #tpu.memory_space<vmem>>, vector<32x128xf32>
    %c0_26 = arith.constant 0 : index
    %c0_27 = arith.constant 0 : index
    %26 = vector.load %arg12[%c0_26, %c0_27] : memref<1x128xf32, #tpu.memory_space<vmem>>, vector<1x128xf32>
    %27 = vector.shape_cast %26 : vector<1x128xf32> to vector<1x128xf32>
    %28 = vector.broadcast %27 : vector<1x128xf32> to vector<16x128xf32>
    %cst_28 = arith.constant 0.000000e+00 : f32
    %29 = vector.broadcast %cst_28 : f32 to vector<16x32xf32>
    %30 = vector.extract_strided_slice %6 {offsets = [0, 0], sizes = [16, 128], strides = [1, 1]} : vector<128x128xf32> to vector<16x128xf32>
    %cst_29 = arith.constant dense<0.000000e+00> : vector<16x128xf32>
    %31 = tpu.matmul %29, %17, %cst_29 {dimension_numbers = #tpu.dot_dimension_numbers<[1], [0], [0], [1], [0, 0, 1, 1], [], []>} : vector<16x32xf32>, vector<32x128xf32>, vector<16x128xf32> -> vector<16x128xf32>
    %32 = arith.addf %30, %31 : vector<16x128xf32>
    %33 = arith.negf %32 : vector<16x128xf32>
    %34 = math.exp %33 : vector<16x128xf32>
    %cst_30 = arith.constant 1.000000e+00 : f32
    %35 = vector.broadcast %cst_30 : f32 to vector<16x128xf32>
    %36 = arith.addf %35, %34 : vector<16x128xf32>
    %37 = arith.divf %35, %36 : vector<16x128xf32>
    %38 = math.tanh %32 : vector<16x128xf32>
    %39 = vector.extract_strided_slice %37 {offsets = [0, 0], sizes = [16, 32], strides = [1, 1]} : vector<16x128xf32> to vector<16x32xf32>
    %40 = vector.extract_strided_slice %37 {offsets = [0, 32], sizes = [16, 32], strides = [1, 1]} : vector<16x128xf32> to vector<16x32xf32>
    %41 = vector.extract_strided_slice %38 {offsets = [0, 64], sizes = [16, 32], strides = [1, 1]} : vector<16x128xf32> to vector<16x32xf32>
    %42 = vector.extract_strided_slice %37 {offsets = [0, 96], sizes = [16, 32], strides = [1, 1]} : vector<16x128xf32> to vector<16x32xf32>
    %43 = arith.mulf %40, %29 : vector<16x32xf32>
    %44 = arith.mulf %39, %41 : vector<16x32xf32>
    %45 = arith.addf %43, %44 : vector<16x32xf32>
    %46 = math.tanh %45 : vector<16x32xf32>
    %47 = arith.mulf %42, %46 : vector<16x32xf32>
    %cst_31 = arith.constant dense<0.000000e+00> : vector<16x128xf32>
    %48 = tpu.matmul %47, %18, %cst_31 {dimension_numbers = #tpu.dot_dimension_numbers<[1], [0], [0], [1], [0, 0, 1, 1], [], []>} : vector<16x32xf32>, vector<32x128xf32>, vector<16x128xf32> -> vector<16x128xf32>
    %cst_32 = arith.constant dense<0.000000e+00> : vector<16x128xf32>
    %49 = tpu.matmul %29, %19, %cst_32 {dimension_numbers = #tpu.dot_dimension_numbers<[1], [0], [0], [1], [0, 0, 1, 1], [], []>} : vector<16x32xf32>, vector<32x128xf32>, vector<16x128xf32> -> vector<16x128xf32>
    %50 = arith.addf %48, %49 : vector<16x128xf32>
    %51 = arith.addf %50, %22 : vector<16x128xf32>
    %52 = arith.negf %51 : vector<16x128xf32>
    %53 = math.exp %52 : vector<16x128xf32>
    %cst_33 = arith.constant 1.000000e+00 : f32
    %54 = vector.broadcast %cst_33 : f32 to vector<16x128xf32>
    %55 = arith.addf %54, %53 : vector<16x128xf32>
    %56 = arith.divf %54, %55 : vector<16x128xf32>
    %57 = math.tanh %51 : vector<16x128xf32>
    %58 = vector.extract_strided_slice %56 {offsets = [0, 0], sizes = [16, 32], strides = [1, 1]} : vector<16x128xf32> to vector<16x32xf32>
    %59 = vector.extract_strided_slice %56 {offsets = [0, 32], sizes = [16, 32], strides = [1, 1]} : vector<16x128xf32> to vector<16x32xf32>
    %60 = vector.extract_strided_slice %57 {offsets = [0, 64], sizes = [16, 32], strides = [1, 1]} : vector<16x128xf32> to vector<16x32xf32>
    %61 = vector.extract_strided_slice %56 {offsets = [0, 96], sizes = [16, 32], strides = [1, 1]} : vector<16x128xf32> to vector<16x32xf32>
    %62 = arith.mulf %59, %29 : vector<16x32xf32>
    %63 = arith.mulf %58, %60 : vector<16x32xf32>
    %64 = arith.addf %62, %63 : vector<16x32xf32>
    %65 = math.tanh %64 : vector<16x32xf32>
    %66 = arith.mulf %61, %65 : vector<16x32xf32>
    %67 = vector.extract_strided_slice %16 {offsets = [0, 0, 0], sizes = [1, 16, 128], strides = [1, 1, 1]} : vector<8x16x128xf32> to vector<1x16x128xf32>
    %68 = vector.shape_cast %67 : vector<1x16x128xf32> to vector<16x128xf32>
    %cst_34 = arith.constant dense<0.000000e+00> : vector<16x128xf32>
    %69 = tpu.matmul %29, %23, %cst_34 {dimension_numbers = #tpu.dot_dimension_numbers<[1], [0], [0], [1], [0, 0, 1, 1], [], []>} : vector<16x32xf32>, vector<32x128xf32>, vector<16x128xf32> -> vector<16x128xf32>
    %70 = arith.addf %68, %69 : vector<16x128xf32>
    %71 = arith.negf %70 : vector<16x128xf32>
    %72 = math.exp %71 : vector<16x128xf32>
    %cst_35 = arith.constant 1.000000e+00 : f32
    %73 = vector.broadcast %cst_35 : f32 to vector<16x128xf32>
    %74 = arith.addf %73, %72 : vector<16x128xf32>
    %75 = arith.divf %73, %74 : vector<16x128xf32>
    %76 = math.tanh %70 : vector<16x128xf32>
    %77 = vector.extract_strided_slice %75 {offsets = [0, 0], sizes = [16, 32], strides = [1, 1]} : vector<16x128xf32> to vector<16x32xf32>
    %78 = vector.extract_strided_slice %75 {offsets = [0, 32], sizes = [16, 32], strides = [1, 1]} : vector<16x128xf32> to vector<16x32xf32>
    %79 = vector.extract_strided_slice %76 {offsets = [0, 64], sizes = [16, 32], strides = [1, 1]} : vector<16x128xf32> to vector<16x32xf32>
    %80 = vector.extract_strided_slice %75 {offsets = [0, 96], sizes = [16, 32], strides = [1, 1]} : vector<16x128xf32> to vector<16x32xf32>
    %81 = arith.mulf %78, %29 : vector<16x32xf32>
    %82 = arith.mulf %77, %79 : vector<16x32xf32>
    %83 = arith.addf %81, %82 : vector<16x32xf32>
    %84 = math.tanh %83 : vector<16x32xf32>
    %85 = arith.mulf %80, %84 : vector<16x32xf32>
    %cst_36 = arith.constant dense<0.000000e+00> : vector<16x128xf32>
    %86 = tpu.matmul %85, %24, %cst_36 {dimension_numbers = #tpu.dot_dimension_numbers<[1], [0], [0], [1], [0, 0, 1, 1], [], []>} : vector<16x32xf32>, vector<32x128xf32>, vector<16x128xf32> -> vector<16x128xf32>
    %cst_37 = arith.constant dense<0.000000e+00> : vector<16x128xf32>
    %87 = tpu.matmul %29, %25, %cst_37 {dimension_numbers = #tpu.dot_dimension_numbers<[1], [0], [0], [1], [0, 0, 1, 1], [], []>} : vector<16x32xf32>, vector<32x128xf32>, vector<16x128xf32> -> vector<16x128xf32>
    %88 = arith.addf %86, %87 : vector<16x128xf32>
    %89 = arith.addf %88, %28 : vector<16x128xf32>
    %90 = arith.negf %89 : vector<16x128xf32>
    %91 = math.exp %90 : vector<16x128xf32>
    %cst_38 = arith.constant 1.000000e+00 : f32
    %92 = vector.broadcast %cst_38 : f32 to vector<16x128xf32>
    %93 = arith.addf %92, %91 : vector<16x128xf32>
    %94 = arith.divf %92, %93 : vector<16x128xf32>
    %95 = math.tanh %89 : vector<16x128xf32>
    %96 = vector.extract_strided_slice %94 {offsets = [0, 0], sizes = [16, 32], strides = [1, 1]} : vector<16x128xf32> to vector<16x32xf32>
    %97 = vector.extract_strided_slice %94 {offsets = [0, 32], sizes = [16, 32], strides = [1, 1]} : vector<16x128xf32> to vector<16x32xf32>
    %98 = vector.extract_strided_slice %95 {offsets = [0, 64], sizes = [16, 32], strides = [1, 1]} : vector<16x128xf32> to vector<16x32xf32>
    %99 = vector.extract_strided_slice %94 {offsets = [0, 96], sizes = [16, 32], strides = [1, 1]} : vector<16x128xf32> to vector<16x32xf32>
    %100 = arith.mulf %97, %29 : vector<16x32xf32>
    %101 = arith.mulf %96, %98 : vector<16x32xf32>
    %102 = arith.addf %100, %101 : vector<16x32xf32>
    %103 = math.tanh %102 : vector<16x32xf32>
    %104 = arith.mulf %99, %103 : vector<16x32xf32>
    %105 = vector.extract_strided_slice %6 {offsets = [16, 0], sizes = [16, 128], strides = [1, 1]} : vector<128x128xf32> to vector<16x128xf32>
    %cst_39 = arith.constant dense<0.000000e+00> : vector<16x128xf32>
    %106 = tpu.matmul %47, %17, %cst_39 {dimension_numbers = #tpu.dot_dimension_numbers<[1], [0], [0], [1], [0, 0, 1, 1], [], []>} : vector<16x32xf32>, vector<32x128xf32>, vector<16x128xf32> -> vector<16x128xf32>
    %107 = arith.addf %105, %106 : vector<16x128xf32>
    %108 = arith.negf %107 : vector<16x128xf32>
    %109 = math.exp %108 : vector<16x128xf32>
    %cst_40 = arith.constant 1.000000e+00 : f32
    %110 = vector.broadcast %cst_40 : f32 to vector<16x128xf32>
    %111 = arith.addf %110, %109 : vector<16x128xf32>
    %112 = arith.divf %110, %111 : vector<16x128xf32>
    %113 = math.tanh %107 : vector<16x128xf32>
    %114 = vector.extract_strided_slice %112 {offsets = [0, 0], sizes = [16, 32], strides = [1, 1]} : vector<16x128xf32> to vector<16x32xf32>
    %115 = vector.extract_strided_slice %112 {offsets = [0, 32], sizes = [16, 32], strides = [1, 1]} : vector<16x128xf32> to vector<16x32xf32>
    %116 = vector.extract_strided_slice %113 {offsets = [0, 64], sizes = [16, 32], strides = [1, 1]} : vector<16x128xf32> to vector<16x32xf32>
    %117 = vector.extract_strided_slice %112 {offsets = [0, 96], sizes = [16, 32], strides = [1, 1]} : vector<16x128xf32> to vector<16x32xf32>
    %118 = arith.mulf %115, %45 : vector<16x32xf32>
    %119 = arith.mulf %114, %116 : vector<16x32xf32>
    %120 = arith.addf %118, %119 : vector<16x32xf32>
    %121 = math.tanh %120 : vector<16x32xf32>
    %122 = arith.mulf %117, %121 : vector<16x32xf32>
    %cst_41 = arith.constant dense<0.000000e+00> : vector<16x128xf32>
    %123 = tpu.matmul %122, %18, %cst_41 {dimension_numbers = #tpu.dot_dimension_numbers<[1], [0], [0], [1], [0, 0, 1, 1], [], []>} : vector<16x32xf32>, vector<32x128xf32>, vector<16x128xf32> -> vector<16x128xf32>
    %cst_42 = arith.constant dense<0.000000e+00> : vector<16x128xf32>
    %124 = tpu.matmul %66, %19, %cst_42 {dimension_numbers = #tpu.dot_dimension_numbers<[1], [0], [0], [1], [0, 0, 1, 1], [], []>} : vector<16x32xf32>, vector<32x128xf32>, vector<16x128xf32> -> vector<16x128xf32>
    %125 = arith.addf %123, %124 : vector<16x128xf32>
    %126 = arith.addf %125, %22 : vector<16x128xf32>
    %127 = arith.negf %126 : vector<16x128xf32>
    %128 = math.exp %127 : vector<16x128xf32>
    %cst_43 = arith.constant 1.000000e+00 : f32
    %129 = vector.broadcast %cst_43 : f32 to vector<16x128xf32>
    %130 = arith.addf %129, %128 : vector<16x128xf32>
    %131 = arith.divf %129, %130 : vector<16x128xf32>
    %132 = math.tanh %126 : vector<16x128xf32>
    %133 = vector.extract_strided_slice %131 {offsets = [0, 0], sizes = [16, 32], strides = [1, 1]} : vector<16x128xf32> to vector<16x32xf32>
    %134 = vector.extract_strided_slice %131 {offsets = [0, 32], sizes = [16, 32], strides = [1, 1]} : vector<16x128xf32> to vector<16x32xf32>
    %135 = vector.extract_strided_slice %132 {offsets = [0, 64], sizes = [16, 32], strides = [1, 1]} : vector<16x128xf32> to vector<16x32xf32>
    %136 = vector.extract_strided_slice %131 {offsets = [0, 96], sizes = [16, 32], strides = [1, 1]} : vector<16x128xf32> to vector<16x32xf32>
    %137 = arith.mulf %134, %64 : vector<16x32xf32>
    %138 = arith.mulf %133, %135 : vector<16x32xf32>
    %139 = arith.addf %137, %138 : vector<16x32xf32>
    %140 = math.tanh %139 : vector<16x32xf32>
    %141 = arith.mulf %136, %140 : vector<16x32xf32>
    %142 = vector.extract_strided_slice %16 {offsets = [1, 0, 0], sizes = [1, 16, 128], strides = [1, 1, 1]} : vector<8x16x128xf32> to vector<1x16x128xf32>
    %143 = vector.shape_cast %142 : vector<1x16x128xf32> to vector<16x128xf32>
    %cst_44 = arith.constant dense<0.000000e+00> : vector<16x128xf32>
    %144 = tpu.matmul %85, %23, %cst_44 {dimension_numbers = #tpu.dot_dimension_numbers<[1], [0], [0], [1], [0, 0, 1, 1], [], []>} : vector<16x32xf32>, vector<32x128xf32>, vector<16x128xf32> -> vector<16x128xf32>
    %145 = arith.addf %143, %144 : vector<16x128xf32>
    %146 = arith.negf %145 : vector<16x128xf32>
    %147 = math.exp %146 : vector<16x128xf32>
    %cst_45 = arith.constant 1.000000e+00 : f32
    %148 = vector.broadcast %cst_45 : f32 to vector<16x128xf32>
    %149 = arith.addf %148, %147 : vector<16x128xf32>
    %150 = arith.divf %148, %149 : vector<16x128xf32>
    %151 = math.tanh %145 : vector<16x128xf32>
    %152 = vector.extract_strided_slice %150 {offsets = [0, 0], sizes = [16, 32], strides = [1, 1]} : vector<16x128xf32> to vector<16x32xf32>
    %153 = vector.extract_strided_slice %150 {offsets = [0, 32], sizes = [16, 32], strides = [1, 1]} : vector<16x128xf32> to vector<16x32xf32>
    %154 = vector.extract_strided_slice %151 {offsets = [0, 64], sizes = [16, 32], strides = [1, 1]} : vector<16x128xf32> to vector<16x32xf32>
    %155 = vector.extract_strided_slice %150 {offsets = [0, 96], sizes = [16, 32], strides = [1, 1]} : vector<16x128xf32> to vector<16x32xf32>
    %156 = arith.mulf %153, %83 : vector<16x32xf32>
    %157 = arith.mulf %152, %154 : vector<16x32xf32>
    %158 = arith.addf %156, %157 : vector<16x32xf32>
    %159 = math.tanh %158 : vector<16x32xf32>
    %160 = arith.mulf %155, %159 : vector<16x32xf32>
    %cst_46 = arith.constant dense<0.000000e+00> : vector<16x128xf32>
    %161 = tpu.matmul %160, %24, %cst_46 {dimension_numbers = #tpu.dot_dimension_numbers<[1], [0], [0], [1], [0, 0, 1, 1], [], []>} : vector<16x32xf32>, vector<32x128xf32>, vector<16x128xf32> -> vector<16x128xf32>
    %cst_47 = arith.constant dense<0.000000e+00> : vector<16x128xf32>
    %162 = tpu.matmul %104, %25, %cst_47 {dimension_numbers = #tpu.dot_dimension_numbers<[1], [0], [0], [1], [0, 0, 1, 1], [], []>} : vector<16x32xf32>, vector<32x128xf32>, vector<16x128xf32> -> vector<16x128xf32>
    %163 = arith.addf %161, %162 : vector<16x128xf32>
    %164 = arith.addf %163, %28 : vector<16x128xf32>
    %165 = arith.negf %164 : vector<16x128xf32>
    %166 = math.exp %165 : vector<16x128xf32>
    %cst_48 = arith.constant 1.000000e+00 : f32
    %167 = vector.broadcast %cst_48 : f32 to vector<16x128xf32>
    %168 = arith.addf %167, %166 : vector<16x128xf32>
    %169 = arith.divf %167, %168 : vector<16x128xf32>
    %170 = math.tanh %164 : vector<16x128xf32>
    %171 = vector.extract_strided_slice %169 {offsets = [0, 0], sizes = [16, 32], strides = [1, 1]} : vector<16x128xf32> to vector<16x32xf32>
    %172 = vector.extract_strided_slice %169 {offsets = [0, 32], sizes = [16, 32], strides = [1, 1]} : vector<16x128xf32> to vector<16x32xf32>
    %173 = vector.extract_strided_slice %170 {offsets = [0, 64], sizes = [16, 32], strides = [1, 1]} : vector<16x128xf32> to vector<16x32xf32>
    %174 = vector.extract_strided_slice %169 {offsets = [0, 96], sizes = [16, 32], strides = [1, 1]} : vector<16x128xf32> to vector<16x32xf32>
    %175 = arith.mulf %172, %102 : vector<16x32xf32>
    %176 = arith.mulf %171, %173 : vector<16x32xf32>
    %177 = arith.addf %175, %176 : vector<16x32xf32>
    %178 = math.tanh %177 : vector<16x32xf32>
    %179 = arith.mulf %174, %178 : vector<16x32xf32>
    %180 = vector.extract_strided_slice %6 {offsets = [32, 0], sizes = [16, 128], strides = [1, 1]} : vector<128x128xf32> to vector<16x128xf32>
    %cst_49 = arith.constant dense<0.000000e+00> : vector<16x128xf32>
    %181 = tpu.matmul %122, %17, %cst_49 {dimension_numbers = #tpu.dot_dimension_numbers<[1], [0], [0], [1], [0, 0, 1, 1], [], []>} : vector<16x32xf32>, vector<32x128xf32>, vector<16x128xf32> -> vector<16x128xf32>
    %182 = arith.addf %180, %181 : vector<16x128xf32>
    %183 = arith.negf %182 : vector<16x128xf32>
    %184 = math.exp %183 : vector<16x128xf32>
    %cst_50 = arith.constant 1.000000e+00 : f32
    %185 = vector.broadcast %cst_50 : f32 to vector<16x128xf32>
    %186 = arith.addf %185, %184 : vector<16x128xf32>
    %187 = arith.divf %185, %186 : vector<16x128xf32>
    %188 = math.tanh %182 : vector<16x128xf32>
    %189 = vector.extract_strided_slice %187 {offsets = [0, 0], sizes = [16, 32], strides = [1, 1]} : vector<16x128xf32> to vector<16x32xf32>
    %190 = vector.extract_strided_slice %187 {offsets = [0, 32], sizes = [16, 32], strides = [1, 1]} : vector<16x128xf32> to vector<16x32xf32>
    %191 = vector.extract_strided_slice %188 {offsets = [0, 64], sizes = [16, 32], strides = [1, 1]} : vector<16x128xf32> to vector<16x32xf32>
    %192 = vector.extract_strided_slice %187 {offsets = [0, 96], sizes = [16, 32], strides = [1, 1]} : vector<16x128xf32> to vector<16x32xf32>
    %193 = arith.mulf %190, %120 : vector<16x32xf32>
    %194 = arith.mulf %189, %191 : vector<16x32xf32>
    %195 = arith.addf %193, %194 : vector<16x32xf32>
    %196 = math.tanh %195 : vector<16x32xf32>
    %197 = arith.mulf %192, %196 : vector<16x32xf32>
    %cst_51 = arith.constant dense<0.000000e+00> : vector<16x128xf32>
    %198 = tpu.matmul %197, %18, %cst_51 {dimension_numbers = #tpu.dot_dimension_numbers<[1], [0], [0], [1], [0, 0, 1, 1], [], []>} : vector<16x32xf32>, vector<32x128xf32>, vector<16x128xf32> -> vector<16x128xf32>
    %cst_52 = arith.constant dense<0.000000e+00> : vector<16x128xf32>
    %199 = tpu.matmul %141, %19, %cst_52 {dimension_numbers = #tpu.dot_dimension_numbers<[1], [0], [0], [1], [0, 0, 1, 1], [], []>} : vector<16x32xf32>, vector<32x128xf32>, vector<16x128xf32> -> vector<16x128xf32>
    %200 = arith.addf %198, %199 : vector<16x128xf32>
    %201 = arith.addf %200, %22 : vector<16x128xf32>
    %202 = arith.negf %201 : vector<16x128xf32>
    %203 = math.exp %202 : vector<16x128xf32>
    %cst_53 = arith.constant 1.000000e+00 : f32
    %204 = vector.broadcast %cst_53 : f32 to vector<16x128xf32>
    %205 = arith.addf %204, %203 : vector<16x128xf32>
    %206 = arith.divf %204, %205 : vector<16x128xf32>
    %207 = math.tanh %201 : vector<16x128xf32>
    %208 = vector.extract_strided_slice %206 {offsets = [0, 0], sizes = [16, 32], strides = [1, 1]} : vector<16x128xf32> to vector<16x32xf32>
    %209 = vector.extract_strided_slice %206 {offsets = [0, 32], sizes = [16, 32], strides = [1, 1]} : vector<16x128xf32> to vector<16x32xf32>
    %210 = vector.extract_strided_slice %207 {offsets = [0, 64], sizes = [16, 32], strides = [1, 1]} : vector<16x128xf32> to vector<16x32xf32>
    %211 = vector.extract_strided_slice %206 {offsets = [0, 96], sizes = [16, 32], strides = [1, 1]} : vector<16x128xf32> to vector<16x32xf32>
    %212 = arith.mulf %209, %139 : vector<16x32xf32>
    %213 = arith.mulf %208, %210 : vector<16x32xf32>
    %214 = arith.addf %212, %213 : vector<16x32xf32>
    %215 = math.tanh %214 : vector<16x32xf32>
    %216 = arith.mulf %211, %215 : vector<16x32xf32>
    %217 = vector.extract_strided_slice %16 {offsets = [2, 0, 0], sizes = [1, 16, 128], strides = [1, 1, 1]} : vector<8x16x128xf32> to vector<1x16x128xf32>
    %218 = vector.shape_cast %217 : vector<1x16x128xf32> to vector<16x128xf32>
    %cst_54 = arith.constant dense<0.000000e+00> : vector<16x128xf32>
    %219 = tpu.matmul %160, %23, %cst_54 {dimension_numbers = #tpu.dot_dimension_numbers<[1], [0], [0], [1], [0, 0, 1, 1], [], []>} : vector<16x32xf32>, vector<32x128xf32>, vector<16x128xf32> -> vector<16x128xf32>
    %220 = arith.addf %218, %219 : vector<16x128xf32>
    %221 = arith.negf %220 : vector<16x128xf32>
    %222 = math.exp %221 : vector<16x128xf32>
    %cst_55 = arith.constant 1.000000e+00 : f32
    %223 = vector.broadcast %cst_55 : f32 to vector<16x128xf32>
    %224 = arith.addf %223, %222 : vector<16x128xf32>
    %225 = arith.divf %223, %224 : vector<16x128xf32>
    %226 = math.tanh %220 : vector<16x128xf32>
    %227 = vector.extract_strided_slice %225 {offsets = [0, 0], sizes = [16, 32], strides = [1, 1]} : vector<16x128xf32> to vector<16x32xf32>
    %228 = vector.extract_strided_slice %225 {offsets = [0, 32], sizes = [16, 32], strides = [1, 1]} : vector<16x128xf32> to vector<16x32xf32>
    %229 = vector.extract_strided_slice %226 {offsets = [0, 64], sizes = [16, 32], strides = [1, 1]} : vector<16x128xf32> to vector<16x32xf32>
    %230 = vector.extract_strided_slice %225 {offsets = [0, 96], sizes = [16, 32], strides = [1, 1]} : vector<16x128xf32> to vector<16x32xf32>
    %231 = arith.mulf %228, %158 : vector<16x32xf32>
    %232 = arith.mulf %227, %229 : vector<16x32xf32>
    %233 = arith.addf %231, %232 : vector<16x32xf32>
    %234 = math.tanh %233 : vector<16x32xf32>
    %235 = arith.mulf %230, %234 : vector<16x32xf32>
    %cst_56 = arith.constant dense<0.000000e+00> : vector<16x128xf32>
    %236 = tpu.matmul %235, %24, %cst_56 {dimension_numbers = #tpu.dot_dimension_numbers<[1], [0], [0], [1], [0, 0, 1, 1], [], []>} : vector<16x32xf32>, vector<32x128xf32>, vector<16x128xf32> -> vector<16x128xf32>
    %cst_57 = arith.constant dense<0.000000e+00> : vector<16x128xf32>
    %237 = tpu.matmul %179, %25, %cst_57 {dimension_numbers = #tpu.dot_dimension_numbers<[1], [0], [0], [1], [0, 0, 1, 1], [], []>} : vector<16x32xf32>, vector<32x128xf32>, vector<16x128xf32> -> vector<16x128xf32>
    %238 = arith.addf %236, %237 : vector<16x128xf32>
    %239 = arith.addf %238, %28 : vector<16x128xf32>
    %240 = arith.negf %239 : vector<16x128xf32>
    %241 = math.exp %240 : vector<16x128xf32>
    %cst_58 = arith.constant 1.000000e+00 : f32
    %242 = vector.broadcast %cst_58 : f32 to vector<16x128xf32>
    %243 = arith.addf %242, %241 : vector<16x128xf32>
    %244 = arith.divf %242, %243 : vector<16x128xf32>
    %245 = math.tanh %239 : vector<16x128xf32>
    %246 = vector.extract_strided_slice %244 {offsets = [0, 0], sizes = [16, 32], strides = [1, 1]} : vector<16x128xf32> to vector<16x32xf32>
    %247 = vector.extract_strided_slice %244 {offsets = [0, 32], sizes = [16, 32], strides = [1, 1]} : vector<16x128xf32> to vector<16x32xf32>
    %248 = vector.extract_strided_slice %245 {offsets = [0, 64], sizes = [16, 32], strides = [1, 1]} : vector<16x128xf32> to vector<16x32xf32>
    %249 = vector.extract_strided_slice %244 {offsets = [0, 96], sizes = [16, 32], strides = [1, 1]} : vector<16x128xf32> to vector<16x32xf32>
    %250 = arith.mulf %247, %177 : vector<16x32xf32>
    %251 = arith.mulf %246, %248 : vector<16x32xf32>
    %252 = arith.addf %250, %251 : vector<16x32xf32>
    %253 = math.tanh %252 : vector<16x32xf32>
    %254 = arith.mulf %249, %253 : vector<16x32xf32>
    %255 = vector.extract_strided_slice %6 {offsets = [48, 0], sizes = [16, 128], strides = [1, 1]} : vector<128x128xf32> to vector<16x128xf32>
    %cst_59 = arith.constant dense<0.000000e+00> : vector<16x128xf32>
    %256 = tpu.matmul %197, %17, %cst_59 {dimension_numbers = #tpu.dot_dimension_numbers<[1], [0], [0], [1], [0, 0, 1, 1], [], []>} : vector<16x32xf32>, vector<32x128xf32>, vector<16x128xf32> -> vector<16x128xf32>
    %257 = arith.addf %255, %256 : vector<16x128xf32>
    %258 = arith.negf %257 : vector<16x128xf32>
    %259 = math.exp %258 : vector<16x128xf32>
    %cst_60 = arith.constant 1.000000e+00 : f32
    %260 = vector.broadcast %cst_60 : f32 to vector<16x128xf32>
    %261 = arith.addf %260, %259 : vector<16x128xf32>
    %262 = arith.divf %260, %261 : vector<16x128xf32>
    %263 = math.tanh %257 : vector<16x128xf32>
    %264 = vector.extract_strided_slice %262 {offsets = [0, 0], sizes = [16, 32], strides = [1, 1]} : vector<16x128xf32> to vector<16x32xf32>
    %265 = vector.extract_strided_slice %262 {offsets = [0, 32], sizes = [16, 32], strides = [1, 1]} : vector<16x128xf32> to vector<16x32xf32>
    %266 = vector.extract_strided_slice %263 {offsets = [0, 64], sizes = [16, 32], strides = [1, 1]} : vector<16x128xf32> to vector<16x32xf32>
    %267 = vector.extract_strided_slice %262 {offsets = [0, 96], sizes = [16, 32], strides = [1, 1]} : vector<16x128xf32> to vector<16x32xf32>
    %268 = arith.mulf %265, %195 : vector<16x32xf32>
    %269 = arith.mulf %264, %266 : vector<16x32xf32>
    %270 = arith.addf %268, %269 : vector<16x32xf32>
    %271 = math.tanh %270 : vector<16x32xf32>
    %272 = arith.mulf %267, %271 : vector<16x32xf32>
    %cst_61 = arith.constant dense<0.000000e+00> : vector<16x128xf32>
    %273 = tpu.matmul %272, %18, %cst_61 {dimension_numbers = #tpu.dot_dimension_numbers<[1], [0], [0], [1], [0, 0, 1, 1], [], []>} : vector<16x32xf32>, vector<32x128xf32>, vector<16x128xf32> -> vector<16x128xf32>
    %cst_62 = arith.constant dense<0.000000e+00> : vector<16x128xf32>
    %274 = tpu.matmul %216, %19, %cst_62 {dimension_numbers = #tpu.dot_dimension_numbers<[1], [0], [0], [1], [0, 0, 1, 1], [], []>} : vector<16x32xf32>, vector<32x128xf32>, vector<16x128xf32> -> vector<16x128xf32>
    %275 = arith.addf %273, %274 : vector<16x128xf32>
    %276 = arith.addf %275, %22 : vector<16x128xf32>
    %277 = arith.negf %276 : vector<16x128xf32>
    %278 = math.exp %277 : vector<16x128xf32>
    %cst_63 = arith.constant 1.000000e+00 : f32
    %279 = vector.broadcast %cst_63 : f32 to vector<16x128xf32>
    %280 = arith.addf %279, %278 : vector<16x128xf32>
    %281 = arith.divf %279, %280 : vector<16x128xf32>
    %282 = math.tanh %276 : vector<16x128xf32>
    %283 = vector.extract_strided_slice %281 {offsets = [0, 0], sizes = [16, 32], strides = [1, 1]} : vector<16x128xf32> to vector<16x32xf32>
    %284 = vector.extract_strided_slice %281 {offsets = [0, 32], sizes = [16, 32], strides = [1, 1]} : vector<16x128xf32> to vector<16x32xf32>
    %285 = vector.extract_strided_slice %282 {offsets = [0, 64], sizes = [16, 32], strides = [1, 1]} : vector<16x128xf32> to vector<16x32xf32>
    %286 = vector.extract_strided_slice %281 {offsets = [0, 96], sizes = [16, 32], strides = [1, 1]} : vector<16x128xf32> to vector<16x32xf32>
    %287 = arith.mulf %284, %214 : vector<16x32xf32>
    %288 = arith.mulf %283, %285 : vector<16x32xf32>
    %289 = arith.addf %287, %288 : vector<16x32xf32>
    %290 = math.tanh %289 : vector<16x32xf32>
    %291 = arith.mulf %286, %290 : vector<16x32xf32>
    %292 = vector.extract_strided_slice %16 {offsets = [3, 0, 0], sizes = [1, 16, 128], strides = [1, 1, 1]} : vector<8x16x128xf32> to vector<1x16x128xf32>
    %293 = vector.shape_cast %292 : vector<1x16x128xf32> to vector<16x128xf32>
    %cst_64 = arith.constant dense<0.000000e+00> : vector<16x128xf32>
    %294 = tpu.matmul %235, %23, %cst_64 {dimension_numbers = #tpu.dot_dimension_numbers<[1], [0], [0], [1], [0, 0, 1, 1], [], []>} : vector<16x32xf32>, vector<32x128xf32>, vector<16x128xf32> -> vector<16x128xf32>
    %295 = arith.addf %293, %294 : vector<16x128xf32>
    %296 = arith.negf %295 : vector<16x128xf32>
    %297 = math.exp %296 : vector<16x128xf32>
    %cst_65 = arith.constant 1.000000e+00 : f32
    %298 = vector.broadcast %cst_65 : f32 to vector<16x128xf32>
    %299 = arith.addf %298, %297 : vector<16x128xf32>
    %300 = arith.divf %298, %299 : vector<16x128xf32>
    %301 = math.tanh %295 : vector<16x128xf32>
    %302 = vector.extract_strided_slice %300 {offsets = [0, 0], sizes = [16, 32], strides = [1, 1]} : vector<16x128xf32> to vector<16x32xf32>
    %303 = vector.extract_strided_slice %300 {offsets = [0, 32], sizes = [16, 32], strides = [1, 1]} : vector<16x128xf32> to vector<16x32xf32>
    %304 = vector.extract_strided_slice %301 {offsets = [0, 64], sizes = [16, 32], strides = [1, 1]} : vector<16x128xf32> to vector<16x32xf32>
    %305 = vector.extract_strided_slice %300 {offsets = [0, 96], sizes = [16, 32], strides = [1, 1]} : vector<16x128xf32> to vector<16x32xf32>
    %306 = arith.mulf %303, %233 : vector<16x32xf32>
    %307 = arith.mulf %302, %304 : vector<16x32xf32>
    %308 = arith.addf %306, %307 : vector<16x32xf32>
    %309 = math.tanh %308 : vector<16x32xf32>
    %310 = arith.mulf %305, %309 : vector<16x32xf32>
    %cst_66 = arith.constant dense<0.000000e+00> : vector<16x128xf32>
    %311 = tpu.matmul %310, %24, %cst_66 {dimension_numbers = #tpu.dot_dimension_numbers<[1], [0], [0], [1], [0, 0, 1, 1], [], []>} : vector<16x32xf32>, vector<32x128xf32>, vector<16x128xf32> -> vector<16x128xf32>
    %cst_67 = arith.constant dense<0.000000e+00> : vector<16x128xf32>
    %312 = tpu.matmul %254, %25, %cst_67 {dimension_numbers = #tpu.dot_dimension_numbers<[1], [0], [0], [1], [0, 0, 1, 1], [], []>} : vector<16x32xf32>, vector<32x128xf32>, vector<16x128xf32> -> vector<16x128xf32>
    %313 = arith.addf %311, %312 : vector<16x128xf32>
    %314 = arith.addf %313, %28 : vector<16x128xf32>
    %315 = arith.negf %314 : vector<16x128xf32>
    %316 = math.exp %315 : vector<16x128xf32>
    %cst_68 = arith.constant 1.000000e+00 : f32
    %317 = vector.broadcast %cst_68 : f32 to vector<16x128xf32>
    %318 = arith.addf %317, %316 : vector<16x128xf32>
    %319 = arith.divf %317, %318 : vector<16x128xf32>
    %320 = math.tanh %314 : vector<16x128xf32>
    %321 = vector.extract_strided_slice %319 {offsets = [0, 0], sizes = [16, 32], strides = [1, 1]} : vector<16x128xf32> to vector<16x32xf32>
    %322 = vector.extract_strided_slice %319 {offsets = [0, 32], sizes = [16, 32], strides = [1, 1]} : vector<16x128xf32> to vector<16x32xf32>
    %323 = vector.extract_strided_slice %320 {offsets = [0, 64], sizes = [16, 32], strides = [1, 1]} : vector<16x128xf32> to vector<16x32xf32>
    %324 = vector.extract_strided_slice %319 {offsets = [0, 96], sizes = [16, 32], strides = [1, 1]} : vector<16x128xf32> to vector<16x32xf32>
    %325 = arith.mulf %322, %252 : vector<16x32xf32>
    %326 = arith.mulf %321, %323 : vector<16x32xf32>
    %327 = arith.addf %325, %326 : vector<16x32xf32>
    %328 = math.tanh %327 : vector<16x32xf32>
    %329 = arith.mulf %324, %328 : vector<16x32xf32>
    %330 = vector.extract_strided_slice %6 {offsets = [64, 0], sizes = [16, 128], strides = [1, 1]} : vector<128x128xf32> to vector<16x128xf32>
    %cst_69 = arith.constant dense<0.000000e+00> : vector<16x128xf32>
    %331 = tpu.matmul %272, %17, %cst_69 {dimension_numbers = #tpu.dot_dimension_numbers<[1], [0], [0], [1], [0, 0, 1, 1], [], []>} : vector<16x32xf32>, vector<32x128xf32>, vector<16x128xf32> -> vector<16x128xf32>
    %332 = arith.addf %330, %331 : vector<16x128xf32>
    %333 = arith.negf %332 : vector<16x128xf32>
    %334 = math.exp %333 : vector<16x128xf32>
    %cst_70 = arith.constant 1.000000e+00 : f32
    %335 = vector.broadcast %cst_70 : f32 to vector<16x128xf32>
    %336 = arith.addf %335, %334 : vector<16x128xf32>
    %337 = arith.divf %335, %336 : vector<16x128xf32>
    %338 = math.tanh %332 : vector<16x128xf32>
    %339 = vector.extract_strided_slice %337 {offsets = [0, 0], sizes = [16, 32], strides = [1, 1]} : vector<16x128xf32> to vector<16x32xf32>
    %340 = vector.extract_strided_slice %337 {offsets = [0, 32], sizes = [16, 32], strides = [1, 1]} : vector<16x128xf32> to vector<16x32xf32>
    %341 = vector.extract_strided_slice %338 {offsets = [0, 64], sizes = [16, 32], strides = [1, 1]} : vector<16x128xf32> to vector<16x32xf32>
    %342 = vector.extract_strided_slice %337 {offsets = [0, 96], sizes = [16, 32], strides = [1, 1]} : vector<16x128xf32> to vector<16x32xf32>
    %343 = arith.mulf %340, %270 : vector<16x32xf32>
    %344 = arith.mulf %339, %341 : vector<16x32xf32>
    %345 = arith.addf %343, %344 : vector<16x32xf32>
    %346 = math.tanh %345 : vector<16x32xf32>
    %347 = arith.mulf %342, %346 : vector<16x32xf32>
    %cst_71 = arith.constant dense<0.000000e+00> : vector<16x128xf32>
    %348 = tpu.matmul %347, %18, %cst_71 {dimension_numbers = #tpu.dot_dimension_numbers<[1], [0], [0], [1], [0, 0, 1, 1], [], []>} : vector<16x32xf32>, vector<32x128xf32>, vector<16x128xf32> -> vector<16x128xf32>
    %cst_72 = arith.constant dense<0.000000e+00> : vector<16x128xf32>
    %349 = tpu.matmul %291, %19, %cst_72 {dimension_numbers = #tpu.dot_dimension_numbers<[1], [0], [0], [1], [0, 0, 1, 1], [], []>} : vector<16x32xf32>, vector<32x128xf32>, vector<16x128xf32> -> vector<16x128xf32>
    %350 = arith.addf %348, %349 : vector<16x128xf32>
    %351 = arith.addf %350, %22 : vector<16x128xf32>
    %352 = arith.negf %351 : vector<16x128xf32>
    %353 = math.exp %352 : vector<16x128xf32>
    %cst_73 = arith.constant 1.000000e+00 : f32
    %354 = vector.broadcast %cst_73 : f32 to vector<16x128xf32>
    %355 = arith.addf %354, %353 : vector<16x128xf32>
    %356 = arith.divf %354, %355 : vector<16x128xf32>
    %357 = math.tanh %351 : vector<16x128xf32>
    %358 = vector.extract_strided_slice %356 {offsets = [0, 0], sizes = [16, 32], strides = [1, 1]} : vector<16x128xf32> to vector<16x32xf32>
    %359 = vector.extract_strided_slice %356 {offsets = [0, 32], sizes = [16, 32], strides = [1, 1]} : vector<16x128xf32> to vector<16x32xf32>
    %360 = vector.extract_strided_slice %357 {offsets = [0, 64], sizes = [16, 32], strides = [1, 1]} : vector<16x128xf32> to vector<16x32xf32>
    %361 = vector.extract_strided_slice %356 {offsets = [0, 96], sizes = [16, 32], strides = [1, 1]} : vector<16x128xf32> to vector<16x32xf32>
    %362 = arith.mulf %359, %289 : vector<16x32xf32>
    %363 = arith.mulf %358, %360 : vector<16x32xf32>
    %364 = arith.addf %362, %363 : vector<16x32xf32>
    %365 = math.tanh %364 : vector<16x32xf32>
    %366 = arith.mulf %361, %365 : vector<16x32xf32>
    %367 = vector.extract_strided_slice %16 {offsets = [4, 0, 0], sizes = [1, 16, 128], strides = [1, 1, 1]} : vector<8x16x128xf32> to vector<1x16x128xf32>
    %368 = vector.shape_cast %367 : vector<1x16x128xf32> to vector<16x128xf32>
    %cst_74 = arith.constant dense<0.000000e+00> : vector<16x128xf32>
    %369 = tpu.matmul %310, %23, %cst_74 {dimension_numbers = #tpu.dot_dimension_numbers<[1], [0], [0], [1], [0, 0, 1, 1], [], []>} : vector<16x32xf32>, vector<32x128xf32>, vector<16x128xf32> -> vector<16x128xf32>
    %370 = arith.addf %368, %369 : vector<16x128xf32>
    %371 = arith.negf %370 : vector<16x128xf32>
    %372 = math.exp %371 : vector<16x128xf32>
    %cst_75 = arith.constant 1.000000e+00 : f32
    %373 = vector.broadcast %cst_75 : f32 to vector<16x128xf32>
    %374 = arith.addf %373, %372 : vector<16x128xf32>
    %375 = arith.divf %373, %374 : vector<16x128xf32>
    %376 = math.tanh %370 : vector<16x128xf32>
    %377 = vector.extract_strided_slice %375 {offsets = [0, 0], sizes = [16, 32], strides = [1, 1]} : vector<16x128xf32> to vector<16x32xf32>
    %378 = vector.extract_strided_slice %375 {offsets = [0, 32], sizes = [16, 32], strides = [1, 1]} : vector<16x128xf32> to vector<16x32xf32>
    %379 = vector.extract_strided_slice %376 {offsets = [0, 64], sizes = [16, 32], strides = [1, 1]} : vector<16x128xf32> to vector<16x32xf32>
    %380 = vector.extract_strided_slice %375 {offsets = [0, 96], sizes = [16, 32], strides = [1, 1]} : vector<16x128xf32> to vector<16x32xf32>
    %381 = arith.mulf %378, %308 : vector<16x32xf32>
    %382 = arith.mulf %377, %379 : vector<16x32xf32>
    %383 = arith.addf %381, %382 : vector<16x32xf32>
    %384 = math.tanh %383 : vector<16x32xf32>
    %385 = arith.mulf %380, %384 : vector<16x32xf32>
    %cst_76 = arith.constant dense<0.000000e+00> : vector<16x128xf32>
    %386 = tpu.matmul %385, %24, %cst_76 {dimension_numbers = #tpu.dot_dimension_numbers<[1], [0], [0], [1], [0, 0, 1, 1], [], []>} : vector<16x32xf32>, vector<32x128xf32>, vector<16x128xf32> -> vector<16x128xf32>
    %cst_77 = arith.constant dense<0.000000e+00> : vector<16x128xf32>
    %387 = tpu.matmul %329, %25, %cst_77 {dimension_numbers = #tpu.dot_dimension_numbers<[1], [0], [0], [1], [0, 0, 1, 1], [], []>} : vector<16x32xf32>, vector<32x128xf32>, vector<16x128xf32> -> vector<16x128xf32>
    %388 = arith.addf %386, %387 : vector<16x128xf32>
    %389 = arith.addf %388, %28 : vector<16x128xf32>
    %390 = arith.negf %389 : vector<16x128xf32>
    %391 = math.exp %390 : vector<16x128xf32>
    %cst_78 = arith.constant 1.000000e+00 : f32
    %392 = vector.broadcast %cst_78 : f32 to vector<16x128xf32>
    %393 = arith.addf %392, %391 : vector<16x128xf32>
    %394 = arith.divf %392, %393 : vector<16x128xf32>
    %395 = math.tanh %389 : vector<16x128xf32>
    %396 = vector.extract_strided_slice %394 {offsets = [0, 0], sizes = [16, 32], strides = [1, 1]} : vector<16x128xf32> to vector<16x32xf32>
    %397 = vector.extract_strided_slice %394 {offsets = [0, 32], sizes = [16, 32], strides = [1, 1]} : vector<16x128xf32> to vector<16x32xf32>
    %398 = vector.extract_strided_slice %395 {offsets = [0, 64], sizes = [16, 32], strides = [1, 1]} : vector<16x128xf32> to vector<16x32xf32>
    %399 = vector.extract_strided_slice %394 {offsets = [0, 96], sizes = [16, 32], strides = [1, 1]} : vector<16x128xf32> to vector<16x32xf32>
    %400 = arith.mulf %397, %327 : vector<16x32xf32>
    %401 = arith.mulf %396, %398 : vector<16x32xf32>
    %402 = arith.addf %400, %401 : vector<16x32xf32>
    %403 = math.tanh %402 : vector<16x32xf32>
    %404 = arith.mulf %399, %403 : vector<16x32xf32>
    %405 = vector.extract_strided_slice %6 {offsets = [80, 0], sizes = [16, 128], strides = [1, 1]} : vector<128x128xf32> to vector<16x128xf32>
    %cst_79 = arith.constant dense<0.000000e+00> : vector<16x128xf32>
    %406 = tpu.matmul %347, %17, %cst_79 {dimension_numbers = #tpu.dot_dimension_numbers<[1], [0], [0], [1], [0, 0, 1, 1], [], []>} : vector<16x32xf32>, vector<32x128xf32>, vector<16x128xf32> -> vector<16x128xf32>
    %407 = arith.addf %405, %406 : vector<16x128xf32>
    %408 = arith.negf %407 : vector<16x128xf32>
    %409 = math.exp %408 : vector<16x128xf32>
    %cst_80 = arith.constant 1.000000e+00 : f32
    %410 = vector.broadcast %cst_80 : f32 to vector<16x128xf32>
    %411 = arith.addf %410, %409 : vector<16x128xf32>
    %412 = arith.divf %410, %411 : vector<16x128xf32>
    %413 = math.tanh %407 : vector<16x128xf32>
    %414 = vector.extract_strided_slice %412 {offsets = [0, 0], sizes = [16, 32], strides = [1, 1]} : vector<16x128xf32> to vector<16x32xf32>
    %415 = vector.extract_strided_slice %412 {offsets = [0, 32], sizes = [16, 32], strides = [1, 1]} : vector<16x128xf32> to vector<16x32xf32>
    %416 = vector.extract_strided_slice %413 {offsets = [0, 64], sizes = [16, 32], strides = [1, 1]} : vector<16x128xf32> to vector<16x32xf32>
    %417 = vector.extract_strided_slice %412 {offsets = [0, 96], sizes = [16, 32], strides = [1, 1]} : vector<16x128xf32> to vector<16x32xf32>
    %418 = arith.mulf %415, %345 : vector<16x32xf32>
    %419 = arith.mulf %414, %416 : vector<16x32xf32>
    %420 = arith.addf %418, %419 : vector<16x32xf32>
    %421 = math.tanh %420 : vector<16x32xf32>
    %422 = arith.mulf %417, %421 : vector<16x32xf32>
    %cst_81 = arith.constant dense<0.000000e+00> : vector<16x128xf32>
    %423 = tpu.matmul %422, %18, %cst_81 {dimension_numbers = #tpu.dot_dimension_numbers<[1], [0], [0], [1], [0, 0, 1, 1], [], []>} : vector<16x32xf32>, vector<32x128xf32>, vector<16x128xf32> -> vector<16x128xf32>
    %cst_82 = arith.constant dense<0.000000e+00> : vector<16x128xf32>
    %424 = tpu.matmul %366, %19, %cst_82 {dimension_numbers = #tpu.dot_dimension_numbers<[1], [0], [0], [1], [0, 0, 1, 1], [], []>} : vector<16x32xf32>, vector<32x128xf32>, vector<16x128xf32> -> vector<16x128xf32>
    %425 = arith.addf %423, %424 : vector<16x128xf32>
    %426 = arith.addf %425, %22 : vector<16x128xf32>
    %427 = arith.negf %426 : vector<16x128xf32>
    %428 = math.exp %427 : vector<16x128xf32>
    %cst_83 = arith.constant 1.000000e+00 : f32
    %429 = vector.broadcast %cst_83 : f32 to vector<16x128xf32>
    %430 = arith.addf %429, %428 : vector<16x128xf32>
    %431 = arith.divf %429, %430 : vector<16x128xf32>
    %432 = math.tanh %426 : vector<16x128xf32>
    %433 = vector.extract_strided_slice %431 {offsets = [0, 0], sizes = [16, 32], strides = [1, 1]} : vector<16x128xf32> to vector<16x32xf32>
    %434 = vector.extract_strided_slice %431 {offsets = [0, 32], sizes = [16, 32], strides = [1, 1]} : vector<16x128xf32> to vector<16x32xf32>
    %435 = vector.extract_strided_slice %432 {offsets = [0, 64], sizes = [16, 32], strides = [1, 1]} : vector<16x128xf32> to vector<16x32xf32>
    %436 = vector.extract_strided_slice %431 {offsets = [0, 96], sizes = [16, 32], strides = [1, 1]} : vector<16x128xf32> to vector<16x32xf32>
    %437 = arith.mulf %434, %364 : vector<16x32xf32>
    %438 = arith.mulf %433, %435 : vector<16x32xf32>
    %439 = arith.addf %437, %438 : vector<16x32xf32>
    %440 = math.tanh %439 : vector<16x32xf32>
    %441 = arith.mulf %436, %440 : vector<16x32xf32>
    %442 = vector.extract_strided_slice %16 {offsets = [5, 0, 0], sizes = [1, 16, 128], strides = [1, 1, 1]} : vector<8x16x128xf32> to vector<1x16x128xf32>
    %443 = vector.shape_cast %442 : vector<1x16x128xf32> to vector<16x128xf32>
    %cst_84 = arith.constant dense<0.000000e+00> : vector<16x128xf32>
    %444 = tpu.matmul %385, %23, %cst_84 {dimension_numbers = #tpu.dot_dimension_numbers<[1], [0], [0], [1], [0, 0, 1, 1], [], []>} : vector<16x32xf32>, vector<32x128xf32>, vector<16x128xf32> -> vector<16x128xf32>
    %445 = arith.addf %443, %444 : vector<16x128xf32>
    %446 = arith.negf %445 : vector<16x128xf32>
    %447 = math.exp %446 : vector<16x128xf32>
    %cst_85 = arith.constant 1.000000e+00 : f32
    %448 = vector.broadcast %cst_85 : f32 to vector<16x128xf32>
    %449 = arith.addf %448, %447 : vector<16x128xf32>
    %450 = arith.divf %448, %449 : vector<16x128xf32>
    %451 = math.tanh %445 : vector<16x128xf32>
    %452 = vector.extract_strided_slice %450 {offsets = [0, 0], sizes = [16, 32], strides = [1, 1]} : vector<16x128xf32> to vector<16x32xf32>
    %453 = vector.extract_strided_slice %450 {offsets = [0, 32], sizes = [16, 32], strides = [1, 1]} : vector<16x128xf32> to vector<16x32xf32>
    %454 = vector.extract_strided_slice %451 {offsets = [0, 64], sizes = [16, 32], strides = [1, 1]} : vector<16x128xf32> to vector<16x32xf32>
    %455 = vector.extract_strided_slice %450 {offsets = [0, 96], sizes = [16, 32], strides = [1, 1]} : vector<16x128xf32> to vector<16x32xf32>
    %456 = arith.mulf %453, %383 : vector<16x32xf32>
    %457 = arith.mulf %452, %454 : vector<16x32xf32>
    %458 = arith.addf %456, %457 : vector<16x32xf32>
    %459 = math.tanh %458 : vector<16x32xf32>
    %460 = arith.mulf %455, %459 : vector<16x32xf32>
    %cst_86 = arith.constant dense<0.000000e+00> : vector<16x128xf32>
    %461 = tpu.matmul %460, %24, %cst_86 {dimension_numbers = #tpu.dot_dimension_numbers<[1], [0], [0], [1], [0, 0, 1, 1], [], []>} : vector<16x32xf32>, vector<32x128xf32>, vector<16x128xf32> -> vector<16x128xf32>
    %cst_87 = arith.constant dense<0.000000e+00> : vector<16x128xf32>
    %462 = tpu.matmul %404, %25, %cst_87 {dimension_numbers = #tpu.dot_dimension_numbers<[1], [0], [0], [1], [0, 0, 1, 1], [], []>} : vector<16x32xf32>, vector<32x128xf32>, vector<16x128xf32> -> vector<16x128xf32>
    %463 = arith.addf %461, %462 : vector<16x128xf32>
    %464 = arith.addf %463, %28 : vector<16x128xf32>
    %465 = arith.negf %464 : vector<16x128xf32>
    %466 = math.exp %465 : vector<16x128xf32>
    %cst_88 = arith.constant 1.000000e+00 : f32
    %467 = vector.broadcast %cst_88 : f32 to vector<16x128xf32>
    %468 = arith.addf %467, %466 : vector<16x128xf32>
    %469 = arith.divf %467, %468 : vector<16x128xf32>
    %470 = math.tanh %464 : vector<16x128xf32>
    %471 = vector.extract_strided_slice %469 {offsets = [0, 0], sizes = [16, 32], strides = [1, 1]} : vector<16x128xf32> to vector<16x32xf32>
    %472 = vector.extract_strided_slice %469 {offsets = [0, 32], sizes = [16, 32], strides = [1, 1]} : vector<16x128xf32> to vector<16x32xf32>
    %473 = vector.extract_strided_slice %470 {offsets = [0, 64], sizes = [16, 32], strides = [1, 1]} : vector<16x128xf32> to vector<16x32xf32>
    %474 = vector.extract_strided_slice %469 {offsets = [0, 96], sizes = [16, 32], strides = [1, 1]} : vector<16x128xf32> to vector<16x32xf32>
    %475 = arith.mulf %472, %402 : vector<16x32xf32>
    %476 = arith.mulf %471, %473 : vector<16x32xf32>
    %477 = arith.addf %475, %476 : vector<16x32xf32>
    %478 = math.tanh %477 : vector<16x32xf32>
    %479 = arith.mulf %474, %478 : vector<16x32xf32>
    %480 = vector.extract_strided_slice %6 {offsets = [96, 0], sizes = [16, 128], strides = [1, 1]} : vector<128x128xf32> to vector<16x128xf32>
    %cst_89 = arith.constant dense<0.000000e+00> : vector<16x128xf32>
    %481 = tpu.matmul %422, %17, %cst_89 {dimension_numbers = #tpu.dot_dimension_numbers<[1], [0], [0], [1], [0, 0, 1, 1], [], []>} : vector<16x32xf32>, vector<32x128xf32>, vector<16x128xf32> -> vector<16x128xf32>
    %482 = arith.addf %480, %481 : vector<16x128xf32>
    %483 = arith.negf %482 : vector<16x128xf32>
    %484 = math.exp %483 : vector<16x128xf32>
    %cst_90 = arith.constant 1.000000e+00 : f32
    %485 = vector.broadcast %cst_90 : f32 to vector<16x128xf32>
    %486 = arith.addf %485, %484 : vector<16x128xf32>
    %487 = arith.divf %485, %486 : vector<16x128xf32>
    %488 = math.tanh %482 : vector<16x128xf32>
    %489 = vector.extract_strided_slice %487 {offsets = [0, 0], sizes = [16, 32], strides = [1, 1]} : vector<16x128xf32> to vector<16x32xf32>
    %490 = vector.extract_strided_slice %487 {offsets = [0, 32], sizes = [16, 32], strides = [1, 1]} : vector<16x128xf32> to vector<16x32xf32>
    %491 = vector.extract_strided_slice %488 {offsets = [0, 64], sizes = [16, 32], strides = [1, 1]} : vector<16x128xf32> to vector<16x32xf32>
    %492 = vector.extract_strided_slice %487 {offsets = [0, 96], sizes = [16, 32], strides = [1, 1]} : vector<16x128xf32> to vector<16x32xf32>
    %493 = arith.mulf %490, %420 : vector<16x32xf32>
    %494 = arith.mulf %489, %491 : vector<16x32xf32>
    %495 = arith.addf %493, %494 : vector<16x32xf32>
    %496 = math.tanh %495 : vector<16x32xf32>
    %497 = arith.mulf %492, %496 : vector<16x32xf32>
    %cst_91 = arith.constant dense<0.000000e+00> : vector<16x128xf32>
    %498 = tpu.matmul %497, %18, %cst_91 {dimension_numbers = #tpu.dot_dimension_numbers<[1], [0], [0], [1], [0, 0, 1, 1], [], []>} : vector<16x32xf32>, vector<32x128xf32>, vector<16x128xf32> -> vector<16x128xf32>
    %cst_92 = arith.constant dense<0.000000e+00> : vector<16x128xf32>
    %499 = tpu.matmul %441, %19, %cst_92 {dimension_numbers = #tpu.dot_dimension_numbers<[1], [0], [0], [1], [0, 0, 1, 1], [], []>} : vector<16x32xf32>, vector<32x128xf32>, vector<16x128xf32> -> vector<16x128xf32>
    %500 = arith.addf %498, %499 : vector<16x128xf32>
    %501 = arith.addf %500, %22 : vector<16x128xf32>
    %502 = arith.negf %501 : vector<16x128xf32>
    %503 = math.exp %502 : vector<16x128xf32>
    %cst_93 = arith.constant 1.000000e+00 : f32
    %504 = vector.broadcast %cst_93 : f32 to vector<16x128xf32>
    %505 = arith.addf %504, %503 : vector<16x128xf32>
    %506 = arith.divf %504, %505 : vector<16x128xf32>
    %507 = math.tanh %501 : vector<16x128xf32>
    %508 = vector.extract_strided_slice %506 {offsets = [0, 0], sizes = [16, 32], strides = [1, 1]} : vector<16x128xf32> to vector<16x32xf32>
    %509 = vector.extract_strided_slice %506 {offsets = [0, 32], sizes = [16, 32], strides = [1, 1]} : vector<16x128xf32> to vector<16x32xf32>
    %510 = vector.extract_strided_slice %507 {offsets = [0, 64], sizes = [16, 32], strides = [1, 1]} : vector<16x128xf32> to vector<16x32xf32>
    %511 = vector.extract_strided_slice %506 {offsets = [0, 96], sizes = [16, 32], strides = [1, 1]} : vector<16x128xf32> to vector<16x32xf32>
    %512 = arith.mulf %509, %439 : vector<16x32xf32>
    %513 = arith.mulf %508, %510 : vector<16x32xf32>
    %514 = arith.addf %512, %513 : vector<16x32xf32>
    %515 = math.tanh %514 : vector<16x32xf32>
    %516 = arith.mulf %511, %515 : vector<16x32xf32>
    %517 = vector.extract_strided_slice %16 {offsets = [6, 0, 0], sizes = [1, 16, 128], strides = [1, 1, 1]} : vector<8x16x128xf32> to vector<1x16x128xf32>
    %518 = vector.shape_cast %517 : vector<1x16x128xf32> to vector<16x128xf32>
    %cst_94 = arith.constant dense<0.000000e+00> : vector<16x128xf32>
    %519 = tpu.matmul %460, %23, %cst_94 {dimension_numbers = #tpu.dot_dimension_numbers<[1], [0], [0], [1], [0, 0, 1, 1], [], []>} : vector<16x32xf32>, vector<32x128xf32>, vector<16x128xf32> -> vector<16x128xf32>
    %520 = arith.addf %518, %519 : vector<16x128xf32>
    %521 = arith.negf %520 : vector<16x128xf32>
    %522 = math.exp %521 : vector<16x128xf32>
    %cst_95 = arith.constant 1.000000e+00 : f32
    %523 = vector.broadcast %cst_95 : f32 to vector<16x128xf32>
    %524 = arith.addf %523, %522 : vector<16x128xf32>
    %525 = arith.divf %523, %524 : vector<16x128xf32>
    %526 = math.tanh %520 : vector<16x128xf32>
    %527 = vector.extract_strided_slice %525 {offsets = [0, 0], sizes = [16, 32], strides = [1, 1]} : vector<16x128xf32> to vector<16x32xf32>
    %528 = vector.extract_strided_slice %525 {offsets = [0, 32], sizes = [16, 32], strides = [1, 1]} : vector<16x128xf32> to vector<16x32xf32>
    %529 = vector.extract_strided_slice %526 {offsets = [0, 64], sizes = [16, 32], strides = [1, 1]} : vector<16x128xf32> to vector<16x32xf32>
    %530 = vector.extract_strided_slice %525 {offsets = [0, 96], sizes = [16, 32], strides = [1, 1]} : vector<16x128xf32> to vector<16x32xf32>
    %531 = arith.mulf %528, %458 : vector<16x32xf32>
    %532 = arith.mulf %527, %529 : vector<16x32xf32>
    %533 = arith.addf %531, %532 : vector<16x32xf32>
    %534 = math.tanh %533 : vector<16x32xf32>
    %535 = arith.mulf %530, %534 : vector<16x32xf32>
    %cst_96 = arith.constant dense<0.000000e+00> : vector<16x128xf32>
    %536 = tpu.matmul %535, %24, %cst_96 {dimension_numbers = #tpu.dot_dimension_numbers<[1], [0], [0], [1], [0, 0, 1, 1], [], []>} : vector<16x32xf32>, vector<32x128xf32>, vector<16x128xf32> -> vector<16x128xf32>
    %cst_97 = arith.constant dense<0.000000e+00> : vector<16x128xf32>
    %537 = tpu.matmul %479, %25, %cst_97 {dimension_numbers = #tpu.dot_dimension_numbers<[1], [0], [0], [1], [0, 0, 1, 1], [], []>} : vector<16x32xf32>, vector<32x128xf32>, vector<16x128xf32> -> vector<16x128xf32>
    %538 = arith.addf %536, %537 : vector<16x128xf32>
    %539 = arith.addf %538, %28 : vector<16x128xf32>
    %540 = arith.negf %539 : vector<16x128xf32>
    %541 = math.exp %540 : vector<16x128xf32>
    %cst_98 = arith.constant 1.000000e+00 : f32
    %542 = vector.broadcast %cst_98 : f32 to vector<16x128xf32>
    %543 = arith.addf %542, %541 : vector<16x128xf32>
    %544 = arith.divf %542, %543 : vector<16x128xf32>
    %545 = math.tanh %539 : vector<16x128xf32>
    %546 = vector.extract_strided_slice %544 {offsets = [0, 0], sizes = [16, 32], strides = [1, 1]} : vector<16x128xf32> to vector<16x32xf32>
    %547 = vector.extract_strided_slice %544 {offsets = [0, 32], sizes = [16, 32], strides = [1, 1]} : vector<16x128xf32> to vector<16x32xf32>
    %548 = vector.extract_strided_slice %545 {offsets = [0, 64], sizes = [16, 32], strides = [1, 1]} : vector<16x128xf32> to vector<16x32xf32>
    %549 = vector.extract_strided_slice %544 {offsets = [0, 96], sizes = [16, 32], strides = [1, 1]} : vector<16x128xf32> to vector<16x32xf32>
    %550 = arith.mulf %547, %477 : vector<16x32xf32>
    %551 = arith.mulf %546, %548 : vector<16x32xf32>
    %552 = arith.addf %550, %551 : vector<16x32xf32>
    %553 = math.tanh %552 : vector<16x32xf32>
    %554 = arith.mulf %549, %553 : vector<16x32xf32>
    %555 = vector.extract_strided_slice %6 {offsets = [112, 0], sizes = [16, 128], strides = [1, 1]} : vector<128x128xf32> to vector<16x128xf32>
    %cst_99 = arith.constant dense<0.000000e+00> : vector<16x128xf32>
    %556 = tpu.matmul %497, %17, %cst_99 {dimension_numbers = #tpu.dot_dimension_numbers<[1], [0], [0], [1], [0, 0, 1, 1], [], []>} : vector<16x32xf32>, vector<32x128xf32>, vector<16x128xf32> -> vector<16x128xf32>
    %557 = arith.addf %555, %556 : vector<16x128xf32>
    %558 = arith.negf %557 : vector<16x128xf32>
    %559 = math.exp %558 : vector<16x128xf32>
    %cst_100 = arith.constant 1.000000e+00 : f32
    %560 = vector.broadcast %cst_100 : f32 to vector<16x128xf32>
    %561 = arith.addf %560, %559 : vector<16x128xf32>
    %562 = arith.divf %560, %561 : vector<16x128xf32>
    %563 = math.tanh %557 : vector<16x128xf32>
    %564 = vector.extract_strided_slice %562 {offsets = [0, 0], sizes = [16, 32], strides = [1, 1]} : vector<16x128xf32> to vector<16x32xf32>
    %565 = vector.extract_strided_slice %562 {offsets = [0, 32], sizes = [16, 32], strides = [1, 1]} : vector<16x128xf32> to vector<16x32xf32>
    %566 = vector.extract_strided_slice %563 {offsets = [0, 64], sizes = [16, 32], strides = [1, 1]} : vector<16x128xf32> to vector<16x32xf32>
    %567 = vector.extract_strided_slice %562 {offsets = [0, 96], sizes = [16, 32], strides = [1, 1]} : vector<16x128xf32> to vector<16x32xf32>
    %568 = arith.mulf %565, %495 : vector<16x32xf32>
    %569 = arith.mulf %564, %566 : vector<16x32xf32>
    %570 = arith.addf %568, %569 : vector<16x32xf32>
    %571 = math.tanh %570 : vector<16x32xf32>
    %572 = arith.mulf %567, %571 : vector<16x32xf32>
    %cst_101 = arith.constant dense<0.000000e+00> : vector<16x128xf32>
    %573 = tpu.matmul %572, %18, %cst_101 {dimension_numbers = #tpu.dot_dimension_numbers<[1], [0], [0], [1], [0, 0, 1, 1], [], []>} : vector<16x32xf32>, vector<32x128xf32>, vector<16x128xf32> -> vector<16x128xf32>
    %cst_102 = arith.constant dense<0.000000e+00> : vector<16x128xf32>
    %574 = tpu.matmul %516, %19, %cst_102 {dimension_numbers = #tpu.dot_dimension_numbers<[1], [0], [0], [1], [0, 0, 1, 1], [], []>} : vector<16x32xf32>, vector<32x128xf32>, vector<16x128xf32> -> vector<16x128xf32>
    %575 = arith.addf %573, %574 : vector<16x128xf32>
    %576 = arith.addf %575, %22 : vector<16x128xf32>
    %577 = arith.negf %576 : vector<16x128xf32>
    %578 = math.exp %577 : vector<16x128xf32>
    %cst_103 = arith.constant 1.000000e+00 : f32
    %579 = vector.broadcast %cst_103 : f32 to vector<16x128xf32>
    %580 = arith.addf %579, %578 : vector<16x128xf32>
    %581 = arith.divf %579, %580 : vector<16x128xf32>
    %582 = math.tanh %576 : vector<16x128xf32>
    %583 = vector.extract_strided_slice %581 {offsets = [0, 0], sizes = [16, 32], strides = [1, 1]} : vector<16x128xf32> to vector<16x32xf32>
    %584 = vector.extract_strided_slice %581 {offsets = [0, 32], sizes = [16, 32], strides = [1, 1]} : vector<16x128xf32> to vector<16x32xf32>
    %585 = vector.extract_strided_slice %582 {offsets = [0, 64], sizes = [16, 32], strides = [1, 1]} : vector<16x128xf32> to vector<16x32xf32>
    %586 = vector.extract_strided_slice %581 {offsets = [0, 96], sizes = [16, 32], strides = [1, 1]} : vector<16x128xf32> to vector<16x32xf32>
    %587 = arith.mulf %584, %514 : vector<16x32xf32>
    %588 = arith.mulf %583, %585 : vector<16x32xf32>
    %589 = arith.addf %587, %588 : vector<16x32xf32>
    %590 = math.tanh %589 : vector<16x32xf32>
    %591 = arith.mulf %586, %590 : vector<16x32xf32>
    %592 = vector.extract_strided_slice %16 {offsets = [7, 0, 0], sizes = [1, 16, 128], strides = [1, 1, 1]} : vector<8x16x128xf32> to vector<1x16x128xf32>
    %593 = vector.shape_cast %592 : vector<1x16x128xf32> to vector<16x128xf32>
    %cst_104 = arith.constant dense<0.000000e+00> : vector<16x128xf32>
    %594 = tpu.matmul %535, %23, %cst_104 {dimension_numbers = #tpu.dot_dimension_numbers<[1], [0], [0], [1], [0, 0, 1, 1], [], []>} : vector<16x32xf32>, vector<32x128xf32>, vector<16x128xf32> -> vector<16x128xf32>
    %595 = arith.addf %593, %594 : vector<16x128xf32>
    %596 = arith.negf %595 : vector<16x128xf32>
    %597 = math.exp %596 : vector<16x128xf32>
    %cst_105 = arith.constant 1.000000e+00 : f32
    %598 = vector.broadcast %cst_105 : f32 to vector<16x128xf32>
    %599 = arith.addf %598, %597 : vector<16x128xf32>
    %600 = arith.divf %598, %599 : vector<16x128xf32>
    %601 = math.tanh %595 : vector<16x128xf32>
    %602 = vector.extract_strided_slice %600 {offsets = [0, 0], sizes = [16, 32], strides = [1, 1]} : vector<16x128xf32> to vector<16x32xf32>
    %603 = vector.extract_strided_slice %600 {offsets = [0, 32], sizes = [16, 32], strides = [1, 1]} : vector<16x128xf32> to vector<16x32xf32>
    %604 = vector.extract_strided_slice %601 {offsets = [0, 64], sizes = [16, 32], strides = [1, 1]} : vector<16x128xf32> to vector<16x32xf32>
    %605 = vector.extract_strided_slice %600 {offsets = [0, 96], sizes = [16, 32], strides = [1, 1]} : vector<16x128xf32> to vector<16x32xf32>
    %606 = arith.mulf %603, %533 : vector<16x32xf32>
    %607 = arith.mulf %602, %604 : vector<16x32xf32>
    %608 = arith.addf %606, %607 : vector<16x32xf32>
    %609 = math.tanh %608 : vector<16x32xf32>
    %610 = arith.mulf %605, %609 : vector<16x32xf32>
    %cst_106 = arith.constant dense<0.000000e+00> : vector<16x128xf32>
    %611 = tpu.matmul %610, %24, %cst_106 {dimension_numbers = #tpu.dot_dimension_numbers<[1], [0], [0], [1], [0, 0, 1, 1], [], []>} : vector<16x32xf32>, vector<32x128xf32>, vector<16x128xf32> -> vector<16x128xf32>
    %cst_107 = arith.constant dense<0.000000e+00> : vector<16x128xf32>
    %612 = tpu.matmul %554, %25, %cst_107 {dimension_numbers = #tpu.dot_dimension_numbers<[1], [0], [0], [1], [0, 0, 1, 1], [], []>} : vector<16x32xf32>, vector<32x128xf32>, vector<16x128xf32> -> vector<16x128xf32>
    %613 = arith.addf %611, %612 : vector<16x128xf32>
    %614 = arith.addf %613, %28 : vector<16x128xf32>
    %615 = arith.negf %614 : vector<16x128xf32>
    %616 = math.exp %615 : vector<16x128xf32>
    %cst_108 = arith.constant 1.000000e+00 : f32
    %617 = vector.broadcast %cst_108 : f32 to vector<16x128xf32>
    %618 = arith.addf %617, %616 : vector<16x128xf32>
    %619 = arith.divf %617, %618 : vector<16x128xf32>
    %620 = math.tanh %614 : vector<16x128xf32>
    %621 = vector.extract_strided_slice %619 {offsets = [0, 0], sizes = [16, 32], strides = [1, 1]} : vector<16x128xf32> to vector<16x32xf32>
    %622 = vector.extract_strided_slice %619 {offsets = [0, 32], sizes = [16, 32], strides = [1, 1]} : vector<16x128xf32> to vector<16x32xf32>
    %623 = vector.extract_strided_slice %620 {offsets = [0, 64], sizes = [16, 32], strides = [1, 1]} : vector<16x128xf32> to vector<16x32xf32>
    %624 = vector.extract_strided_slice %619 {offsets = [0, 96], sizes = [16, 32], strides = [1, 1]} : vector<16x128xf32> to vector<16x32xf32>
    %625 = arith.mulf %622, %552 : vector<16x32xf32>
    %626 = arith.mulf %621, %623 : vector<16x32xf32>
    %627 = arith.addf %625, %626 : vector<16x32xf32>
    %628 = math.tanh %627 : vector<16x32xf32>
    %629 = arith.mulf %624, %628 : vector<16x32xf32>
    %cst_109 = arith.constant 0.000000e+00 : f32
    %630 = vector.broadcast %cst_109 : f32 to vector<16x64xf32>
    %631 = tpu.concatenate %591, %629, %630 in 1 : vector<16x32xf32>, vector<16x32xf32>, vector<16x64xf32> -> vector<16x128xf32>
    %c0_110 = arith.constant 0 : index
    %c0_111 = arith.constant 0 : index
    %632 = vector.load %arg17[%c0_110, %c0_111] : memref<16x128xf32, #tpu.memory_space<vmem>>, vector<16x128xf32>
    tpu.vector_store %arg17[%c0_110, %c0_111], %631 {strides = array<i32>} : memref<16x128xf32, #tpu.memory_space<vmem>>, vector<16x128xf32>,
    %c0_112 = arith.constant 0 : index
    %c0_113 = arith.constant 0 : index
    %633 = vector.load %arg13[%c0_112, %c0_113] : memref<64x128xf32, #tpu.memory_space<vmem>>, vector<32x128xf32>
    %cst_114 = arith.constant dense<0.000000e+00> : vector<16x128xf32>
    %634 = tpu.matmul %591, %633, %cst_114 {dimension_numbers = #tpu.dot_dimension_numbers<[1], [0], [0], [1], [0, 0, 1, 1], [], []>} : vector<16x32xf32>, vector<32x128xf32>, vector<16x128xf32> -> vector<16x128xf32>
    %c32_115 = arith.constant 32 : index
    %c0_116 = arith.constant 0 : index
    %635 = vector.load %arg13[%c32_115, %c0_116] : memref<64x128xf32, #tpu.memory_space<vmem>>, vector<32x128xf32>
    %cst_117 = arith.constant dense<0.000000e+00> : vector<16x128xf32>
    %636 = tpu.matmul %629, %635, %cst_117 {dimension_numbers = #tpu.dot_dimension_numbers<[1], [0], [0], [1], [0, 0, 1, 1], [], []>} : vector<16x32xf32>, vector<32x128xf32>, vector<16x128xf32> -> vector<16x128xf32>
    %637 = arith.addf %634, %636 : vector<16x128xf32>
    %c0_118 = arith.constant 0 : index
    %c0_119 = arith.constant 0 : index
    %638 = vector.load %arg14[%c0_118, %c0_119] : memref<1x128xf32, #tpu.memory_space<vmem>>, vector<1x128xf32>
    %639 = vector.broadcast %638 : vector<1x128xf32> to vector<16x128xf32>
    %640 = arith.addf %637, %639 : vector<16x128xf32>
    %c0_120 = arith.constant 0 : index
    %c0_121 = arith.constant 0 : index
    %641 = vector.load %arg15[%c0_120, %c0_121] : memref<16x128xf32, #tpu.memory_space<vmem>>, vector<16x128xf32>
    tpu.vector_store %arg15[%c0_120, %c0_121], %640 {strides = array<i32>} : memref<16x128xf32, #tpu.memory_space<vmem>>, vector<16x128xf32>,
    %cst_122 = arith.constant dense<0xFF800000> : vector<16xf32>
    %642 = vector.multi_reduction <maximumf>, %640, %cst_122 [1] : vector<16x128xf32> to vector<16xf32>
    %643 = vector.shape_cast %642 : vector<16xf32> to vector<16x1xf32>
    %644 = vector.broadcast %643 : vector<16x1xf32> to vector<16x128xf32>
    %645 = arith.subf %640, %644 : vector<16x128xf32>
    %646 = math.exp %645 : vector<16x128xf32>
    %cst_123 = arith.constant dense<0.000000e+00> : vector<16xf32>
    %647 = vector.multi_reduction <add>, %646, %cst_123 [1] : vector<16x128xf32> to vector<16xf32>
    %648 = vector.shape_cast %647 : vector<16xf32> to vector<16x1xf32>
    %649 = vector.broadcast %648 : vector<16x1xf32> to vector<16x128xf32>
    %650 = arith.divf %646, %649 : vector<16x128xf32>
    %c0_124 = arith.constant 0 : index
    %c0_125 = arith.constant 0 : index
    %651 = vector.load %arg16[%c0_124, %c0_125] : memref<16x128xf32, #tpu.memory_space<vmem>>, vector<16x128xf32>
    tpu.vector_store %arg16[%c0_124, %c0_125], %650 {strides = array<i32>} : memref<16x128xf32, #tpu.memory_space<vmem>>, vector<16x128xf32>,
    return
  }
  func.func @transform_0(%arg0: i32) -> (i32, i32, i32) {
    %c0_i32 = arith.constant 0 : i32
    %c0_i32_0 = arith.constant 0 : i32
    %c0_i32_1 = arith.constant 0 : i32
    return %c0_i32, %arg0, %c0_i32_0 : i32, i32, i32
  }
  func.func @transform_1(%arg0: i32) -> (i32, i32, i32) {
    %c0_i32 = arith.constant 0 : i32
    %c0_i32_0 = arith.constant 0 : i32
    %c0_i32_1 = arith.constant 0 : i32
    return %c0_i32, %arg0, %c0_i32_0 : i32, i32, i32
  }
  func.func @transform_2(%arg0: i32) -> (i32, i32) {
    %c0_i32 = arith.constant 0 : i32
    %c0_i32_0 = arith.constant 0 : i32
    %c0_i32_1 = arith.constant 0 : i32
    return %c0_i32, %c0_i32_0 : i32, i32
  }
  func.func @transform_3(%arg0: i32) -> (i32, i32) {
    %c0_i32 = arith.constant 0 : i32
    %c0_i32_0 = arith.constant 0 : i32
    %c0_i32_1 = arith.constant 0 : i32
    return %c0_i32, %c0_i32_0 : i32, i32
  }
  func.func @transform_4(%arg0: i32) -> (i32, i32) {
    %c0_i32 = arith.constant 0 : i32
    %c0_i32_0 = arith.constant 0 : i32
    %c0_i32_1 = arith.constant 0 : i32
    return %c0_i32, %c0_i32_0 : i32, i32
  }
  func.func @transform_5(%arg0: i32) -> (i32, i32) {
    %c0_i32 = arith.constant 0 : i32
    %c0_i32_0 = arith.constant 0 : i32
    %c0_i32_1 = arith.constant 0 : i32
    return %c0_i32, %c0_i32_0 : i32, i32
  }
  func.func @transform_6(%arg0: i32) -> (i32, i32) {
    %c0_i32 = arith.constant 0 : i32
    %c0_i32_0 = arith.constant 0 : i32
    %c0_i32_1 = arith.constant 0 : i32
    return %c0_i32, %c0_i32_0 : i32, i32
  }
  func.func @transform_7(%arg0: i32) -> (i32, i32) {
    %c0_i32 = arith.constant 0 : i32
    %c0_i32_0 = arith.constant 0 : i32
    %c0_i32_1 = arith.constant 0 : i32
    return %c0_i32, %c0_i32_0 : i32, i32
  }
  func.func @transform_8(%arg0: i32) -> (i32, i32) {
    %c0_i32 = arith.constant 0 : i32
    %c0_i32_0 = arith.constant 0 : i32
    %c0_i32_1 = arith.constant 0 : i32
    return %c0_i32, %c0_i32_0 : i32, i32
  }
  func.func @transform_9(%arg0: i32) -> (i32, i32) {
    %c0_i32 = arith.constant 0 : i32
    %c0_i32_0 = arith.constant 0 : i32
    %c0_i32_1 = arith.constant 0 : i32
    return %c0_i32, %c0_i32_0 : i32, i32
  }
  func.func @transform_10(%arg0: i32) -> (i32, i32) {
    %c0_i32 = arith.constant 0 : i32
    %c0_i32_0 = arith.constant 0 : i32
    %c0_i32_1 = arith.constant 0 : i32
    return %c0_i32, %c0_i32_0 : i32, i32
  }
  func.func @transform_11(%arg0: i32) -> (i32, i32) {
    %c0_i32 = arith.constant 0 : i32
    %c0_i32_0 = arith.constant 0 : i32
    %c0_i32_1 = arith.constant 0 : i32
    return %c0_i32, %c0_i32_0 : i32, i32
  }
  func.func @transform_12(%arg0: i32) -> (i32, i32) {
    %c0_i32 = arith.constant 0 : i32
    %c0_i32_0 = arith.constant 0 : i32
    %c0_i32_1 = arith.constant 0 : i32
    return %c0_i32, %c0_i32_0 : i32, i32
  }
  func.func @transform_13(%arg0: i32) -> (i32, i32) {
    %c0_i32 = arith.constant 0 : i32
    %c0_i32_0 = arith.constant 0 : i32
    %c0_i32_1 = arith.constant 0 : i32
    return %c0_i32, %c0_i32_0 : i32, i32
  }
  func.func @transform_14(%arg0: i32) -> (i32, i32) {
    %c0_i32 = arith.constant 0 : i32
    %c0_i32_0 = arith.constant 0 : i32
    return %arg0, %c0_i32 : i32, i32
  }
  func.func @transform_15(%arg0: i32) -> (i32, i32) {
    %c0_i32 = arith.constant 0 : i32
    %c0_i32_0 = arith.constant 0 : i32
    return %arg0, %c0_i32 : i32, i32
  }
  func.func @transform_16(%arg0: i32) -> (i32, i32) {
    %c0_i32 = arith.constant 0 : i32
    %c0_i32_0 = arith.constant 0 : i32
    return %arg0, %c0_i32 : i32, i32
  }
}

</mosaic_0001>

<bundles_post_ra>
// kernel: tpu_custom_call.1
= control target key start
LH: loop header
LB: loop body
LE: loop exit
PB: predicated region body
PF: predicated region fallthrough
CT: control target
= control target key end

     0   :  { %s11543_s0 = inlined_call_operand.vmem [shape: f32[8,32,32], index: 0, kind: input, shape index: {}]   ;;  %s11544_s1 = inlined_call_operand.vmem [shape: f32[8,32,1], index: 1, kind: input, shape index: {}]   ;;  %s11545_s2 = inlined_call_operand.hbm [shape: f32[32,128], index: 2, kind: input, shape index: {}]   ;;  %s11546_s3 = inlined_call_operand.hbm [shape: f32[32,128], index: 3, kind: input, shape index: {}]   ;;  %s11547_s4 = inlined_call_operand.vmem [shape: f32[1,128], index: 4, kind: input, shape index: {}]   ;;  %s11548_s5 = inlined_call_operand.hbm [shape: f32[64,128], index: 5, kind: input, shape index: {}]   ;;  %s11549_s6 = inlined_call_operand.vmem [shape: f32[1,128], index: 6, kind: input, shape index: {}]   ;;  %s11550_s7 = inlined_call_operand.hbm [shape: f32[1,128], index: 7, kind: input, shape index: {}]   ;;  %s11551_s8 = inlined_call_operand.vmem [shape: f32[32,128], index: 8, kind: input, shape index: {}]   ;;  %s11552_s9 = inlined_call_operand.vmem [shape: f32[1,128], index: 9, kind: input, shape index: {}]   ;;  %s11553_s10 = inlined_call_operand.hbm [shape: f32[64,128], index: 10, kind: input, shape index: {}]   ;;  %s11554_s11 = inlined_call_operand.vmem [shape: f32[1,128], index: 11, kind: input, shape index: {}]   ;;  %s11555_s12 = inlined_call_operand.hbm [shape: f32[64,128], index: 12, kind: input, shape index: {}]   ;;  %s11556_s13 = inlined_call_operand.vmem [shape: f32[1,128], index: 13, kind: input, shape index: {}]   ;;  %s11557_s14 = inlined_call_operand.hbm [shape: f32[32,128], index: 14, kind: output, shape index: {0}]   ;;  %s11558_s15 = inlined_call_operand.hbm [shape: f32[32,128], index: 15, kind: output, shape index: {1}]   ;;  %s11559_s16 = inlined_call_operand.hbm [shape: f32[32,128], index: 16, kind: output, shape index: {2}]  }
   0x1   :  { %11581 = sst [smem:[#allocation30_spill]] %s11543_s0 }
   0x2   :  { %11582 = sst [smem:[#allocation31_spill]] %s11544_s1 }
   0x3   :  { %11583 = sst [smem:[#allocation32_spill]] %s11546_s3 }
   0x4   :  { %11584 = sst [smem:[#allocation33_spill]] %s11549_s6 }
   0x5   :  { %11585 = sst [smem:[#allocation34_spill]] %s11552_s9 }
   0x6   :  { %11586 = sst [smem:[#allocation35_spill]] %s11554_s11 }
   0x7   :  { %11587 = sst [smem:[#allocation36_spill]] %s11556_s13 }
   0x8   :  { %11588 = sst [smem:[#allocation37_spill]] %s11557_s14 }
   0x9   :  { %11589 = sst [smem:[#allocation38_spill]] %s11558_s15 }
   0xa   :  { %11590 = sst [smem:[#allocation39_spill]] %s11559_s16 }
   0xb   :  { %22 = vsyncpa [#allocation5], 0 }
   0xc   :  { %23 = vsyncpa [#allocation8], 0 }
   0xd   :  { %24 = vsyncpa [#allocation11], 0 }
   0xe   :  { %25 = vsyncpa [#allocation14], 0 }
   0xf   :  { %26 = vsyncpa [#allocation6], 0 }
  0x10   :  { %28 = vsyncpa [#allocation6 + $0x1], 0 }
  0x11   :  { %29 = vsyncpa [#allocation17], 0 }
  0x12   :  { %31 = vsyncpa [#allocation17 + $0x1], 0  ;;  %s9887_s21 = smov 0   ;;  %s9889_s22 = smov 0  }
  0x13   :  { %s9891_s23 = smov 0   ;;  %s9893_s24 = smov 0  }
  0x14 LB: > { %11591 = sst [smem:[#allocation25_spill]] %s9771_s21  ;;  %s9908_s25 = sadd.s32 4294967295, %s9783_s24   ;;  %s9783_s24 = sphi %s9893_s24, %s11633_s24   ;;  %s9779_s23 = sphi %s9891_s23, %s11637_s23   ;;  %s9775_s22 = sphi %s9889_s22, %s11636_s22   ;;  %s9771_s21 = sphi %s9887_s21, %s11635_s21  }
  0x15   : > { %s11560_s26 = sadd.s32 4294967294, %s9783_s24   ;;  %s9912_s27 = sadd.s32 1, %s9783_s24  }
  0x16   : > { %11592 = sst [smem:[#allocation26_spill]] %s9912_s27  ;;  %s44_s28 = sadd.s32 1, %s9779_s23 }
  0x17   : > { %s41_s29 = ssub.s32 %s9783_s24, %s9912_s27  ;;  %p51_p0 = scmp.ne.s32.totalorder %s9779_s23, %s9775_s22 }
  0x18   : > { %p42_p1 = scmp.eq.s32.totalorder %s41_s29, 0  ;;  %p52_p2 = scmp.eq.s32.totalorder %s9783_s24, 0 }
  0x19   : > { %p359_p3 = scmp.eq.s32.totalorder %s9908_s25, 1  ;;  %p364_p4 = scmp.ne.s32.totalorder %s9775_s22, %s9771_s21 }
  0x1a   : > { %s9924_s30 = scalar_select %p42_p1, %s9779_s23, %s44_s28  }
  0x1b   : > { %p9926_p5 = por %p52_p2, %p51_p0  ;;  %p9930_p6 = por %p359_p3, %p51_p0 }
  0x1c   : > { %11593 = sst [smem:[#allocation27_spill]] %s9924_s30  ;;  %p365_p7 = scmp.eq.s32.totalorder %s11560_s26, 1 }
  0x1d   : > { %s11594_s0 = scalar_select %p9926_p5, 1, 0 }
  0x1e   : > { %s11595_s17 = scalar_select %p9930_p6, 1, 0 }
  0x1f   : > { %p7231_p8 = scmp.ge.s32.totalorder %s9783_s24, 1  ;;  %p424_p9 = scmp.lt.s32.totalorder %s9783_s24, 3 }
  0x20   : > { %11596 = sst [smem:[#allocation28_spill]] %s11595_s17  ;;  %p9938_p10 = por %p365_p7, %p364_p4 }
  0x21   : > { %p11570_p11 = scmp.eq.s32.totalorder %s9908_s25, 0  ;;  %p9943_p12 = pnand %p7231_p8, %p424_p9 }
  0x22   : > { %s11597_s18 = scalar_select %p9938_p10, 1, 0 }
  0x23   : > { %s11599_s19 = scalar_select %p9943_p12, 1, 0 }
  0x24   : > { %11598 = sst [smem:[#allocation29_spill]] %s11597_s18  ;;  %p8857_p13 = pneg %p9943_p12 }
  0x25   : > { %s9785_s20 = smov [#allocation7]   ;;  %s9786_s26 = smov [#allocation10]  }
  0x26   : > { %s449_s28 = sshll.u32 %s9785_s20, 4  ;;  %p9953_p0 = pnand %p11570_p11, %p8857_p13  ;;  %s9949_s28 = int_to_ptr.vmem [resolvable:$true] %s449_s28 }
  0x27   : > { %s482_s30 = sshll.u32 %s9786_s26, 4  ;;  %s9787_s27 = smov [#allocation4]   ;;  %s9957_s30 = int_to_ptr.vmem [resolvable:$true] %s482_s30 }
  0x28   : > { %s9959_s18 = sshll.u32 %s9787_s27, 4  ;;  %s11601_s3 = sld [smem:[#allocation32_spill]]  ;;  %s437_s18 = int_to_ptr.vmem [resolvable:$true] %s9959_s18 }
  0x29   : > { %p9969_p2 = pneg %p9953_p0 }
  0x2e   : > { %s9477_s15 = scalar_lea.hbm %s11601_s3, 512 }
  0x2f   : > { %p9478_p1 = scmp.ne.s32.totalorder %s11601_s3, %s9477_s15  ;;  %p9484_p7 = scmp.lt.u32.totalorder %s9477_s15, %s11601_s3 }
  0x31   : > { %p9480_p3 = pnand %p9969_p2, %p9478_p1 }
  0x33   : > { %p9481_p4 = pneg %p9480_p3 }
  0x35   : > { %p9486_p8 = pnand %p9484_p7, %p9481_p4 }
  0x37   : > { %9489 = shalt.err (!%p9486_p8)
}
  0x38   : > { %s9490_s14 = scalar_lea.vmem %s9949_s28, 512  ;;  %p9498_p10 = scmp.lt.s32.totalorder %s9949_s28, %s9949_s28 }
  0x39   : > { %p9491_p9 = scmp.ne.s32.totalorder %s9949_s28, %s9490_s14  ;;  %p9499_p6 = scmp.lt.s32.totalorder %s9490_s14, %s9490_s14 }
  0x3b   : > { %p9493_p13 = pnand %p9491_p9, %p9969_p2  ;;  %p9500_p1 = por %p9499_p6, %p9498_p10 }
  0x3d   : > { %p9494_p11 = pneg %p9493_p13 }
  0x3f   : > { %p9501_p3 = pnand %p9500_p1, %p9494_p11 }
  0x41   : > { %9504 = shalt.err (!%p9501_p3)
}
  0x42   : > { %s9788_s16 = smov 128   ;;  %s9789_s15 = smov 8  }
  0x43   : > { %8863 = dma.hbm_to_vmem [thread:$0]  (!%p9953_p0), %s11601_s3, 512, %s9949_s28, [#allocation8], %s9788_s16, %s9788_s16, %s9789_s15  }
  0x44   : > { %s9505_s14 = scalar_lea.hbm %s11550_s7, 16 }
  0x45   : > { %p9506_p6 = scmp.ne.s32.totalorder %s11550_s7, %s9505_s14  ;;  %p9512_p4 = scmp.lt.u32.totalorder %s9505_s14, %s11550_s7 }
  0x47   : > { %p9508_p10 = pnand %p9506_p6, %p9969_p2 }
  0x49   : > { %p9509_p11 = pneg %p9508_p10 }
  0x4b   : > { %p9514_p7 = pnand %p9512_p4, %p9509_p11 }
  0x4d   : > { %9517 = shalt.err (!%p9514_p7)
}
  0x4e   : > { %s9518_s28 = scalar_lea.vmem %s9957_s30, 16  ;;  %s9525_s11 = scalar_lea.vmem %s9957_s30, 32 }
  0x4f   : > { %p9519_p8 = scmp.ne.s32.totalorder %s9957_s30, %s9518_s28  ;;  %p9526_p1 = scmp.lt.s32.totalorder %s9957_s30, %s9957_s30 }
  0x50   : > { %p9527_p3 = scmp.lt.s32.totalorder %s9525_s11, %s9518_s28 }
  0x51   : > { %p9521_p9 = pnand %p9519_p8, %p9969_p2 }
  0x52   : > { %p9528_p6 = por %p9527_p3, %p9526_p1 }
  0x53   : > { %p9522_p13 = pneg %p9521_p9 }
  0x55   : > { %p9529_p10 = pnand %p9528_p6, %p9522_p13 }
  0x57   : > { %9532 = shalt.err (!%p9529_p10)
}
  0x58   : > { %8869 = dma.hbm_to_vmem [thread:$0]  (!%p9953_p0), %s11550_s7, 16, %s9957_s30, [#allocation11]  }
  0x59   : > { %s9533_s20 = scalar_lea.hbm %s11545_s2, 512 }
  0x5a   : > { %p9534_p11 = scmp.ne.s32.totalorder %s11545_s2, %s9533_s20  ;;  %p9540_p8 = scmp.lt.u32.totalorder %s9533_s20, %s11545_s2 }
  0x5c   : > { %p9536_p4 = pnand %p9534_p11, %p9969_p2 }
  0x5e   : > { %p9537_p7 = pneg %p9536_p4 }
  0x60   : > { %p9542_p9 = pnand %p9540_p8, %p9537_p7 }
  0x62   : > { %9545 = shalt.err (!%p9542_p9)
}
  0x63   : > { %s9546_s11 = scalar_lea.vmem %s437_s18, 512  ;;  %p9554_p6 = scmp.lt.s32.totalorder %s437_s18, %s437_s18 }
  0x64   : > { %p9547_p13 = scmp.ne.s32.totalorder %s437_s18, %s9546_s11  ;;  %p9555_p10 = scmp.lt.s32.totalorder %s9546_s11, %s9546_s11 }
  0x66   : > { %p9549_p1 = pnand %p9547_p13, %p9969_p2  ;;  %p9556_p12 = por %p9555_p10, %p9554_p6 }
  0x68   : > { %p9550_p3 = pneg %p9549_p1 }
  0x6a   : > { %p9557_p5 = pnand %p9556_p12, %p9550_p3 }
  0x6c   : > { %9560 = shalt.err (!%p9557_p5)
}
  0x6d   : > { %8860 = dma.hbm_to_vmem [thread:$0]  (!%p9953_p0), %s11545_s2, 512, %s437_s18, [#allocation5], %s9788_s16, %s9788_s16, %s9789_s15  }
  0x6e   : > { %s9790_s9 = smov [#allocation9]   ;;  %s9791_s21 = smov [#allocation12]  }
  0x6f   : > { %s465_s13 = sshll.u32 %s9790_s9, 4  ;;  %s498_s20 = sshll.u32 %s9791_s21, 4  ;;  %s466_s13 = int_to_ptr.vmem [resolvable:$true] %s465_s13  ;;  %s499_s20 = int_to_ptr.vmem [resolvable:$true] %s498_s20 }
  0x70   : > { %s9561_s14 = scalar_lea.hbm %s11548_s5, 1024 }
  0x71   : > { %p9562_p5 = scmp.ne.s32.totalorder %s11548_s5, %s9561_s14  ;;  %p9568_p4 = scmp.lt.u32.totalorder %s9561_s14, %s11548_s5 }
  0x73   : > { %p9564_p12 = pnand %p9562_p5, %p9969_p2 }
  0x75   : > { %p9565_p11 = pneg %p9564_p12 }
  0x77   : > { %p9570_p7 = pnand %p9568_p4, %p9565_p11 }
  0x79   : > { %9573 = shalt.err (!%p9570_p7)
}
  0x7a   : > { %s9574_s18 = scalar_lea.vmem %s466_s13, 1024  ;;  %p9582_p1 = scmp.lt.s32.totalorder %s466_s13, %s466_s13 }
  0x7b   : > { %p9575_p8 = scmp.ne.s32.totalorder %s466_s13, %s9574_s18  ;;  %p9583_p3 = scmp.lt.s32.totalorder %s9574_s18, %s9574_s18 }
  0x7d   : > { %p9577_p9 = pnand %p9575_p8, %p9969_p2  ;;  %p9584_p6 = por %p9583_p3, %p9582_p1 }
  0x7f   : > { %p9578_p13 = pneg %p9577_p9 }
  0x81   : > { %p9585_p10 = pnand %p9584_p6, %p9578_p13 }
  0x83   : > { %9588 = shalt.err (!%p9585_p10)
}
  0x84   : > { %8866 = dma.hbm_to_vmem [thread:$0]  (!%p9953_p0), %s11548_s5, 1024, %s466_s13, [#allocation8], %s9788_s16, %s9788_s16, %s9789_s15  }
  0x85   : > { %s9589_s26 = scalar_lea.hbm %s11553_s10, 1024 }
  0x86   : > { %p9590_p5 = scmp.ne.s32.totalorder %s11553_s10, %s9589_s26  ;;  %p9596_p4 = scmp.lt.u32.totalorder %s9589_s26, %s11553_s10 }
  0x88   : > { %p9592_p12 = pnand %p9590_p5, %p9969_p2 }
  0x8a   : > { %p9593_p11 = pneg %p9592_p12 }
  0x8c   : > { %p9598_p7 = pnand %p9596_p4, %p9593_p11 }
  0x8e   : > { %9601 = shalt.err (!%p9598_p7)
}
  0x8f   : > { %s9602_s30 = scalar_lea.vmem %s499_s20, 1024  ;;  %p9610_p1 = scmp.lt.s32.totalorder %s499_s20, %s499_s20 }
  0x90   : > { %p9603_p8 = scmp.ne.s32.totalorder %s499_s20, %s9602_s30  ;;  %p9611_p3 = scmp.lt.s32.totalorder %s9602_s30, %s9602_s30 }
  0x92   : > { %p9605_p9 = pnand %p9603_p8, %p9969_p2  ;;  %p9612_p6 = por %p9611_p3, %p9610_p1 }
  0x94   : > { %p9606_p13 = pneg %p9605_p9 }
  0x96   : > { %p9613_p10 = pnand %p9612_p6, %p9606_p13 }
  0x98   : > { %9616 = shalt.err (!%p9613_p10)
}
  0x99   : > { %8872 = dma.hbm_to_vmem [thread:$0]  (!%p9953_p0), %s11553_s10, 1024, %s499_s20, [#allocation11], %s9788_s16, %s9788_s16, %s9789_s15  }
  0x9a   : > { %s9792_s3 = smov [#allocation13]   ;;  %s9617_s26 = scalar_lea.hbm %s11555_s12, 1024 }
  0x9b   : > { %s514_s6 = sshll.u32 %s9792_s3, 4  ;;  %p9618_p5 = scmp.ne.s32.totalorder %s11555_s12, %s9617_s26  ;;  %s515_s6 = int_to_ptr.vmem [resolvable:$true] %s514_s6 }
  0x9c   : > { %p9624_p4 = scmp.lt.u32.totalorder %s9617_s26, %s11555_s12 }
  0x9d   : > { %p9620_p12 = pnand %p9618_p5, %p9969_p2 }
  0x9f   : > { %p9621_p11 = pneg %p9620_p12 }
  0xa1   : > { %p9626_p7 = pnand %p9624_p4, %p9621_p11 }
  0xa3   : > { %9629 = shalt.err (!%p9626_p7)
}
  0xa4   : > { %s9630_s20 = scalar_lea.vmem %s515_s6, 1024  ;;  %p9638_p1 = scmp.lt.s32.totalorder %s515_s6, %s515_s6 }
  0xa5   : > { %p9631_p8 = scmp.ne.s32.totalorder %s515_s6, %s9630_s20  ;;  %p9639_p3 = scmp.lt.s32.totalorder %s9630_s20, %s9630_s20 }
  0xa7   : > { %p9633_p9 = pnand %p9631_p8, %p9969_p2  ;;  %p9640_p6 = por %p9639_p3, %p9638_p1 }
  0xa9   : > { %p9634_p13 = pneg %p9633_p9 }
  0xab   : > { %p9641_p10 = pnand %p9640_p6, %p9634_p13 }
  0xad   : > { %9644 = shalt.err (!%p9641_p10)
}
  0xae   : > { %8875 = dma.hbm_to_vmem [thread:$0]  (!%p9953_p0), %s11555_s12, 1024, %s515_s6, [#allocation14], %s9788_s16, %s9788_s16, %s9789_s15  }
  0xaf   : > { %p7238_p5 = scmp.ge.s32.totalorder %s9783_s24, 2 }
  0xb0   : > { %p11603_p2 = scmp.ne.s32.totalorder (!%p7238_p5), %s11594_s0, 0 }
  0xb1   : > { %527 = sbr.rel (%p7238_p5) target bundleno = 221 (0xdd), region = 64 }
  0xb8   : > { %530 = sbr.rel (!%p11603_p2) target bundleno = 202 (0xca), region = 68  ;;  %s532_s17 = sand.u32 (%p11603_p2), 1, %s9779_s23  }
  0xb9   : > { %s7446_s18 = sshll.u32 (%p11603_p2), %s9783_s24, 4  ;;  %s7239_s29 = sshll.u32 (%p11603_p2), %s532_s17, 7 }
  0xba   : > { %s11604_s21 = sld [smem:[#allocation30_spill]] (%p11603_p2)  ;;  %s534_s16 = scalar_lea.vmem (%p11603_p2), [#allocation2], %s7239_s29 }
  0xc0   : > { %s10112_s26 = scalar_lea.vmem %s11604_s21, %s7446_s18 }
  0xc1   : > { %v595_v0 = vld [vmem:[%s10112_s26] sm:$0xff]  ;;  %v597_v1 = vld [vmem:[%s10112_s26 + $0x8] sm:$0xff] }
  0xc2   : > { %v599_v2 = vld [vmem:[%s10112_s26 + $0x20] sm:$0xff]  ;;  %596 = vst [vmem:[%s534_s16] sm:$0xff] %v595_v0  ;;  %598 = vst [vmem:[%s534_s16 + $0x8] sm:$0xff] %v597_v1  ;;  %v601_v3 = vld [vmem:[%s10112_s26 + $0x28] sm:$0xff] }
  0xc3   : > { %600 = vst [vmem:[%s534_s16 + $0x10] sm:$0xff] %v599_v2  ;;  %v603_v4 = vld [vmem:[%s10112_s26 + $0x40] sm:$0xff]  ;;  %v605_v5 = vld [vmem:[%s10112_s26 + $0x48] sm:$0xff]  ;;  %602 = vst [vmem:[%s534_s16 + $0x18] sm:$0xff] %v601_v3 }
  0xc4   : > { %604 = vst [vmem:[%s534_s16 + $0x20] sm:$0xff] %v603_v4  ;;  %606 = vst [vmem:[%s534_s16 + $0x28] sm:$0xff] %v605_v5  ;;  %v607_v6 = vld [vmem:[%s10112_s26 + $0x60] sm:$0xff]  ;;  %v609_v7 = vld [vmem:[%s10112_s26 + $0x68] sm:$0xff] }
  0xc5   : > { %v611_v8 = vld [vmem:[%s10112_s26 + $0x80] sm:$0xff]  ;;  %608 = vst [vmem:[%s534_s16 + $0x30] sm:$0xff] %v607_v6  ;;  %610 = vst [vmem:[%s534_s16 + $0x38] sm:$0xff] %v609_v7  ;;  %v613_v9 = vld [vmem:[%s10112_s26 + $0x88] sm:$0xff] }
  0xc6   : > { %612 = vst [vmem:[%s534_s16 + $0x40] sm:$0xff] %v611_v8  ;;  %v615_v10 = vld [vmem:[%s10112_s26 + $0xa0] sm:$0xff]  ;;  %v617_v11 = vld [vmem:[%s10112_s26 + $0xa8] sm:$0xff]  ;;  %614 = vst [vmem:[%s534_s16 + $0x48] sm:$0xff] %v613_v9 }
  0xc7   : > { %616 = vst [vmem:[%s534_s16 + $0x50] sm:$0xff] %v615_v10  ;;  %618 = vst [vmem:[%s534_s16 + $0x58] sm:$0xff] %v617_v11  ;;  %v619_v12 = vld [vmem:[%s10112_s26 + $0xc0] sm:$0xff]  ;;  %v621_v13 = vld [vmem:[%s10112_s26 + $0xc8] sm:$0xff] }
  0xc8   : > { %v623_v14 = vld [vmem:[%s10112_s26 + $0xe0] sm:$0xff]  ;;  %620 = vst [vmem:[%s534_s16 + $0x60] sm:$0xff] %v619_v12  ;;  %622 = vst [vmem:[%s534_s16 + $0x68] sm:$0xff] %v621_v13  ;;  %v625_v15 = vld [vmem:[%s10112_s26 + $0xe8] sm:$0xff] }
  0xc9   : > { %624 = vst [vmem:[%s534_s16 + $0x70] sm:$0xff] %v623_v14  ;;  %626 = vst [vmem:[%s534_s16 + $0x78] sm:$0xff] %v625_v15 }
  0xca PF: > { %p11605_p0 = scmp.ne.s32.totalorder %s11594_s0, 0 }
  0xcb   : > { %s634_s15 = sand.u32 (%p11605_p0), 1, %s9779_s23   ;;  %s7447_s6 = sshll.u32 (%p11605_p0), %s9783_s24, 4 }
  0xcc   : > { %632 = sbr.rel (!%p11605_p0) target bundleno = 221 (0xdd), region = 106  ;;  %s7242_s27 = sshll.u32 (%p11605_p0), %s634_s15, 7 }
  0xcd   : > { %s11606_s1 = sld [smem:[#allocation31_spill]] (%p11605_p0)  ;;  %s636_s0 = scalar_lea.vmem (%p11605_p0), [#allocation3], %s7242_s27 }
  0xd3   : > { %s10137_s11 = scalar_lea.vmem %s11606_s1, %s7447_s6 }
  0xd4   : > { %v697_v16 = vld [vmem:[%s10137_s11] sm:$0xff]  ;;  %v699_v17 = vld [vmem:[%s10137_s11 + $0x8] sm:$0xff] }
  0xd5   : > { %v701_v18 = vld [vmem:[%s10137_s11 + $0x20] sm:$0xff]  ;;  %698 = vst [vmem:[%s636_s0] sm:$0xff] %v697_v16  ;;  %700 = vst [vmem:[%s636_s0 + $0x8] sm:$0xff] %v699_v17  ;;  %v703_v19 = vld [vmem:[%s10137_s11 + $0x28] sm:$0xff] }
  0xd6   : > { %702 = vst [vmem:[%s636_s0 + $0x10] sm:$0xff] %v701_v18  ;;  %v705_v20 = vld [vmem:[%s10137_s11 + $0x40] sm:$0xff]  ;;  %v707_v21 = vld [vmem:[%s10137_s11 + $0x48] sm:$0xff]  ;;  %704 = vst [vmem:[%s636_s0 + $0x18] sm:$0xff] %v703_v19 }
  0xd7   : > { %706 = vst [vmem:[%s636_s0 + $0x20] sm:$0xff] %v705_v20  ;;  %708 = vst [vmem:[%s636_s0 + $0x28] sm:$0xff] %v707_v21  ;;  %v709_v22 = vld [vmem:[%s10137_s11 + $0x60] sm:$0xff]  ;;  %v711_v23 = vld [vmem:[%s10137_s11 + $0x68] sm:$0xff] }
  0xd8   : > { %v713_v24 = vld [vmem:[%s10137_s11 + $0x80] sm:$0xff]  ;;  %710 = vst [vmem:[%s636_s0 + $0x30] sm:$0xff] %v709_v22  ;;  %712 = vst [vmem:[%s636_s0 + $0x38] sm:$0xff] %v711_v23  ;;  %v715_v25 = vld [vmem:[%s10137_s11 + $0x88] sm:$0xff] }
  0xd9   : > { %714 = vst [vmem:[%s636_s0 + $0x40] sm:$0xff] %v713_v24  ;;  %v717_v26 = vld [vmem:[%s10137_s11 + $0xa0] sm:$0xff]  ;;  %v719_v27 = vld [vmem:[%s10137_s11 + $0xa8] sm:$0xff]  ;;  %716 = vst [vmem:[%s636_s0 + $0x48] sm:$0xff] %v715_v25 }
  0xda   : > { %718 = vst [vmem:[%s636_s0 + $0x50] sm:$0xff] %v717_v26  ;;  %720 = vst [vmem:[%s636_s0 + $0x58] sm:$0xff] %v719_v27  ;;  %v721_v28 = vld [vmem:[%s10137_s11 + $0xc0] sm:$0xff]  ;;  %v723_v29 = vld [vmem:[%s10137_s11 + $0xc8] sm:$0xff] }
  0xdb   : > { %v725_v30 = vld [vmem:[%s10137_s11 + $0xe0] sm:$0xff]  ;;  %722 = vst [vmem:[%s636_s0 + $0x60] sm:$0xff] %v721_v28  ;;  %724 = vst [vmem:[%s636_s0 + $0x68] sm:$0xff] %v723_v29  ;;  %v727_v31 = vld [vmem:[%s10137_s11 + $0xe8] sm:$0xff] }
  0xdc   : > { %726 = vst [vmem:[%s636_s0 + $0x70] sm:$0xff] %v725_v30  ;;  %728 = vst [vmem:[%s636_s0 + $0x78] sm:$0xff] %v727_v31 }
  0xdd PF: > { %p11607_p12 = scmp.ne.s32.totalorder %s11599_s19, 0 }
  0xde   : > { %s10158_s20 = sand.u32 (!%p11607_p12), 1, %s9775_s22   ;;  %p11608_p11 = scmp.eq.s32.totalorder (!%p11607_p12), %s9908_s25, 0 }
  0xdf   : > { %737 = sbr.rel (%p11607_p12) target bundleno = 12239 (0x2fcf), region = 144  ;;  %s7246_s30 = sshll.u32 (!%p11607_p12), %s10158_s20, 7 }
  0xe0   : > { %s10161_s13 = scalar_lea.vmem (!%p11607_p12), [#allocation2], %s7246_s30  ;;  %s10163_s17 = scalar_lea.vmem (!%p11607_p12), [#allocation3], %s7246_s30 }
  0xe6   : > { %9746 = dma.done.wait (%p11608_p11), [#allocation5], 512   ;;  %p11609_p4 = pmov %p11608_p11 }
  0xe8   : > { %9748 = vsyncadd (%p11609_p4), [#allocation5], 4294966784  ;;  %p11610_p7 = pmov %p11609_p4 }
  0xe9   : > { %p11611_p8 = pmov %p11609_p4 }
  0xea   : > { %9750 = dma.done.wait (%p11610_p7), [#allocation8], 1536  }
  0xeb   : > { %9752 = vsyncadd (%p11611_p8), [#allocation8], 4294965760  ;;  %p11612_p9 = pmov %p11609_p4 }
  0xec   : > { %p11613_p13 = pmov %p11609_p4 }
  0xed   : > { %9754 = dma.done.wait (%p11612_p9), [#allocation11], 1040  }
  0xee   : > { %9756 = vsyncadd (%p11613_p13), [#allocation11], 4294966256  ;;  %p11614_p1 = pmov %p11609_p4 }
  0xf0   : > { %9758 = dma.done.wait (%p11614_p1), [#allocation14], 1024   ;;  %p11615_p3 = pmov %p11614_p1 }
  0xf1   : > { %v9793_v32 = vmov 0.0   ;;  %vm866_vm0 = vcmask 261120   ;;  %v855_v33 = vld [vmem:[#allocation4] sm:$0xff]  ;;  %v856_v34 = vld [vmem:[#allocation4 + $0x8] sm:$0xff]  ;;  %v857_v35 = vld [vmem:[#allocation4 + $0x10] sm:$0xff]  ;;  %s9794_s29 = smov 64  }
  0xf2   : > { %9760 = vsyncadd (%p11615_p3), [#allocation14], 4294966272  ;;  %7822 = vmatprep.mubr.f32.mxu1 %v9793_v32  ;;  %v8353_v36 = vpack.c.bf16 %v856_v34, %v855_v33  ;;  %v858_v37 = vld [vmem:[#allocation4 + $0x18] sm:$0xff]  ;;  %v839_v38 = vld [vmem:[%s10161_s13] sm:$0xff]  ;;  %s9795_s3 = smov 32   ;;  %s11616_s0 = sld [smem:[#allocation34_spill]] }
  0xf3   : > { %v8357_v39 = vpack.c.bf16 %v858_v37, %v857_v35  ;;  %7779 = vmatprep.mubr.msk.f32.mxu0 %vm866_vm0, %v839_v38  ;;  %v1202_v40 = vld [vmem:[#allocation7] sm:$0xff]  ;;  %v1203_v41 = vld [vmem:[#allocation7 + $0x8] sm:$0xff]  ;;  %v1204_v43 = vld [vmem:[#allocation7 + $0x10] sm:$0xff]  ;;  %s11617_s19 = sld [smem:[#allocation33_spill]]  ;;  %s11618_s21 = sld [smem:[#allocation35_spill]] }
  0xf4   : > { %8354 = vmatprep.subr.bf16.mxu0 %v8353_v36  ;;  %v10184_v42 = vpack.c.bf16 %v1203_v41, %v1202_v40  ;;  %v1205_v44 = vld [vmem:[#allocation7 + $0x18] sm:$0xff]  ;;  %v840_v45 = vld [vmem:[%s10161_s13 + $0x8] sm:$0xff]  ;;  %v841_v46 = vld [vmem:[%s10161_s13 + $0x10] sm:$0xff]  ;;  %s11620_s28 = sld [smem:[#allocation36_spill]]  ;;  %s11621_s30 = sld [smem:[#allocation28_spill]] }
  0xf5   : > { %8356 = vmatpush3.bf16.msra.mxu0 %v8353_v36  ;;  %v10189_v47 = vpack.c.bf16 %v1205_v44, %v1204_v43  ;;  %v842_v48 = vld [vmem:[%s10161_s13 + $0x18] sm:$0xff]  ;;  %v843_v49 = vld [vmem:[%s10161_s13 + $0x20] sm:$0xff]  ;;  %v844_v50 = vld [vmem:[%s10161_s13 + $0x28] sm:$0xff]  ;;  %v9796_v43 = vmov 0   ;;  %s11411_s18 = sshll.u32 %s9908_s25, 8  ;;  %s11622_s16 = sld [smem:[#allocation37_spill]] }
  0xf6   : > { %8358 = vmatprep.subr.bf16.mxu0 %v8357_v39  ;;  %v845_v51 = vld [vmem:[%s10161_s13 + $0x30] sm:$0xff]  ;;  %v846_v52 = vld [vmem:[%s10161_s13 + $0x38] sm:$0xff]  ;;  %v847_v53 = vld [vmem:[%s10161_s13 + $0x40] sm:$0xff]  ;;  %8946 = vset.pattern.permute.xlu1 %v9796_v43  ;;  %s6968_s6 = scalar_lea.sflag [#allocation6], %s10158_s20 }
  0xf7   : > { %v848_v54 = vld [vmem:[%s10161_s13 + $0x48] sm:$0xff]  ;;  %v849_v55 = vld [vmem:[%s10161_s13 + $0x50] sm:$0xff]  ;;  %v850_v56 = vld [vmem:[%s10161_s13 + $0x58] sm:$0xff]  ;;  %8945 = vset.pattern.permute.xlu0 %v9796_v43 }
  0xf8   : > { %v851_v57 = vld [vmem:[%s10161_s13 + $0x60] sm:$0xff]  ;;  %v852_v58 = vld [vmem:[%s10161_s13 + $0x68] sm:$0xff]  ;;  %v853_v59 = vld [vmem:[%s10161_s13 + $0x70] sm:$0xff] }
  0xf9   : > { %8360 = vmatpush3.bf16.msra.mxu0 %v8357_v39  ;;  %v854_v60 = vld [vmem:[%s10161_s13 + $0x78] sm:$0xff]  ;;  %v10231_v61 = vld [vmem:[%s11547_s4] ss:$0 sm:$0xff]  ;;  %v1211_v23 = vld [vmem:[#allocation9 + $0x28] sm:$0xff]  ;;  %s11619_s26 = smov %s11618_s21 }
  0xfa   : > { %8362 = vmatprep.subr.bf16.mxu0 %v10184_v42  ;;  %v1210_v22 = vld [vmem:[#allocation9 + $0x20] sm:$0xff]  ;;  %v1212_v24 = vld [vmem:[#allocation9 + $0x30] sm:$0xff]  ;;  %v1213_v26 = vld [vmem:[#allocation9 + $0x38] sm:$0xff]  ;;  %p11623_p10 = scmp.ne.s32.totalorder %s11621_s30, 0 }
  0xfb   : > { %v10245_v25 = vpack.c.bf16 %v1211_v23, %v1210_v22  ;;  %v10247_v27 = vpack.c.bf16 %v1213_v26, %v1212_v24  ;;  %v1206_v28 = vld [vmem:[#allocation9] sm:$0xff]  ;;  %v1207_v29 = vld [vmem:[#allocation9 + $0x8] sm:$0xff]  ;;  %v1208_v33 = vld [vmem:[#allocation9 + $0x10] sm:$0xff]  ;;  %s11419_s15 = scalar_lea.hbm %s11622_s16, %s11411_s18 }
  0xfc   : > { %7780 = vmatmul.mubr.msk.f32.vlgmr.msra.gmra.mrb[0].mxu0 %vm866_vm0, %v840_v45  ;;  %v10252_v30 = vpack.c.bf16 %v1207_v29, %v1206_v28  ;;  %v1209_v34 = vld [vmem:[#allocation9 + $0x18] sm:$0xff]  ;;  %v1221_v37 = vld [vmem:[%s11551_s8] sm:$0xff]  ;;  %v1222_v38 = vld [vmem:[%s11551_s8 + $0x8] sm:$0xff] }
  0xfd   : > { %8364 = vmatpush3.bf16.msra.mxu0 %v10184_v42  ;;  %7782 = vmatprep.mubr.msk.f32.mxu0 %vm866_vm0, %v841_v46  ;;  %v10257_v35 = vpack.c.bf16 %v1209_v34, %v1208_v33  ;;  %v10270_v39 = vpack.c.bf16 %v1222_v38, %v1221_v37  ;;  %v1060_v45 = vld [vmem:[%s10163_s17] sm:$0xff]  ;;  %v1230_v34 = vld [vmem:[#allocation12 + $0x28] sm:$0xff] }
  0xfe   : > { %8366 = vmatprep.subr.bf16.mxu0 %v10189_v47  ;;  %8370 = vmatprep.subr.bf16.mxu1 %v10245_v25  ;;  %v1229_v33 = vld [vmem:[#allocation12 + $0x20] sm:$0xff] }
  0xff   : > { %8372 = vmatpush3.bf16.msra.mxu1 %v10245_v25  ;;  %v10328_v38 = vpack.c.bf16 %v1230_v34, %v1229_v33 }
 0x100   : > { %7783 = vmatmul.mubr.msk.f32.gmra.mrb[2].mxu0 %vm866_vm0, %v842_v48  ;;  %8374 = vmatprep.subr.bf16.mxu1 %v10247_v27  ;;  %v1061_v48 = vld [vmem:[%s10163_s17 + $0x8] sm:$0xff] }
 0x101   : > { %7785 = vmatprep.mubr.msk.f32.mxu0 %vm866_vm0, %v843_v49  ;;  %8368 = vmatpush3.bf16.msra.mxu0 %v10189_v47 }
 0x102   : > { %8410 = vmatprep.subr.bf16.mxu0 %v10184_v42 }
 0x103   : > { %8376 = vmatpush3.bf16.msra.mxu1 %v10247_v27 }
 0x104   : > { %7786 = vmatmul.mubr.msk.f32.gmra.mrb[4].mxu0 %vm866_vm0, %v844_v50  ;;  %8378 = vmatprep.subr.bf16.mxu1 %v10252_v30  ;;  %v1223_v50 = vld [vmem:[%s11551_s8 + $0x10] sm:$0xff] }
 0x105   : > { %7788 = vmatprep.mubr.msk.f32.mxu0 %vm866_vm0, %v845_v51  ;;  %v1224_v51 = vld [vmem:[%s11551_s8 + $0x18] sm:$0xff] }
 0x106   : > { %7823 = vmatmul.mubr.f32.vlgmr.msra.gmra.mrb[0].mxu1 %v9793_v32 }
 0x107   : > { %8380 = vmatpush3.bf16.msra.mxu1 %v10252_v30 }
 0x108   : > { %7789 = vmatmul.mubr.msk.f32.gmra.mrb[6].mxu0 %vm866_vm0, %v846_v52  ;;  %8382 = vmatprep.subr.bf16.mxu1 %v10257_v35  ;;  %v10286_v52 = vpack.c.bf16 %v1224_v51, %v1223_v50  ;;  %v10352_v51 = vld [vmem:[%s11617_s19] ss:$0 sm:$0xff] }
 0x109   : > { %7791 = vmatprep.mubr.msk.f32.mxu0 %vm866_vm0, %v847_v53 }
 0x10b   : > { %8384 = vmatpush3.bf16.msra.mxu1 %v10257_v35 }
 0x10c   : > { %7792 = vmatmul.mubr.msk.f32.gmra.mrb[8].mxu0 %vm866_vm0, %v848_v54  ;;  %8386 = vmatprep.subr.bf16.mxu1 %v10270_v39  ;;  %v10299_v54 = vld [vmem:[#allocation10] ss:$0 sm:$0xff] }
 0x10d   : > { %7794 = vmatprep.mubr.msk.f32.mxu0 %vm866_vm0, %v849_v55 }
 0x110   : > { %7795 = vmatmul.mubr.msk.f32.gmra.mrb[10].mxu0 %vm866_vm0, %v850_v56 }
 0x111   : > { %7797 = vmatprep.mubr.msk.f32.mxu0 %vm866_vm0, %v851_v57 }
 0x114   : > { %7798 = vmatmul.mubr.msk.f32.gmra.mrb[12].mxu0 %vm866_vm0, %v852_v58 }
 0x115   : > { %7800 = vmatprep.mubr.msk.f32.mxu0 %vm866_vm0, %v853_v59 }
 0x118   : > { %7801 = vmatmul.mubr.msk.f32.gmra.mrb[14].mxu0 %vm866_vm0, %v854_v60 }
 0x119   : > { %7811 = vmatprep.mubr.f32.mxu0 %v9793_v32 }
 0x11c   : > { %7812 = vmatmul.mubr.f32.vlgmr.msra.gmra.mrb[0].mxu0 %v9793_v32 }
 0x11d   : > { %8412 = vmatpush3.bf16.msra.mxu0 %v10184_v42 }
 0x11e   : > { %8414 = vmatprep.subr.bf16.mxu0 %v10189_v47 }
 0x121   : > { %8416 = vmatpush3.bf16.msra.mxu0 %v10189_v47 }
 0x122   : > { %8434 = vmatprep.subr.bf16.mxu0 %v10270_v39 }
 0x1ef   : > { %v7813_v62 = vpop.f32.mrb[0].mxu0 }
 0x1f0   : > { %v1309_v63 = vpop.f32.mrb[1].mxu0  ;;  %v8761_v1 = vadd.f32 %v7813_v62, %v10231_v61 }
 0x1f1   : > { %v8762_v0 = vadd.f32 %v10231_v61, %v1309_v63 }
 0x1f2   : > { %v7279_v5 = vmul.f32 -1.442695, %v8761_v1 }
 0x1f3   : > { %8947 = vtanh.f32 %v8762_v0  ;;  %v7278_v4 = vmul.f32 -1.442695, %v8762_v0  ;;  %v10314_v0 = vld [vmem:[%s11616_s0] ss:$0 sm:$0xff] }
 0x1f4   : > { %8949 = vtanh.f32 %v8761_v1 }
 0x1f5   : > { %8951 = vpow2.f32 %v7278_v4 }
 0x1f6   : > { %8953 = vpow2.f32 %v7279_v5 }
 0x1fd   : > { %v8948_v2 = vpop.eup %8947 }
 0x1fe   : > { %1338 = vrot.lane.b32.xlu0 %v8948_v2, %s9794_s29  ;;  %v8950_v3 = vpop.eup %8949 }
 0x1ff   : > { %v8952_v6 = vpop.eup %8951 }
 0x200   : > { %v1326_v7 = vadd.f32 1.0, %v8952_v6  ;;  %v8954_v8 = vpop.eup %8953 }
 0x201   : > { %v1327_v9 = vadd.f32 1.0, %v8954_v8 }
 0x202   : > { %1340 = vrot.lane.b32.xlu0 %v8950_v3, %s9794_s29  ;;  %8955 = vrcp.f32 %v1326_v7 }
 0x203   : > { %8957 = vrcp.f32 %v1327_v9 }
 0x20c   : > { %v8956_v10 = vpop.eup %8955 }
 0x20d   : > { %v8958_v13 = vpop.eup %8957  ;;  %v1334_v16 = vmul.f32 0.0, %v8956_v10 }
 0x20e   : > { %v1335_v19 = vmul.f32 0.0, %v8958_v13 }
 0x270   : > { %v1339_v11 = vpop.permute.xlu0 %1338 }
 0x271   : > { %v1344_v12 = vmul.f32 %v8956_v10, %v1339_v11 }
 0x273   : > { %1348 = vrot.lane.b32.xlu1 %v1344_v12, %s9795_s3 }
 0x274   : > { %v1341_v14 = vpop.permute.xlu0 %1340 }
 0x275   : > { %v1345_v15 = vmul.f32 %v8958_v13, %v1341_v14 }
 0x277   : > { %1350 = vrot.lane.b32.xlu1 %v1345_v15, %s9795_s3 }
 0x2e5   : > { %v1349_v17 = vpop.permute.xlu1 %1348 }
 0x2e6   : > { %v10239_v18 = vadd.f32 %v1349_v17, %v1334_v16 }
 0x2e8   : > { %8959 = vtanh.f32 %v10239_v18 }
 0x2e9   : > { %v1351_v20 = vpop.permute.xlu1 %1350 }
 0x2ea   : > { %v10242_v21 = vadd.f32 %v1351_v20, %v1335_v19 }
 0x2ec   : > { %8961 = vtanh.f32 %v10242_v21 }
 0x2f2   : > { %v8960_v31 = vpop.eup %8959 }
 0x2f3   : > { %1360 = vrot.lane.b32.xlu0 %v8960_v31, %s9794_s29 }
 0x2f6   : > { %v8962_v36 = vpop.eup %8961 }
 0x2f7   : > { %1362 = vrot.lane.b32.xlu1 %v8962_v36, %s9794_s29  ;;  %v1231_v36 = vld [vmem:[#allocation12 + $0x30] sm:$0xff] }
 0x365   : > { %v1361_v40 = vpop.permute.xlu0 %1360 }
 0x366   : > { %v1366_v41 = vmul.f32 %v8956_v10, %v1361_v40  ;;  %v1232_v40 = vld [vmem:[#allocation12 + $0x38] sm:$0xff] }
 0x367   : > { %v10331_v43 = vpack.c.bf16 %v1232_v40, %v1231_v36 }
 0x368   : > { %1445 = vrot.lane.b32.xlu0 %v1366_v41, %s9795_s3 }
 0x369   : > { %v1363_v44 = vpop.permute.xlu1 %1362 }
 0x36a   : > { %v1367_v46 = vmul.f32 %v8958_v13, %v1363_v44  ;;  %v1225_v44 = vld [vmem:[#allocation12] sm:$0xff] }
 0x36c   : > { %1447 = vrot.lane.b32.xlu1 %v1367_v46, %s9795_s3  ;;  %1079 = vperm.xlu0 %8945, %v1060_v45   ;;  %v1226_v45 = vld [vmem:[#allocation12 + $0x8] sm:$0xff] }
 0x36d   : > { %v10338_v46 = vpack.c.bf16 %v1226_v45, %v1225_v44 }
 0x370   : > { %1084 = vperm.xlu1 %8946, %v1061_v48   ;;  %v1227_v48 = vld [vmem:[#allocation12 + $0x10] sm:$0xff] }
 0x3da   : > { %v1446_v49 = vpop.permute.xlu0 %1445 }
 0x3db   : > { %7833 = vmatprep.mubr.msk.f32.mxu1 %vm866_vm0, %v1446_v49  ;;  %7877 = vmatprep.mubr.msk.f32.mxu0 %vm866_vm0, %v1446_v49  ;;  %v1228_v49 = vld [vmem:[#allocation12 + $0x18] sm:$0xff] }
 0x3dc   : > { %v10342_v50 = vpack.c.bf16 %v1228_v49, %v1227_v48 }
 0x3de   : > { %v1448_v53 = vpop.permute.xlu1 %1447 }
 0x3df   : > { %7834 = vmatmul.mubr.msk.f32.vlgmr.msra.gmra.mrb[0].mxu1 %vm866_vm0, %v1448_v53  ;;  %7878 = vmatmul.mubr.msk.f32.vlgmr.msra.gmra.mrb[2].mxu0 %vm866_vm0, %v1448_v53 }
 0x3e0   : > { %8388 = vmatpush3.bf16.msra.mxu1 %v10270_v39  ;;  %7844 = vmatprep.mubr.f32.mxu1 %v9793_v32 }
 0x3e1   : > { %8390 = vmatprep.subr.bf16.mxu1 %v10286_v52  ;;  %8436 = vmatpush3.bf16.msra.mxu0 %v10270_v39 }
 0x3e2   : > { %8438 = vmatprep.subr.bf16.mxu0 %v10286_v52 }
 0x3e4   : > { %8392 = vmatpush3.bf16.msra.mxu1 %v10286_v52 }
 0x3e5   : > { %8440 = vmatpush3.bf16.msra.mxu0 %v10286_v52  ;;  %8394 = vmatprep.subr.bf16.mxu1 %v10328_v38 }
 0x3e6   : > { %8442 = vmatprep.subr.bf16.mxu0 %v10328_v38 }
 0x3e7   : > { %7845 = vmatmul.mubr.f32.vlgmr.msra.gmra.mrb[2].mxu1 %v9793_v32 }
 0x3e8   : > { %7855 = vmatprep.mubr.f32.mxu1 %v9793_v32  ;;  %8396 = vmatpush3.bf16.msra.mxu1 %v10328_v38 }
 0x3e9   : > { %8398 = vmatprep.subr.bf16.mxu1 %v10331_v43 }
 0x3eb   : > { %v1080_v56 = vpop.permute.xlu0 %1079 }
 0x3ec   : > { %v1163_v63 = vmul.f32 %v10299_v54, %v1080_v56  ;;  %8400 = vmatpush3.bf16.msra.mxu1 %v10331_v43 }
 0x3ed   : > { %8402 = vmatprep.subr.bf16.mxu1 %v10338_v46 }
 0x3ee   : > { %v1186_v2 = vadd.f32 %v10314_v0, %v1163_v63 }
 0x3ef   : > { %v1085_v55 = vpop.permute.xlu1 %1084  ;;  %7856 = vmatmul.mubr.f32.vlgmr.msra.gmra.mrb[4].mxu1 %v9793_v32 }
 0x3f0   : > { %v1164_v62 = vmul.f32 %v10299_v54, %v1085_v55  ;;  %8404 = vmatpush3.bf16.msra.mxu1 %v10338_v46 }
 0x3f1   : > { %8406 = vmatprep.subr.bf16.mxu1 %v10342_v50 }
 0x3f2   : > { %v1187_v1 = vadd.f32 %v10314_v0, %v1164_v62 }
 0x3f4   : > { %8408 = vmatpush3.bf16.msra.mxu1 %v10342_v50 }
 0x3f5   : > { %8418 = vmatprep.subr.bf16.mxu1 %v10245_v25 }
 0x4b2   : > { %v10301_v57 = vpop.f32.mrb[0].mxu1  ;;  %v10303_v58 = vpop.f32.mrb[2].mxu0 }
 0x4b3   : > { %v10305_v59 = vpop.f32.mrb[1].mxu1  ;;  %v10307_v60 = vpop.f32.mrb[3].mxu0  ;;  %v1529_v53 = vadd.f32 %v10301_v57, %v10352_v51 }
 0x4b4   : > { %v1528_v32 = vadd.f32 %v10352_v51, %v10305_v59 }
 0x4ba   : > { %v7846_v3 = vpop.f32.mrb[2].mxu1 }
 0x4bb   : > { %v1654_v4 = vadd.f32 %v7846_v3, %v1187_v1  ;;  %v1644_v5 = vpop.f32.mrb[3].mxu1  ;;  %v1063_v1 = vld [vmem:[%s10163_s17 + $0x18] sm:$0xff] }
 0x4bc   : > { %v1653_v6 = vadd.f32 %v1644_v5, %v1186_v2  ;;  %v1062_v2 = vld [vmem:[%s10163_s17 + $0x10] sm:$0xff]  ;;  %v7283_v5 = vmul.f32 -1.442695, %v1529_v53 }
 0x4bd   : > { %8963 = vtanh.f32 %v1654_v4  ;;  %v7285_v9 = vmul.f32 -1.442695, %v1654_v4 }
 0x4be   : > { %8965 = vtanh.f32 %v1653_v6  ;;  %v7284_v10 = vmul.f32 -1.442695, %v1653_v6  ;;  %v7282_v6 = vmul.f32 -1.442695, %v1528_v32 }
 0x4bf   : > { %8967 = vpow2.f32 %v7285_v9 }
 0x4c0   : > { %8969 = vpow2.f32 %v7284_v10 }
 0x4c7   : > { %v8964_v7 = vpop.eup %8963 }
 0x4c8   : > { %v8966_v8 = vpop.eup %8965  ;;  %1675 = vrot.lane.b32.xlu0 %v8964_v7, %s9794_s29 }
 0x4c9   : > { %1673 = vrot.lane.b32.xlu1 %v8966_v8, %s9794_s29  ;;  %v8968_v11 = vpop.eup %8967  ;;  %v10379_v8 = vld [vmem:[%s11618_s21] ss:$0 sm:$0xff] }
 0x4ca   : > { %v8970_v12 = vpop.eup %8969  ;;  %v1662_v13 = vadd.f32 1.0, %v8968_v11 }
 0x4cb   : > { %v1661_v14 = vadd.f32 1.0, %v8970_v12 }
 0x4cc   : > { %8971 = vrcp.f32 %v1662_v13 }
 0x4cd   : > { %8973 = vrcp.f32 %v1661_v14 }
 0x4d6   : > { %v8972_v15 = vpop.eup %8971 }
 0x4d7   : > { %v8974_v17 = vpop.eup %8973  ;;  %v1670_v23 = vmul.f32 0.0, %v8972_v15 }
 0x4d8   : > { %v1669_v26 = vmul.f32 0.0, %v8974_v17 }
 0x53a   : > { %v1676_v16 = vpop.permute.xlu0 %1675 }
 0x53b   : > { %v1680_v19 = vmul.f32 %v8972_v15, %v1676_v16  ;;  %v1674_v20 = vpop.permute.xlu1 %1673 }
 0x53c   : > { %v1679_v22 = vmul.f32 %v8974_v17, %v1674_v20 }
 0x53d   : > { %1685 = vrot.lane.b32.xlu0 %v1680_v19, %s9795_s3 }
 0x53e   : > { %1683 = vrot.lane.b32.xlu1 %v1679_v22, %s9795_s3 }
 0x5af   : > { %v1686_v24 = vpop.permute.xlu0 %1685 }
 0x5b0   : > { %v10322_v28 = vadd.f32 %v1686_v24, %v1670_v23  ;;  %v1684_v29 = vpop.permute.xlu1 %1683  ;;  %v8764_v24 = vadd.f32 %v10231_v61, %v10307_v60 }
 0x5b1   : > { %v10324_v31 = vadd.f32 %v1684_v29, %v1669_v26 }
 0x5b2   : > { %8975 = vtanh.f32 %v10322_v28 }
 0x5b3   : > { %8977 = vtanh.f32 %v10324_v31 }
 0x5b4   : > { %8979 = vtanh.f32 %v1529_v53 }
 0x5b5   : > { %8981 = vtanh.f32 %v1528_v32 }
 0x5b6   : > { %8983 = vpow2.f32 %v7283_v5 }
 0x5b7   : > { %8985 = vpow2.f32 %v7282_v6 }
 0x5bc   : > { %v8976_v37 = vpop.eup %8975 }
 0x5bd   : > { %v8978_v41 = vpop.eup %8977  ;;  %1697 = vrot.lane.b32.xlu0 %v8976_v37, %s9794_s29 }
 0x5be   : > { %1695 = vrot.lane.b32.xlu1 %v8978_v41, %s9794_s29  ;;  %v8980_v3 = vpop.eup %8979 }
 0x5bf   : > { %v8982_v4 = vpop.eup %8981 }
 0x5c0   : > { %v8984_v20 = vpop.eup %8983 }
 0x5c1   : > { %v1537_v26 = vadd.f32 1.0, %v8984_v20  ;;  %v8986_v33 = vpop.eup %8985 }
 0x5c2   : > { %v1536_v36 = vadd.f32 1.0, %v8986_v33 }
 0x62f   : > { %v1698_v55 = vpop.permute.xlu0 %1697 }
 0x630   : > { %v1702_v56 = vmul.f32 %v8972_v15, %v1698_v55  ;;  %v1696_v62 = vpop.permute.xlu1 %1695  ;;  %v8763_v15 = vadd.f32 %v10303_v58, %v10231_v61 }
 0x631   : > { %v1701_v63 = vmul.f32 %v8974_v17, %v1696_v62 }
 0x632   : > { %1782 = vrot.lane.b32.xlu0 %v1702_v56, %s9795_s3  ;;  %v7293_v62 = vmul.f32 -1.442695, %v8763_v15 }
 0x633   : > { %1780 = vrot.lane.b32.xlu1 %v1701_v63, %s9795_s3 }
 0x636   : > { %1094 = vperm.xlu0 %8945, %v1063_v1  }
 0x637   : > { %1089 = vperm.xlu1 %8946, %v1062_v2   ;;  %v7292_v2 = vmul.f32 -1.442695, %v8764_v24 }
 0x63a   : > { %1550 = vrot.lane.b32.xlu0 %v8980_v3, %s9794_s29 }
 0x63b   : > { %1548 = vrot.lane.b32.xlu1 %v8982_v4, %s9794_s29 }
 0x6a4   : > { %v1783_v59 = vpop.permute.xlu0 %1782 }
 0x6a5   : > { %v1781_v57 = vpop.permute.xlu1 %1780 }
 0x6a6   : > { %7866 = vmatprep.mubr.msk.f32.mxu1 %vm866_vm0, %v1781_v57  ;;  %7910 = vmatprep.mubr.msk.f32.mxu0 %vm866_vm0, %v1781_v57 }
 0x6a7   : > { %7867 = vmatmul.mubr.msk.f32.vlgmr.msra.gmra.mrb[4].mxu1 %vm866_vm0, %v1783_v59  ;;  %7911 = vmatmul.mubr.msk.f32.vlgmr.msra.gmra.mrb[16].mxu0 %vm866_vm0, %v1783_v59 }
 0x6a8   : > { %8420 = vmatpush3.bf16.msra.mxu1 %v10245_v25  ;;  %8444 = vmatpush3.bf16.msra.mxu0 %v10328_v38 }
 0x6a9   : > { %8422 = vmatprep.subr.bf16.mxu1 %v10247_v27  ;;  %8446 = vmatprep.subr.bf16.mxu0 %v10331_v43 }
 0x6ac   : > { %8424 = vmatpush3.bf16.msra.mxu1 %v10247_v27  ;;  %8448 = vmatpush3.bf16.msra.mxu0 %v10331_v43 }
 0x6ad   : > { %8426 = vmatprep.subr.bf16.mxu1 %v10252_v30  ;;  %8450 = vmatprep.subr.bf16.mxu0 %v10338_v46 }
 0x6b5   : > { %v1095_v7 = vpop.permute.xlu0 %1094 }
 0x6b6   : > { %v1166_v11 = vmul.f32 %v10299_v54, %v1095_v7  ;;  %v1090_v16 = vpop.permute.xlu1 %1089 }
 0x6b7   : > { %v1165_v22 = vmul.f32 %v10299_v54, %v1090_v16 }
 0x6b8   : > { %v1189_v19 = vadd.f32 %v10314_v0, %v1166_v11 }
 0x6b9   : > { %v1188_v29 = vadd.f32 %v10314_v0, %v1165_v22  ;;  %v1551_v41 = vpop.permute.xlu0 %1550 }
 0x6ba   : > { %v1549_v53 = vpop.permute.xlu1 %1548 }
 0x77a   : > { %v7868_v9 = vpop.f32.mrb[4].mxu1  ;;  %v7912_v10 = vpop.f32.mrb[16].mxu0 }
 0x77b   : > { %v1864_v12 = vadd.f32 %v7868_v9, %v10379_v8  ;;  %v1854_v13 = vpop.f32.mrb[5].mxu1  ;;  %v2324_v14 = vpop.f32.mrb[17].mxu0  ;;  %v2334_v23 = vadd.f32 %v7912_v10, %v1189_v19 }
 0x77c   : > { %v1863_v17 = vadd.f32 %v10379_v8, %v1854_v13  ;;  %v2333_v58 = vadd.f32 %v2324_v14, %v1188_v29 }
 0x77d   : > { %8987 = vtanh.f32 %v1864_v12  ;;  %v7289_v56 = vmul.f32 -1.442695, %v1864_v12  ;;  %v7303_v1 = vmul.f32 -1.442695, %v2334_v23 }
 0x77e   : > { %8989 = vtanh.f32 %v8763_v15  ;;  %v7288_v63 = vmul.f32 -1.442695, %v1863_v17  ;;  %v7302_v3 = vmul.f32 -1.442695, %v2333_v58 }
 0x77f   : > { %8991 = vtanh.f32 %v1863_v17 }
 0x780   : > { %8993 = vtanh.f32 %v2334_v23 }
 0x781   : > { %8995 = vtanh.f32 %v8764_v24 }
 0x782   : > { %8997 = vrcp.f32 %v1537_v26 }
 0x783   : > { %8999 = vtanh.f32 %v2333_v58 }
 0x784   : > { %9001 = vrcp.f32 %v1536_v36 }
 0x785   : > { %9003 = vpow2.f32 %v7289_v56 }
 0x786   : > { %9005 = vpow2.f32 %v7293_v62 }
 0x787   : > { %v8988_v34 = vpop.eup %8987  ;;  %9007 = vpow2.f32 %v7288_v63 }
 0x788   : > { %1885 = vrot.lane.b32.xlu0 %v8988_v34, %s9794_s29  ;;  %v8990_v37 = vpop.eup %8989  ;;  %9009 = vpow2.f32 %v7303_v1 }
 0x789   : > { %v8992_v40 = vpop.eup %8991  ;;  %9011 = vpow2.f32 %v7292_v2 }
 0x78a   : > { %1883 = vrot.lane.b32.xlu1 %v8992_v40, %s9794_s29  ;;  %v8994_v60 = vpop.eup %8993  ;;  %9013 = vpow2.f32 %v7302_v3 }
 0x78b   : > { %v8996_v44 = vpop.eup %8995 }
 0x78c   : > { %2010 = vrot.lane.b32.xlu0 %v8990_v37, %s9794_s29  ;;  %v10395_v45 = vpop.eup %8997 }
 0x78d   : > { %v1555_v48 = vmul.f32 %v10395_v45, %v1551_v41  ;;  %v9000_v49 = vpop.eup %8999  ;;  %v1545_v40 = vmul.f32 0.0, %v10395_v45 }
 0x78e   : > { %2008 = vrot.lane.b32.xlu1 %v8996_v44, %s9794_s29  ;;  %v10401_v32 = vpop.eup %9001 }
 0x78f   : > { %v1554_v55 = vmul.f32 %v10401_v32, %v1549_v53  ;;  %v9004_v4 = vpop.eup %9003  ;;  %v1544_v53 = vmul.f32 0.0, %v10401_v32 }
 0x790   : > { %2355 = vrot.lane.b32.xlu0 %v8994_v60, %s9794_s29  ;;  %v1872_v57 = vadd.f32 1.0, %v9004_v4  ;;  %v9006_v59 = vpop.eup %9005 }
 0x791   : > { %v9008_v5 = vpop.eup %9007  ;;  %v1997_v6 = vadd.f32 1.0, %v9006_v59 }
 0x792   : > { %2353 = vrot.lane.b32.xlu1 %v9000_v49, %s9794_s29  ;;  %9015 = vrcp.f32 %v1872_v57  ;;  %v9010_v7 = vpop.eup %9009  ;;  %v1871_v9 = vadd.f32 1.0, %v9008_v5 }
 0x793   : > { %v9012_v10 = vpop.eup %9011  ;;  %9017 = vrcp.f32 %v1997_v6  ;;  %v2342_v11 = vadd.f32 1.0, %v9010_v7 }
 0x794   : > { %1560 = vrot.lane.b32.xlu0 %v1555_v48, %s9795_s3  ;;  %v1996_v12 = vadd.f32 1.0, %v9012_v10  ;;  %9019 = vrcp.f32 %v1871_v9  ;;  %v9014_v13 = vpop.eup %9013 }
 0x795   : > { %9021 = vrcp.f32 %v2342_v11  ;;  %v2341_v14 = vadd.f32 1.0, %v9014_v13 }
 0x796   : > { %1558 = vrot.lane.b32.xlu1 %v1554_v55, %s9795_s3  ;;  %9023 = vrcp.f32 %v1996_v12 }
 0x797   : > { %9025 = vrcp.f32 %v2341_v14 }
 0x79c   : > { %v10405_v15 = vpop.eup %9015 }
 0x79d   : > { %v10409_v19 = vpop.eup %9017  ;;  %v1880_v1 = vmul.f32 0.0, %v10405_v15 }
 0x79e   : > { %v10411_v22 = vpop.eup %9019  ;;  %v2005_v4 = vmul.f32 %v10409_v19, %v10242_v21 }
 0x79f   : > { %v10416_v29 = vpop.eup %9021  ;;  %v1879_v57 = vmul.f32 0.0, %v10411_v22 }
 0x7a0   : > { %v10419_v58 = vpop.eup %9023  ;;  %v2350_v9 = vmul.f32 %v10416_v29, %v10322_v28 }
 0x7a1   : > { %v10426_v41 = vpop.eup %9025  ;;  %v2004_v10 = vmul.f32 %v10419_v58, %v10239_v18 }
 0x7a2   : > { %v2349_v14 = vmul.f32 %v10426_v41, %v10324_v31 }
 0x7fa   : > { %v1886_v16 = vpop.permute.xlu0 %1885 }
 0x7fb   : > { %v1890_v17 = vmul.f32 %v10405_v15, %v1886_v16 }
 0x7fc   : > { %v1884_v23 = vpop.permute.xlu1 %1883 }
 0x7fd   : > { %1895 = vrot.lane.b32.xlu0 %v1890_v17, %s9795_s3  ;;  %v1889_v26 = vmul.f32 %v10411_v22, %v1884_v23 }
 0x7fe   : > { %v2011_v20 = vpop.permute.xlu0 %2010 }
 0x7ff   : > { %v2015_v24 = vmul.f32 %v10409_v19, %v2011_v20  ;;  %1893 = vrot.lane.b32.xlu1 %v1889_v26, %s9795_s3 }
 0x800   : > { %v2009_v34 = vpop.permute.xlu1 %2008 }
 0x801   : > { %2020 = vrot.lane.b32.xlu0 %v2015_v24, %s9795_s3  ;;  %v2014_v37 = vmul.f32 %v10419_v58, %v2009_v34 }
 0x802   : > { %v2356_v33 = vpop.permute.xlu0 %2355 }
 0x803   : > { %v2360_v36 = vmul.f32 %v10416_v29, %v2356_v33  ;;  %2018 = vrot.lane.b32.xlu1 %v2014_v37, %s9795_s3 }
 0x804   : > { %v2354_v44 = vpop.permute.xlu1 %2353 }
 0x805   : > { %2365 = vrot.lane.b32.xlu0 %v2360_v36, %s9795_s3  ;;  %v2359_v49 = vmul.f32 %v10426_v41, %v2354_v44 }
 0x806   : > { %v1561_v60 = vpop.permute.xlu0 %1560 }
 0x807   : > { %v10428_v48 = vadd.f32 %v1561_v60, %v1545_v40  ;;  %2363 = vrot.lane.b32.xlu1 %v2359_v49, %s9795_s3 }
 0x808   : > { %v1559_v55 = vpop.permute.xlu1 %1558 }
 0x809   : > { %9027 = vtanh.f32 %v10428_v48  ;;  %v10434_v56 = vadd.f32 %v1559_v55, %v1544_v53 }
 0x80b   : > { %9029 = vtanh.f32 %v10434_v56 }
 0x813   : > { %v9028_v62 = vpop.eup %9027 }
 0x814   : > { %1572 = vrot.lane.b32.xlu0 %v9028_v62, %s9794_s29 }
 0x815   : > { %v9030_v63 = vpop.eup %9029 }
 0x816   : > { %1570 = vrot.lane.b32.xlu1 %v9030_v63, %s9794_s29 }
 0x86f   : > { %v1896_v2 = vpop.permute.xlu0 %1895 }
 0x870   : > { %v10440_v3 = vadd.f32 %v1896_v2, %v1880_v1 }
 0x871   : > { %v1894_v5 = vpop.permute.xlu1 %1893 }
 0x872   : > { %9031 = vtanh.f32 %v10440_v3  ;;  %v10448_v7 = vadd.f32 %v1894_v5, %v1879_v57 }
 0x873   : > { %v2021_v59 = vpop.permute.xlu0 %2020 }
 0x874   : > { %v10446_v6 = vadd.f32 %v2021_v59, %v2005_v4 }
 0x875   : > { %v2019_v21 = vpop.permute.xlu1 %2018 }
 0x876   : > { %9033 = vtanh.f32 %v10446_v6  ;;  %v10458_v13 = vadd.f32 %v2019_v21, %v2004_v10 }
 0x877   : > { %9035 = vtanh.f32 %v10448_v7  ;;  %v2366_v11 = vpop.permute.xlu0 %2365 }
 0x878   : > { %v10456_v12 = vadd.f32 %v2366_v11, %v2350_v9 }
 0x879   : > { %v2364_v28 = vpop.permute.xlu1 %2363 }
 0x87a   : > { %9037 = vtanh.f32 %v10456_v12  ;;  %v10464_v17 = vadd.f32 %v2364_v28, %v2349_v14 }
 0x87b   : > { %9039 = vtanh.f32 %v10458_v13 }
 0x87c   : > { %v9032_v16 = vpop.eup %9031  ;;  %9041 = vtanh.f32 %v10464_v17 }
 0x87d   : > { %1907 = vrot.lane.b32.xlu0 %v9032_v16, %s9794_s29 }
 0x880   : > { %v9034_v18 = vpop.eup %9033 }
 0x881   : > { %v9036_v20 = vpop.eup %9035  ;;  %2032 = vrot.lane.b32.xlu0 %v9034_v18, %s9794_s29 }
 0x882   : > { %1905 = vrot.lane.b32.xlu1 %v9036_v20, %s9794_s29 }
 0x884   : > { %v9038_v23 = vpop.eup %9037 }
 0x885   : > { %v9040_v24 = vpop.eup %9039  ;;  %2377 = vrot.lane.b32.xlu0 %v9038_v23, %s9794_s29 }
 0x886   : > { %2030 = vrot.lane.b32.xlu1 %v9040_v24, %s9794_s29  ;;  %v1573_v31 = vpop.permute.xlu0 %1572  ;;  %v9042_v33 = vpop.eup %9041 }
 0x887   : > { %v1577_v26 = vmul.f32 %v10395_v45, %v1573_v31 }
 0x888   : > { %v1571_v34 = vpop.permute.xlu1 %1570 }
 0x889   : > { %2042 = vrot.lane.b32.xlu0 %v1577_v26, %s9795_s3  ;;  %v1576_v36 = vmul.f32 %v10401_v32, %v1571_v34 }
 0x88a   : > { %2375 = vrot.lane.b32.xlu1 %v9042_v33, %s9794_s29 }
 0x88e   : > { %2040 = vrot.lane.b32.xlu1 %v1576_v36, %s9795_s3 }
 0x8ef   : > { %v1908_v37 = vpop.permute.xlu0 %1907 }
 0x8f0   : > { %v1912_v40 = vmul.f32 %v10405_v15, %v1908_v37 }
 0x8f2   : > { %2387 = vrot.lane.b32.xlu0 %v1912_v40, %s9795_s3 }
 0x8f3   : > { %v2033_v60 = vpop.permute.xlu0 %2032 }
 0x8f4   : > { %v1906_v44 = vpop.permute.xlu1 %1905  ;;  %v2037_v49 = vmul.f32 %v10409_v19, %v2033_v60 }
 0x8f5   : > { %v1911_v45 = vmul.f32 %v10411_v22, %v1906_v44 }
 0x8f6   : > { %2127 = vrot.lane.b32.xlu0 %v2037_v49, %s9795_s3 }
 0x8f7   : > { %2385 = vrot.lane.b32.xlu1 %v1911_v45, %s9795_s3  ;;  %v2378_v53 = vpop.permute.xlu0 %2377 }
 0x8f8   : > { %v2031_v55 = vpop.permute.xlu1 %2030  ;;  %v2382_v32 = vmul.f32 %v10416_v29, %v2378_v53 }
 0x8f9   : > { %v2036_v62 = vmul.f32 %v10419_v58, %v2031_v55 }
 0x8fa   : > { %2472 = vrot.lane.b32.xlu0 %v2382_v32, %s9795_s3 }
 0x8fb   : > { %2125 = vrot.lane.b32.xlu1 %v2036_v62, %s9795_s3  ;;  %v2043_v22 = vpop.permute.xlu0 %2042 }
 0x8fc   : > { %v2376_v15 = vpop.permute.xlu1 %2375 }
 0x8fd   : > { %v2381_v63 = vmul.f32 %v10426_v41, %v2376_v15 }
 0x8ff   : > { %2470 = vrot.lane.b32.xlu1 %v2381_v63, %s9795_s3 }
 0x900   : > { %v2041_v19 = vpop.permute.xlu1 %2040 }
 0x901   : > { %7888 = vmatprep.mubr.msk.f32.mxu1 %vm866_vm0, %v2041_v19 }
 0x902   : > { %7889 = vmatmul.mubr.msk.f32.vlgmr.msra.gmra.mrb[6].mxu1 %vm866_vm0, %v2043_v22 }
 0x903   : > { %8428 = vmatpush3.bf16.msra.mxu1 %v10252_v30 }
 0x904   : > { %8430 = vmatprep.subr.bf16.mxu1 %v10257_v35 }
 0x907   : > { %8432 = vmatpush3.bf16.msra.mxu1 %v10257_v35 }
 0x908   : > { %8466 = vmatprep.subr.bf16.mxu1 %v10245_v25 }
 0x964   : > { %v2388_v29 = vpop.permute.xlu0 %2387 }
 0x968   : > { %v2128_v41 = vpop.permute.xlu0 %2127 }
 0x969   : > { %v2386_v58 = vpop.permute.xlu1 %2385 }
 0x96a   : > { %7921 = vmatprep.mubr.msk.f32.mxu0 %vm866_vm0, %v2386_v58 }
 0x96b   : > { %7922 = vmatmul.mubr.msk.f32.vlgmr.msra.gmra.mrb[18].mxu0 %vm866_vm0, %v2388_v29 }
 0x96c   : > { %8452 = vmatpush3.bf16.msra.mxu0 %v10338_v46  ;;  %v10507_v4 = vpop.permute.xlu0 %2472 }
 0x96d   : > { %v2126_v1 = vpop.permute.xlu1 %2125  ;;  %8454 = vmatprep.subr.bf16.mxu0 %v10342_v50 }
 0x96e   : > { %7899 = vmatprep.mubr.msk.f32.mxu1 %vm866_vm0, %v2126_v1 }
 0x96f   : > { %7900 = vmatmul.mubr.msk.f32.vlgmr.msra.gmra.mrb[6].mxu1 %vm866_vm0, %v2128_v41 }
 0x970   : > { %8456 = vmatpush3.bf16.msra.mxu0 %v10342_v50  ;;  %8468 = vmatpush3.bf16.msra.mxu1 %v10245_v25 }
 0x971   : > { %v10503_v2 = vpop.permute.xlu1 %2470  ;;  %8458 = vmatprep.subr.bf16.mxu0 %v10184_v42  ;;  %8470 = vmatprep.subr.bf16.mxu1 %v10247_v27 }
 0x972   : > { %7932 = vmatprep.mubr.msk.f32.mxu0 %vm866_vm0, %v10503_v2 }
 0x973   : > { %7933 = vmatmul.mubr.msk.f32.vlgmr.msra.gmra.mrb[18].mxu0 %vm866_vm0, %v10507_v4 }
 0x974   : > { %8460 = vmatpush3.bf16.msra.mxu0 %v10184_v42  ;;  %7943 = vmatprep.mubr.msk.f32.mxu0 %vm866_vm0, %v2126_v1 }
 0x975   : > { %8462 = vmatprep.subr.bf16.mxu0 %v10189_v47  ;;  %8472 = vmatpush3.bf16.msra.mxu1 %v10247_v27 }
 0x976   : > { %8474 = vmatprep.subr.bf16.mxu1 %v10252_v30 }
 0x978   : > { %8464 = vmatpush3.bf16.msra.mxu0 %v10189_v47 }
 0x979   : > { %8490 = vmatprep.subr.bf16.mxu0 %v10328_v38 }
 0x97b   : > { %7944 = vmatmul.mubr.msk.f32.vlgmr.msra.gmra.mrb[4].mxu0 %vm866_vm0, %v2128_v41 }
 0x97c   : > { %8492 = vmatpush3.bf16.msra.mxu0 %v10328_v38 }
 0x97d   : > { %8494 = vmatprep.subr.bf16.mxu0 %v10331_v43 }
 0x980   : > { %8496 = vmatpush3.bf16.msra.mxu0 %v10331_v43 }
 0x981   : > { %8498 = vmatprep.subr.bf16.mxu0 %v10338_v46 }
 0xa42   : > { %v7901_v57 = vpop.f32.mrb[6].mxu1 }
 0xa43   : > { %v2209_v59 = vadd.f32 %v7901_v57, %v10352_v51  ;;  %v2199_v5 = vpop.f32.mrb[7].mxu1 }
 0xa44   : > { %v2208_v9 = vadd.f32 %v10352_v51, %v2199_v5 }
 0xa45   : > { %9043 = vtanh.f32 %v2209_v59  ;;  %v7299_v31 = vmul.f32 -1.442695, %v2209_v59 }
 0xa46   : > { %9045 = vtanh.f32 %v2208_v9  ;;  %v10527_v10 = vpop.f32.mrb[18].mxu0  ;;  %v7298_v26 = vmul.f32 -1.442695, %v2208_v9 }
 0xa47   : > { %v10529_v11 = vpop.f32.mrb[19].mxu0 }
 0xa4e   : > { %v7945_v21 = vpop.f32.mrb[4].mxu0 }
 0xa4f   : > { %v9044_v14 = vpop.eup %9043  ;;  %v8765_v16 = vadd.f32 %v7945_v21, %v10231_v61  ;;  %v2669_v28 = vpop.f32.mrb[5].mxu0 }
 0xa50   : > { %v9046_v18 = vpop.eup %9045  ;;  %v8766_v20 = vadd.f32 %v10231_v61, %v2669_v28  ;;  %2230 = vrot.lane.b32.xlu0 %v9044_v14, %s9794_s29 }
 0xa51   : > { %9047 = vtanh.f32 %v8765_v16  ;;  %2228 = vrot.lane.b32.xlu1 %v9046_v18, %s9794_s29  ;;  %v7313_v33 = vmul.f32 -1.442695, %v8765_v16 }
 0xa52   : > { %9049 = vtanh.f32 %v8766_v20  ;;  %v7312_v34 = vmul.f32 -1.442695, %v8766_v20 }
 0xa53   : > { %9051 = vpow2.f32 %v7299_v31 }
 0xa54   : > { %9053 = vpow2.f32 %v7298_v26 }
 0xa55   : > { %9055 = vpow2.f32 %v7313_v33 }
 0xa56   : > { %9057 = vpow2.f32 %v7312_v34 }
 0xa5b   : > { %v9048_v23 = vpop.eup %9047 }
 0xa5c   : > { %v9050_v24 = vpop.eup %9049  ;;  %2700 = vrot.lane.b32.xlu0 %v9048_v23, %s9794_s29 }
 0xa5d   : > { %2698 = vrot.lane.b32.xlu1 %v9050_v24, %s9794_s29  ;;  %v9052_v36 = vpop.eup %9051 }
 0xa5e   : > { %v9054_v61 = vpop.eup %9053  ;;  %v2217_v37 = vadd.f32 1.0, %v9052_v36  ;;  %v2554_v36 = vadd.f32 %v10527_v10, %v10379_v8 }
 0xa5f   : > { %v2216_v40 = vadd.f32 1.0, %v9054_v61  ;;  %v9056_v60 = vpop.eup %9055  ;;  %v2553_v61 = vadd.f32 %v10379_v8, %v10529_v11 }
 0xa60   : > { %9059 = vrcp.f32 %v2217_v37  ;;  %v9058_v44 = vpop.eup %9057  ;;  %v2687_v49 = vadd.f32 1.0, %v9056_v60 }
 0xa61   : > { %9061 = vrcp.f32 %v2216_v40  ;;  %v2686_v45 = vadd.f32 1.0, %v9058_v44 }
 0xa62   : > { %9063 = vrcp.f32 %v2687_v49  ;;  %v1065_v49 = vld [vmem:[%s10163_s17 + $0x28] sm:$0xff] }
 0xa63   : > { %9065 = vrcp.f32 %v2686_v45  ;;  %v1064_v45 = vld [vmem:[%s10163_s17 + $0x20] sm:$0xff] }
 0xa6a   : > { %v9060_v53 = vpop.eup %9059 }
 0xa6b   : > { %v9062_v32 = vpop.eup %9061  ;;  %v2225_v57 = vmul.f32 %v9060_v53, %v10428_v48 }
 0xa6c   : > { %v9064_v19 = vpop.eup %9063  ;;  %v2224_v5 = vmul.f32 %v9062_v32, %v10434_v56 }
 0xa6d   : > { %v9066_v29 = vpop.eup %9065  ;;  %v2695_v16 = vmul.f32 %v9064_v19, %v10446_v6 }
 0xa6e   : > { %v2694_v18 = vmul.f32 %v9066_v29, %v10458_v13 }
 0xac2   : > { %v2231_v55 = vpop.permute.xlu0 %2230 }
 0xac3   : > { %v2235_v62 = vmul.f32 %v9060_v53, %v2231_v55  ;;  %v2229_v15 = vpop.permute.xlu1 %2228 }
 0xac4   : > { %v2234_v63 = vmul.f32 %v9062_v32, %v2229_v15  ;;  %v7308_v15 = vmul.f32 -1.442695, %v2553_v61 }
 0xac5   : > { %2240 = vrot.lane.b32.xlu0 %v2235_v62, %s9795_s3  ;;  %v7309_v62 = vmul.f32 -1.442695, %v2554_v36 }
 0xac6   : > { %2238 = vrot.lane.b32.xlu1 %v2234_v63, %s9795_s3 }
 0xace   : > { %v2701_v22 = vpop.permute.xlu0 %2700 }
 0xacf   : > { %v2705_v58 = vmul.f32 %v9064_v19, %v2701_v22  ;;  %v2699_v41 = vpop.permute.xlu1 %2698 }
 0xad0   : > { %v2704_v1 = vmul.f32 %v9066_v29, %v2699_v41 }
 0xad1   : > { %2710 = vrot.lane.b32.xlu0 %v2705_v58, %s9795_s3 }
 0xad2   : > { %2708 = vrot.lane.b32.xlu1 %v2704_v1, %s9795_s3 }
 0xb37   : > { %v2241_v59 = vpop.permute.xlu0 %2240 }
 0xb38   : > { %v10543_v9 = vadd.f32 %v2241_v59, %v2225_v57  ;;  %v2239_v21 = vpop.permute.xlu1 %2238 }
 0xb39   : > { %v10545_v14 = vadd.f32 %v2239_v21, %v2224_v5 }
 0xb3a   : > { %9067 = vtanh.f32 %v10543_v9 }
 0xb3b   : > { %9069 = vtanh.f32 %v10545_v14 }
 0xb43   : > { %v2711_v28 = vpop.permute.xlu0 %2710 }
 0xb44   : > { %v9068_v20 = vpop.eup %9067  ;;  %v10551_v23 = vadd.f32 %v2711_v28, %v2695_v16  ;;  %v2709_v48 = vpop.permute.xlu1 %2708 }
 0xb45   : > { %v9070_v24 = vpop.eup %9069  ;;  %v10553_v56 = vadd.f32 %v2709_v48, %v2694_v18  ;;  %2252 = vrot.lane.b32.xlu0 %v9068_v20, %s9794_s29 }
 0xb46   : > { %9071 = vtanh.f32 %v10551_v23  ;;  %2250 = vrot.lane.b32.xlu1 %v9070_v24, %s9794_s29 }
 0xb47   : > { %9073 = vtanh.f32 %v10553_v56 }
 0xb48   : > { %9075 = vtanh.f32 %v2554_v36 }
 0xb49   : > { %9077 = vtanh.f32 %v2553_v61 }
 0xb4a   : > { %9079 = vpow2.f32 %v7309_v62 }
 0xb4b   : > { %9081 = vpow2.f32 %v7308_v15 }
 0xb50   : > { %v9072_v31 = vpop.eup %9071 }
 0xb51   : > { %v9074_v6 = vpop.eup %9073  ;;  %2722 = vrot.lane.b32.xlu0 %v9072_v31, %s9794_s29 }
 0xb52   : > { %2720 = vrot.lane.b32.xlu1 %v9074_v6, %s9794_s29 }
 0xbb7   : > { %v2253_v13 = vpop.permute.xlu0 %2252 }
 0xbb8   : > { %v2257_v26 = vmul.f32 %v9060_v53, %v2253_v13  ;;  %v2251_v33 = vpop.permute.xlu1 %2250  ;;  %v9076_v53 = vpop.eup %9075 }
 0xbb9   : > { %v2256_v34 = vmul.f32 %v9062_v32, %v2251_v33  ;;  %v9078_v55 = vpop.eup %9077 }
 0xbba   : > { %2732 = vrot.lane.b32.xlu0 %v2257_v26, %s9795_s3  ;;  %v9080_v58 = vpop.eup %9079 }
 0xbbb   : > { %2730 = vrot.lane.b32.xlu1 %v2256_v34, %s9795_s3  ;;  %v9082_v41 = vpop.eup %9081  ;;  %v2562_v5 = vadd.f32 1.0, %v9080_v58 }
 0xbbc   : > { %v2561_v28 = vadd.f32 1.0, %v9082_v41 }
 0xbc3   : > { %v2723_v37 = vpop.permute.xlu0 %2722 }
 0xbc4   : > { %v2727_v40 = vmul.f32 %v9064_v19, %v2723_v37  ;;  %v2721_v60 = vpop.permute.xlu1 %2720 }
 0xbc5   : > { %v2726_v44 = vmul.f32 %v9066_v29, %v2721_v60 }
 0xbc6   : > { %2817 = vrot.lane.b32.xlu0 %v2727_v40, %s9795_s3 }
 0xbc7   : > { %2815 = vrot.lane.b32.xlu1 %v2726_v44, %s9795_s3 }
 0xbca   : > { %1104 = vperm.xlu0 %8945, %v1065_v49  }
 0xbcb   : > { %1099 = vperm.xlu1 %8946, %v1064_v45  }
 0xbce   : > { %2575 = vrot.lane.b32.xlu0 %v9076_v53, %s9794_s29 }
 0xbcf   : > { %2573 = vrot.lane.b32.xlu1 %v9078_v55, %s9794_s29 }
 0xc2c   : > { %v2733_v10 = vpop.permute.xlu0 %2732 }
 0xc2d   : > { %v2731_v8 = vpop.permute.xlu1 %2730 }
 0xc2e   : > { %7954 = vmatprep.mubr.msk.f32.mxu1 %vm866_vm0, %v2731_v8 }
 0xc2f   : > { %7955 = vmatmul.mubr.msk.f32.vlgmr.msra.gmra.mrb[8].mxu1 %vm866_vm0, %v2733_v10 }
 0xc30   : > { %8476 = vmatpush3.bf16.msra.mxu1 %v10252_v30 }
 0xc31   : > { %8478 = vmatprep.subr.bf16.mxu1 %v10257_v35 }
 0xc34   : > { %8480 = vmatpush3.bf16.msra.mxu1 %v10257_v35 }
 0xc35   : > { %8482 = vmatprep.subr.bf16.mxu1 %v10270_v39 }
 0xc38   : > { %v10581_v32 = vpop.permute.xlu0 %2817 }
 0xc39   : > { %v10579_v11 = vpop.permute.xlu1 %2815 }
 0xc3a   : > { %7965 = vmatprep.mubr.msk.f32.mxu1 %vm866_vm0, %v10579_v11 }
 0xc3b   : > { %7966 = vmatmul.mubr.msk.f32.vlgmr.msra.gmra.mrb[8].mxu1 %vm866_vm0, %v10581_v32 }
 0xc3c   : > { %8484 = vmatpush3.bf16.msra.mxu1 %v10270_v39  ;;  %7976 = vmatprep.mubr.msk.f32.mxu1 %vm866_vm0, %v10503_v2 }
 0xc3d   : > { %8486 = vmatprep.subr.bf16.mxu1 %v10286_v52 }
 0xc40   : > { %8488 = vmatpush3.bf16.msra.mxu1 %v10286_v52 }
 0xc41   : > { %8514 = vmatprep.subr.bf16.mxu1 %v10245_v25 }
 0xc43   : > { %7977 = vmatmul.mubr.msk.f32.vlgmr.msra.gmra.mrb[10].mxu1 %vm866_vm0, %v10507_v4 }
 0xc44   : > { %8516 = vmatpush3.bf16.msra.mxu1 %v10245_v25 }
 0xc45   : > { %8518 = vmatprep.subr.bf16.mxu1 %v10247_v27 }
 0xc48   : > { %8520 = vmatpush3.bf16.msra.mxu1 %v10247_v27 }
 0xc49   : > { %8522 = vmatprep.subr.bf16.mxu1 %v10252_v30  ;;  %v1105_v2 = vpop.permute.xlu0 %1104 }
 0xc4a   : > { %v1100_v19 = vpop.permute.xlu1 %1099  ;;  %v1168_v4 = vmul.f32 %v10299_v54, %v1105_v2 }
 0xc4b   : > { %v1167_v29 = vmul.f32 %v10299_v54, %v1100_v19 }
 0xc4c   : > { %v1191_v1 = vadd.f32 %v10314_v0, %v1168_v4 }
 0xc4d   : > { %v1190_v59 = vadd.f32 %v10314_v0, %v1167_v29  ;;  %v2576_v48 = vpop.permute.xlu0 %2575 }
 0xc4e   : > { %v2574_v54 = vpop.permute.xlu1 %2573 }
 0xd0e   : > { %v10599_v63 = vpop.f32.mrb[8].mxu1 }
 0xd0f   : > { %v10601_v22 = vpop.f32.mrb[9].mxu1 }
 0xd16   : > { %v7978_v57 = vpop.f32.mrb[10].mxu1 }
 0xd17   : > { %v3024_v21 = vadd.f32 %v7978_v57, %v1191_v1  ;;  %v3014_v16 = vpop.f32.mrb[11].mxu1 }
 0xd18   : > { %v3023_v18 = vadd.f32 %v3014_v16, %v1190_v59 }
 0xd19   : > { %9083 = vtanh.f32 %v3024_v21  ;;  %v7323_v26 = vmul.f32 -1.442695, %v3024_v21 }
 0xd1a   : > { %9085 = vtanh.f32 %v3023_v18  ;;  %v7322_v33 = vmul.f32 -1.442695, %v3023_v18 }
 0xd1b   : > { %9087 = vrcp.f32 %v2562_v5 }
 0xd1c   : > { %9089 = vrcp.f32 %v2561_v28  ;;  %v2898_v28 = vadd.f32 %v10352_v51, %v10601_v22 }
 0xd1d   : > { %9091 = vpow2.f32 %v7323_v26 }
 0xd1e   : > { %9093 = vpow2.f32 %v7322_v33 }
 0xd23   : > { %v9084_v20 = vpop.eup %9083 }
 0xd24   : > { %v9086_v24 = vpop.eup %9085  ;;  %3045 = vrot.lane.b32.xlu0 %v9084_v20, %s9794_s29 }
 0xd25   : > { %v9088_v31 = vpop.eup %9087  ;;  %3043 = vrot.lane.b32.xlu1 %v9086_v24, %s9794_s29 }
 0xd26   : > { %v9090_v6 = vpop.eup %9089  ;;  %v2580_v0 = vmul.f32 %v9088_v31, %v2576_v48  ;;  %v2570_v55 = vmul.f32 %v9088_v31, %v10440_v3 }
 0xd27   : > { %v2579_v13 = vmul.f32 %v9090_v6, %v2574_v54  ;;  %v9092_v34 = vpop.eup %9091  ;;  %v2569_v10 = vmul.f32 %v9090_v6, %v10448_v7 }
 0xd28   : > { %2585 = vrot.lane.b32.xlu0 %v2580_v0, %s9795_s3  ;;  %v9094_v36 = vpop.eup %9093  ;;  %v3032_v61 = vadd.f32 1.0, %v9092_v34 }
 0xd29   : > { %2583 = vrot.lane.b32.xlu1 %v2579_v13, %s9795_s3  ;;  %v3031_v37 = vadd.f32 1.0, %v9094_v36  ;;  %v7318_v13 = vmul.f32 -1.442695, %v2898_v28 }
 0xd2a   : > { %9095 = vrcp.f32 %v3032_v61  ;;  %v10676_v61 = vld [vmem:[%s11547_s4] ss:$0 sm:$0xff] }
 0xd2b   : > { %9097 = vrcp.f32 %v3031_v37 }
 0xd34   : > { %v9096_v40 = vpop.eup %9095 }
 0xd35   : > { %v9098_v44 = vpop.eup %9097  ;;  %v3040_v3 = vmul.f32 %v9096_v40, %v10456_v12 }
 0xd36   : > { %v3039_v7 = vmul.f32 %v9098_v44, %v10464_v17  ;;  %v2899_v17 = vadd.f32 %v10599_v63, %v10352_v51 }
 0xd38   : > { %v7319_v22 = vmul.f32 -1.442695, %v2899_v17 }
 0xd96   : > { %v3046_v60 = vpop.permute.xlu0 %3045 }
 0xd97   : > { %v3050_v49 = vmul.f32 %v9096_v40, %v3046_v60  ;;  %v3044_v45 = vpop.permute.xlu1 %3043 }
 0xd98   : > { %v3049_v53 = vmul.f32 %v9098_v44, %v3044_v45 }
 0xd99   : > { %3055 = vrot.lane.b32.xlu0 %v3050_v49, %s9795_s3 }
 0xd9a   : > { %3053 = vrot.lane.b32.xlu1 %v3049_v53, %s9795_s3  ;;  %v2586_v8 = vpop.permute.xlu0 %2585 }
 0xd9b   : > { %v10615_v62 = vadd.f32 %v2586_v8, %v2570_v55  ;;  %v2584_v15 = vpop.permute.xlu1 %2583 }
 0xd9c   : > { %v10617_v2 = vadd.f32 %v2584_v15, %v2569_v10 }
 0xd9d   : > { %9099 = vtanh.f32 %v10615_v62 }
 0xd9e   : > { %9101 = vtanh.f32 %v10617_v2 }
 0xda7   : > { %v9100_v19 = vpop.eup %9099 }
 0xda8   : > { %v9102_v4 = vpop.eup %9101  ;;  %2597 = vrot.lane.b32.xlu0 %v9100_v19, %s9794_s29 }
 0xda9   : > { %2595 = vrot.lane.b32.xlu1 %v9102_v4, %s9794_s29 }
 0xe0b   : > { %v3056_v29 = vpop.permute.xlu0 %3055 }
 0xe0c   : > { %v10625_v58 = vadd.f32 %v3056_v29, %v3040_v3  ;;  %v3054_v41 = vpop.permute.xlu1 %3053 }
 0xe0d   : > { %v10627_v1 = vadd.f32 %v3054_v41, %v3039_v7 }
 0xe0e   : > { %9103 = vtanh.f32 %v10625_v58 }
 0xe0f   : > { %9105 = vtanh.f32 %v10627_v1 }
 0xe10   : > { %9107 = vtanh.f32 %v2899_v17 }
 0xe11   : > { %9109 = vtanh.f32 %v2898_v28 }
 0xe12   : > { %9111 = vpow2.f32 %v7319_v22 }
 0xe13   : > { %9113 = vpow2.f32 %v7318_v13 }
 0xe18   : > { %v9104_v57 = vpop.eup %9103 }
 0xe19   : > { %v9106_v59 = vpop.eup %9105  ;;  %3067 = vrot.lane.b32.xlu0 %v9104_v57, %s9794_s29 }
 0xe1a   : > { %3065 = vrot.lane.b32.xlu1 %v9106_v59, %s9794_s29  ;;  %v2598_v5 = vpop.permute.xlu0 %2597 }
 0xe1b   : > { %v2602_v12 = vmul.f32 %v9088_v31, %v2598_v5  ;;  %v2596_v21 = vpop.permute.xlu1 %2595  ;;  %v9108_v31 = vpop.eup %9107 }
 0xe1c   : > { %v2601_v16 = vmul.f32 %v9090_v6, %v2596_v21  ;;  %v9110_v0 = vpop.eup %9109 }
 0xe1d   : > { %3077 = vrot.lane.b32.xlu0 %v2602_v12, %s9795_s3  ;;  %v9112_v33 = vpop.eup %9111 }
 0xe1e   : > { %3075 = vrot.lane.b32.xlu1 %v2601_v16, %s9795_s3  ;;  %v9114_v34 = vpop.eup %9113 }
 0xe1f   : > { %v2906_v60 = vadd.f32 1.0, %v9114_v34 }
 0xe8b   : > { %v3068_v18 = vpop.permute.xlu0 %3067 }
 0xe8c   : > { %v3072_v20 = vmul.f32 %v9096_v40, %v3068_v18  ;;  %v3066_v48 = vpop.permute.xlu1 %3065 }
 0xe8d   : > { %v3071_v24 = vmul.f32 %v9098_v44, %v3066_v48 }
 0xe8e   : > { %3162 = vrot.lane.b32.xlu0 %v3072_v20, %s9795_s3 }
 0xe8f   : > { %3160 = vrot.lane.b32.xlu1 %v3071_v24, %s9795_s3  ;;  %v3078_v6 = vpop.permute.xlu0 %3077 }
 0xe90   : > { %v3076_v54 = vpop.permute.xlu1 %3075 }
 0xe91   : > { %7987 = vmatprep.mubr.msk.f32.mxu0 %vm866_vm0, %v3076_v54 }
 0xe92   : > { %2920 = vrot.lane.b32.xlu0 %v9108_v31, %s9794_s29  ;;  %7988 = vmatmul.mubr.msk.f32.vlgmr.msra.gmra.mrb[20].mxu0 %vm866_vm0, %v3078_v6 }
 0xe93   : > { %2918 = vrot.lane.b32.xlu1 %v9110_v0, %s9794_s29  ;;  %8500 = vmatpush3.bf16.msra.mxu0 %v10338_v46 }
 0xe94   : > { %8502 = vmatprep.subr.bf16.mxu0 %v10342_v50 }
 0xe97   : > { %8504 = vmatpush3.bf16.msra.mxu0 %v10342_v50 }
 0xe98   : > { %8506 = vmatprep.subr.bf16.mxu0 %v10184_v42 }
 0xf00   : > { %v10651_v63 = vpop.permute.xlu0 %3162 }
 0xf01   : > { %v10649_v51 = vpop.permute.xlu1 %3160 }
 0xf02   : > { %7998 = vmatprep.mubr.msk.f32.mxu0 %vm866_vm0, %v10649_v51 }
 0xf03   : > { %7999 = vmatmul.mubr.msk.f32.vlgmr.msra.gmra.mrb[20].mxu0 %vm866_vm0, %v10651_v63 }
 0xf04   : > { %8508 = vmatpush3.bf16.msra.mxu0 %v10184_v42  ;;  %8009 = vmatprep.mubr.msk.f32.mxu0 %vm866_vm0, %v10579_v11  ;;  %v2921_v45 = vpop.permute.xlu0 %2920 }
 0xf05   : > { %8510 = vmatprep.subr.bf16.mxu0 %v10189_v47  ;;  %v2919_v55 = vpop.permute.xlu1 %2918 }
 0xf08   : > { %8512 = vmatpush3.bf16.msra.mxu0 %v10189_v47 }
 0xf09   : > { %8538 = vmatprep.subr.bf16.mxu0 %v10328_v38 }
 0xf0b   : > { %8010 = vmatmul.mubr.msk.f32.vlgmr.msra.gmra.mrb[6].mxu0 %vm866_vm0, %v10581_v32  ;;  %v2907_v32 = vadd.f32 1.0, %v9112_v33 }
 0xf0c   : > { %8540 = vmatpush3.bf16.msra.mxu0 %v10328_v38 }
 0xf0d   : > { %8542 = vmatprep.subr.bf16.mxu0 %v10331_v43 }
 0xf10   : > { %8544 = vmatpush3.bf16.msra.mxu0 %v10331_v43 }
 0xf11   : > { %8546 = vmatprep.subr.bf16.mxu0 %v10338_v46 }
 0xfd6   : > { %v10669_v11 = vpop.f32.mrb[20].mxu0 }
 0xfd7   : > { %v10671_v26 = vpop.f32.mrb[21].mxu0 }
 0xfde   : > { %v8011_v36 = vpop.f32.mrb[6].mxu0 }
 0xfdf   : > { %v8767_v37 = vadd.f32 %v10676_v61, %v8011_v36  ;;  %v3359_v40 = vpop.f32.mrb[7].mxu0 }
 0xfe0   : > { %v8768_v44 = vadd.f32 %v10676_v61, %v3359_v40  ;;  %v10711_v40 = vld [vmem:[%s11619_s26] ss:$0 sm:$0xff] }
 0xfe1   : > { %9115 = vtanh.f32 %v8767_v37  ;;  %v7333_v4 = vmul.f32 -1.442695, %v8767_v37 }
 0xfe2   : > { %9117 = vtanh.f32 %v8768_v44  ;;  %v7332_v3 = vmul.f32 -1.442695, %v8768_v44  ;;  %v3243_v44 = vadd.f32 %v10711_v40, %v10671_v26 }
 0xfe3   : > { %9119 = vrcp.f32 %v2907_v32 }
 0xfe4   : > { %9121 = vrcp.f32 %v2906_v60  ;;  %v3244_v60 = vadd.f32 %v10711_v40, %v10669_v11 }
 0xfe5   : > { %9123 = vpow2.f32 %v7333_v4 }
 0xfe6   : > { %9125 = vpow2.f32 %v7332_v3 }
 0xfeb   : > { %v9116_v49 = vpop.eup %9115 }
 0xfec   : > { %v9118_v53 = vpop.eup %9117  ;;  %3390 = vrot.lane.b32.xlu0 %v9116_v49, %s9794_s29 }
 0xfed   : > { %v9120_v8 = vpop.eup %9119  ;;  %3388 = vrot.lane.b32.xlu1 %v9118_v53, %s9794_s29 }
 0xfee   : > { %v9122_v10 = vpop.eup %9121  ;;  %v2925_v15 = vmul.f32 %v9120_v8, %v2921_v45  ;;  %v2915_v28 = vmul.f32 %v9120_v8, %v10543_v9 }
 0xfef   : > { %v2924_v19 = vmul.f32 %v9122_v10, %v2919_v55  ;;  %v9124_v29 = vpop.eup %9123  ;;  %v2914_v20 = vmul.f32 %v9122_v10, %v10545_v14 }
 0xff0   : > { %2930 = vrot.lane.b32.xlu0 %v2925_v15, %s9795_s3  ;;  %v9126_v7 = vpop.eup %9125  ;;  %v3377_v41 = vadd.f32 1.0, %v9124_v29  ;;  %v1066_v15 = vld [vmem:[%s10163_s17 + $0x30] sm:$0xff]  ;;  %v7329_v29 = vmul.f32 -1.442695, %v3244_v60 }
 0xff1   : > { %2928 = vrot.lane.b32.xlu1 %v2924_v19, %s9795_s3  ;;  %v3376_v57 = vadd.f32 1.0, %v9126_v7  ;;  %v7328_v7 = vmul.f32 -1.442695, %v3243_v44 }
 0xff2   : > { %9127 = vrcp.f32 %v3377_v41 }
 0xff3   : > { %9129 = vrcp.f32 %v3376_v57 }
 0xffc   : > { %v9128_v59 = vpop.eup %9127 }
 0xffd   : > { %v9130_v12 = vpop.eup %9129  ;;  %v3385_v9 = vmul.f32 %v9128_v59, %v10551_v23 }
 0xffe   : > { %v3384_v14 = vmul.f32 %v9130_v12, %v10553_v56 }
0x105e   : > { %v3391_v5 = vpop.permute.xlu0 %3390 }
0x105f   : > { %v3395_v21 = vmul.f32 %v9128_v59, %v3391_v5  ;;  %v3389_v16 = vpop.permute.xlu1 %3388  ;;  %v10753_v5 = vld [vmem:[#allocation10] ss:$0 sm:$0xff] }
0x1060   : > { %v3394_v17 = vmul.f32 %v9130_v12, %v3389_v16 }
0x1061   : > { %3400 = vrot.lane.b32.xlu0 %v3395_v21, %s9795_s3 }
0x1062   : > { %3398 = vrot.lane.b32.xlu1 %v3394_v17, %s9795_s3  ;;  %v2931_v18 = vpop.permute.xlu0 %2930  ;;  %v10760_v17 = vld [vmem:[%s11616_s0] ss:$0 sm:$0xff] }
0x1063   : > { %v10688_v48 = vadd.f32 %v2931_v18, %v2915_v28  ;;  %v2929_v24 = vpop.permute.xlu1 %2928 }
0x1064   : > { %v10690_v54 = vadd.f32 %v2929_v24, %v2914_v20 }
0x1065   : > { %9131 = vtanh.f32 %v10688_v48 }
0x1066   : > { %9133 = vtanh.f32 %v10690_v54 }
0x106f   : > { %v9132_v31 = vpop.eup %9131 }
0x1070   : > { %v9134_v6 = vpop.eup %9133  ;;  %2942 = vrot.lane.b32.xlu0 %v9132_v31, %s9794_s29 }
0x1071   : > { %2940 = vrot.lane.b32.xlu1 %v9134_v6, %s9794_s29 }
0x10d3   : > { %v3401_v0 = vpop.permute.xlu0 %3400 }
0x10d4   : > { %v10698_v22 = vadd.f32 %v3401_v0, %v3385_v9  ;;  %v3399_v13 = vpop.permute.xlu1 %3398 }
0x10d5   : > { %v10700_v33 = vadd.f32 %v3399_v13, %v3384_v14 }
0x10d6   : > { %9135 = vtanh.f32 %v10698_v22 }
0x10d7   : > { %9137 = vtanh.f32 %v10700_v33 }
0x10d8   : > { %9139 = vtanh.f32 %v3244_v60 }
0x10d9   : > { %9141 = vtanh.f32 %v3243_v44 }
0x10da   : > { %9143 = vpow2.f32 %v7329_v29 }
0x10db   : > { %9145 = vpow2.f32 %v7328_v7 }
0x10e0   : > { %v9136_v34 = vpop.eup %9135 }
0x10e1   : > { %v9138_v36 = vpop.eup %9137  ;;  %3412 = vrot.lane.b32.xlu0 %v9136_v34, %s9794_s29 }
0x10e2   : > { %3410 = vrot.lane.b32.xlu1 %v9138_v36, %s9794_s29  ;;  %v2943_v32 = vpop.permute.xlu0 %2942  ;;  %v9140_v11 = vpop.eup %9139 }
0x10e3   : > { %v2947_v23 = vmul.f32 %v9120_v8, %v2943_v32  ;;  %v2941_v37 = vpop.permute.xlu1 %2940  ;;  %v1067_v8 = vld [vmem:[%s10163_s17 + $0x38] sm:$0xff]  ;;  %v9142_v26 = vpop.eup %9141 }
0x10e4   : > { %v2946_v56 = vmul.f32 %v9122_v10, %v2941_v37  ;;  %v9144_v21 = vpop.eup %9143 }
0x10e5   : > { %3422 = vrot.lane.b32.xlu0 %v2947_v23, %s9795_s3  ;;  %v9146_v16 = vpop.eup %9145  ;;  %v3252_v24 = vadd.f32 1.0, %v9144_v21 }
0x10e6   : > { %3420 = vrot.lane.b32.xlu1 %v2946_v56, %s9795_s3  ;;  %v3251_v9 = vadd.f32 1.0, %v9146_v16 }
0x1153   : > { %v3413_v49 = vpop.permute.xlu0 %3412 }
0x1154   : > { %v3417_v45 = vmul.f32 %v9128_v59, %v3413_v49  ;;  %v3411_v53 = vpop.permute.xlu1 %3410 }
0x1155   : > { %v3416_v55 = vmul.f32 %v9130_v12, %v3411_v53 }
0x1156   : > { %3507 = vrot.lane.b32.xlu0 %v3417_v45, %s9795_s3 }
0x1157   : > { %3505 = vrot.lane.b32.xlu1 %v3416_v55, %s9795_s3  ;;  %v3423_v19 = vpop.permute.xlu0 %3422 }
0x1158   : > { %v3421_v10 = vpop.permute.xlu1 %3420 }
0x1159   : > { %8020 = vmatprep.mubr.msk.f32.mxu1 %vm866_vm0, %v3421_v10 }
0x115a   : > { %1114 = vperm.xlu0 %8945, %v1067_v8   ;;  %8021 = vmatmul.mubr.msk.f32.vlgmr.msra.gmra.mrb[12].mxu1 %vm866_vm0, %v3423_v19 }
0x115b   : > { %1109 = vperm.xlu1 %8946, %v1066_v15   ;;  %8524 = vmatpush3.bf16.msra.mxu1 %v10252_v30 }
0x115c   : > { %8526 = vmatprep.subr.bf16.mxu1 %v10257_v35 }
0x115e   : > { %3265 = vrot.lane.b32.xlu0 %v9140_v11, %s9794_s29 }
0x115f   : > { %3263 = vrot.lane.b32.xlu1 %v9142_v26, %s9794_s29  ;;  %8528 = vmatpush3.bf16.msra.mxu1 %v10257_v35 }
0x1160   : > { %8530 = vmatprep.subr.bf16.mxu1 %v10270_v39 }
0x11c8   : > { %v10731_v3 = vpop.permute.xlu0 %3507 }
0x11c9   : > { %v10729_v4 = vpop.permute.xlu1 %3505 }
0x11ca   : > { %8031 = vmatprep.mubr.msk.f32.mxu1 %vm866_vm0, %v10729_v4 }
0x11cb   : > { %8032 = vmatmul.mubr.msk.f32.vlgmr.msra.gmra.mrb[12].mxu1 %vm866_vm0, %v10731_v3 }
0x11cc   : > { %8532 = vmatpush3.bf16.msra.mxu1 %v10270_v39  ;;  %8042 = vmatprep.mubr.msk.f32.mxu1 %vm866_vm0, %v10649_v51 }
0x11cd   : > { %8534 = vmatprep.subr.bf16.mxu1 %v10286_v52 }
0x11d0   : > { %8536 = vmatpush3.bf16.msra.mxu1 %v10286_v52 }
0x11d1   : > { %8562 = vmatprep.subr.bf16.mxu1 %v10245_v25 }
0x11d3   : > { %8043 = vmatmul.mubr.msk.f32.vlgmr.msra.gmra.mrb[14].mxu1 %vm866_vm0, %v10651_v63 }
0x11d4   : > { %8564 = vmatpush3.bf16.msra.mxu1 %v10245_v25 }
0x11d5   : > { %8566 = vmatprep.subr.bf16.mxu1 %v10247_v27 }
0x11d8   : > { %8568 = vmatpush3.bf16.msra.mxu1 %v10247_v27 }
0x11d9   : > { %8570 = vmatprep.subr.bf16.mxu1 %v10252_v30  ;;  %v1115_v51 = vpop.permute.xlu0 %1114 }
0x11da   : > { %v1110_v57 = vpop.permute.xlu1 %1109  ;;  %v1170_v63 = vmul.f32 %v10753_v5, %v1115_v51 }
0x11db   : > { %v1169_v12 = vmul.f32 %v10753_v5, %v1110_v57 }
0x11dc   : > { %v1193_v28 = vadd.f32 %v10760_v17, %v1170_v63 }
0x11dd   : > { %v1192_v20 = vadd.f32 %v10760_v17, %v1169_v12  ;;  %v3266_v13 = vpop.permute.xlu0 %3265 }
0x11de   : > { %v3264_v36 = vpop.permute.xlu1 %3263 }
0x129e   : > { %v10749_v41 = vpop.f32.mrb[12].mxu1 }
0x129f   : > { %v10751_v59 = vpop.f32.mrb[13].mxu1 }
0x12a6   : > { %v8044_v18 = vpop.f32.mrb[14].mxu1 }
0x12a7   : > { %v3714_v31 = vadd.f32 %v8044_v18, %v1193_v28  ;;  %v3704_v6 = vpop.f32.mrb[15].mxu1 }
0x12a8   : > { %v3713_v0 = vadd.f32 %v3704_v6, %v1192_v20 }
0x12a9   : > { %9147 = vtanh.f32 %v3714_v31  ;;  %v7343_v60 = vmul.f32 -1.442695, %v3714_v31 }
0x12aa   : > { %9149 = vtanh.f32 %v3713_v0  ;;  %v7342_v44 = vmul.f32 -1.442695, %v3713_v0 }
0x12ab   : > { %9151 = vrcp.f32 %v3252_v24 }
0x12ac   : > { %9153 = vrcp.f32 %v3251_v9 }
0x12ad   : > { %9155 = vpow2.f32 %v7343_v60 }
0x12ae   : > { %9157 = vpow2.f32 %v7342_v44 }
0x12b3   : > { %v9148_v14 = vpop.eup %9147 }
0x12b4   : > { %v9150_v34 = vpop.eup %9149  ;;  %3735 = vrot.lane.b32.xlu0 %v9148_v14, %s9794_s29 }
0x12b5   : > { %v9152_v32 = vpop.eup %9151  ;;  %3733 = vrot.lane.b32.xlu1 %v9150_v34, %s9794_s29 }
0x12b6   : > { %v9154_v23 = vpop.eup %9153  ;;  %v3270_v37 = vmul.f32 %v9152_v32, %v3266_v13  ;;  %v3260_v29 = vmul.f32 %v9152_v32, %v10615_v62 }
0x12b7   : > { %v3269_v56 = vmul.f32 %v9154_v23, %v3264_v36  ;;  %v9156_v49 = vpop.eup %9155  ;;  %v3259_v51 = vmul.f32 %v9154_v23, %v10617_v2 }
0x12b8   : > { %3275 = vrot.lane.b32.xlu0 %v3270_v37, %s9795_s3  ;;  %v9158_v45 = vpop.eup %9157  ;;  %v3722_v53 = vadd.f32 1.0, %v9156_v49 }
0x12b9   : > { %3273 = vrot.lane.b32.xlu1 %v3269_v56, %s9795_s3  ;;  %v3721_v55 = vadd.f32 1.0, %v9158_v45 }
0x12ba   : > { %9159 = vrcp.f32 %v3722_v53 }
0x12bb   : > { %9161 = vrcp.f32 %v3721_v55 }
0x12c4   : > { %v9160_v8 = vpop.eup %9159 }
0x12c5   : > { %v9162_v15 = vpop.eup %9161  ;;  %v3730_v62 = vmul.f32 %v9160_v8, %v10625_v58 }
0x12c6   : > { %v3729_v2 = vmul.f32 %v9162_v15, %v10627_v1  ;;  %v10795_v1 = vld [vmem:[%s11617_s19] ss:$0 sm:$0xff] }
0x12c7   : > { %v3589_v13 = vadd.f32 %v10795_v1, %v10749_v41  ;;  %v3588_v34 = vadd.f32 %v10795_v1, %v10751_v59 }
0x12c9   : > { %v7339_v45 = vmul.f32 -1.442695, %v3589_v13  ;;  %v7338_v53 = vmul.f32 -1.442695, %v3588_v34 }
0x1326   : > { %v3736_v10 = vpop.permute.xlu0 %3735 }
0x1327   : > { %v3740_v19 = vmul.f32 %v9160_v8, %v3736_v10  ;;  %v3734_v11 = vpop.permute.xlu1 %3733 }
0x1328   : > { %v3739_v26 = vmul.f32 %v9162_v15, %v3734_v11 }
0x1329   : > { %3745 = vrot.lane.b32.xlu0 %v3740_v19, %s9795_s3 }
0x132a   : > { %3743 = vrot.lane.b32.xlu1 %v3739_v26, %s9795_s3  ;;  %v3276_v7 = vpop.permute.xlu0 %3275 }
0x132b   : > { %v10772_v57 = vadd.f32 %v3276_v7, %v3260_v29  ;;  %v3274_v63 = vpop.permute.xlu1 %3273 }
0x132c   : > { %v10774_v12 = vadd.f32 %v3274_v63, %v3259_v51 }
0x132d   : > { %9163 = vtanh.f32 %v10772_v57 }
0x132e   : > { %9165 = vtanh.f32 %v10774_v12 }
0x1337   : > { %v9164_v21 = vpop.eup %9163 }
0x1338   : > { %v9166_v16 = vpop.eup %9165  ;;  %3287 = vrot.lane.b32.xlu0 %v9164_v21, %s9794_s29 }
0x1339   : > { %3285 = vrot.lane.b32.xlu1 %v9166_v16, %s9794_s29 }
0x139b   : > { %v3746_v28 = vpop.permute.xlu0 %3745 }
0x139c   : > { %v10782_v18 = vadd.f32 %v3746_v28, %v3730_v62  ;;  %v3744_v20 = vpop.permute.xlu1 %3743 }
0x139d   : > { %v10784_v24 = vadd.f32 %v3744_v20, %v3729_v2 }
0x139e   : > { %9167 = vtanh.f32 %v10782_v18 }
0x139f   : > { %9169 = vtanh.f32 %v10784_v24 }
0x13a0   : > { %9171 = vtanh.f32 %v3589_v13 }
0x13a1   : > { %9173 = vtanh.f32 %v3588_v34 }
0x13a2   : > { %9175 = vpow2.f32 %v7339_v45 }
0x13a3   : > { %9177 = vpow2.f32 %v7338_v53 }
0x13a8   : > { %v9168_v31 = vpop.eup %9167 }
0x13a9   : > { %v9170_v6 = vpop.eup %9169  ;;  %3757 = vrot.lane.b32.xlu0 %v9168_v31, %s9794_s29 }
0x13aa   : > { %3755 = vrot.lane.b32.xlu1 %v9170_v6, %s9794_s29  ;;  %v3288_v9 = vpop.permute.xlu0 %3287  ;;  %v9172_v60 = vpop.eup %9171 }
0x13ab   : > { %v3292_v58 = vmul.f32 %v9152_v32, %v3288_v9  ;;  %v3286_v0 = vpop.permute.xlu1 %3285  ;;  %v9174_v49 = vpop.eup %9173 }
0x13ac   : > { %v3291_v14 = vmul.f32 %v9154_v23, %v3286_v0 }
0x13ad   : > { %3767 = vrot.lane.b32.xlu0 %v3292_v58, %s9795_s3 }
0x13ae   : > { %3765 = vrot.lane.b32.xlu1 %v3291_v14, %s9795_s3 }
0x141b   : > { %v3758_v36 = vpop.permute.xlu0 %3757 }
0x141c   : > { %v3762_v32 = vmul.f32 %v9160_v8, %v3758_v36  ;;  %v3756_v23 = vpop.permute.xlu1 %3755  ;;  %v9176_v8 = vpop.eup %9175 }
0x141d   : > { %v3761_v37 = vmul.f32 %v9162_v15, %v3756_v23  ;;  %v9178_v10 = vpop.eup %9177 }
0x141e   : > { %3852 = vrot.lane.b32.xlu0 %v3762_v32, %s9795_s3  ;;  %v3596_v26 = vadd.f32 1.0, %v9178_v10 }
0x141f   : > { %3850 = vrot.lane.b32.xlu1 %v3761_v37, %s9795_s3  ;;  %v3768_v44 = vpop.permute.xlu0 %3767 }
0x1420   : > { %v3766_v56 = vpop.permute.xlu1 %3765 }
0x1421   : > { %8053 = vmatprep.mubr.msk.f32.mxu0 %vm866_vm0, %v3766_v56 }
0x1422   : > { %3610 = vrot.lane.b32.xlu0 %v9172_v60, %s9794_s29  ;;  %8054 = vmatmul.mubr.msk.f32.vlgmr.msra.gmra.mrb[22].mxu0 %vm866_vm0, %v3768_v44 }
0x1423   : > { %3608 = vrot.lane.b32.xlu1 %v9174_v49, %s9794_s29  ;;  %8548 = vmatpush3.bf16.msra.mxu0 %v10338_v46 }
0x1424   : > { %8550 = vmatprep.subr.bf16.mxu0 %v10342_v50 }
0x1427   : > { %8552 = vmatpush3.bf16.msra.mxu0 %v10342_v50 }
0x1428   : > { %8554 = vmatprep.subr.bf16.mxu0 %v10184_v42 }
0x1490   : > { %v10813_v59 = vpop.permute.xlu0 %3852 }
0x1491   : > { %v10811_v41 = vpop.permute.xlu1 %3850 }
0x1492   : > { %8064 = vmatprep.mubr.msk.f32.mxu0 %vm866_vm0, %v10811_v41 }
0x1493   : > { %8065 = vmatmul.mubr.msk.f32.vlgmr.msra.gmra.mrb[22].mxu0 %vm866_vm0, %v10813_v59 }
0x1494   : > { %8556 = vmatpush3.bf16.msra.mxu0 %v10184_v42  ;;  %8075 = vmatprep.mubr.msk.f32.mxu0 %vm866_vm0, %v10729_v4  ;;  %v3611_v51 = vpop.permute.xlu0 %3610 }
0x1495   : > { %8558 = vmatprep.subr.bf16.mxu0 %v10189_v47  ;;  %v3609_v21 = vpop.permute.xlu1 %3608 }
0x1498   : > { %8560 = vmatpush3.bf16.msra.mxu0 %v10189_v47 }
0x1499   : > { %8586 = vmatprep.subr.bf16.mxu0 %v10328_v38 }
0x149b   : > { %8076 = vmatmul.mubr.msk.f32.vlgmr.msra.gmra.mrb[8].mxu0 %vm866_vm0, %v10731_v3  ;;  %v3597_v3 = vadd.f32 1.0, %v9176_v8 }
0x149c   : > { %8588 = vmatpush3.bf16.msra.mxu0 %v10328_v38 }
0x149d   : > { %8590 = vmatprep.subr.bf16.mxu0 %v10331_v43 }
0x14a0   : > { %8592 = vmatpush3.bf16.msra.mxu0 %v10331_v43 }
0x14a1   : > { %8594 = vmatprep.subr.bf16.mxu0 %v10338_v46 }
0x1566   : > { %v10831_v4 = vpop.f32.mrb[22].mxu0 }
0x1567   : > { %v10833_v55 = vpop.f32.mrb[23].mxu0 }
0x156e   : > { %v8077_v15 = vpop.f32.mrb[8].mxu0 }
0x156f   : > { %v8769_v19 = vadd.f32 %v10676_v61, %v8077_v15  ;;  %v4049_v11 = vpop.f32.mrb[9].mxu0 }
0x1570   : > { %v8770_v29 = vadd.f32 %v10676_v61, %v4049_v11 }
0x1571   : > { %9179 = vtanh.f32 %v8769_v19  ;;  %v7353_v20 = vmul.f32 -1.442695, %v8769_v19 }
0x1572   : > { %9181 = vtanh.f32 %v8770_v29  ;;  %v7352_v31 = vmul.f32 -1.442695, %v8770_v29 }
0x1573   : > { %9183 = vrcp.f32 %v3597_v3 }
0x1574   : > { %9185 = vrcp.f32 %v3596_v26 }
0x1575   : > { %9187 = vpow2.f32 %v7353_v20 }
0x1576   : > { %9189 = vpow2.f32 %v7352_v31  ;;  %v1068_v31 = vld [vmem:[%s10163_s17 + $0x40] sm:$0xff] }
0x157b   : > { %v9180_v7 = vpop.eup %9179 }
0x157c   : > { %v9182_v63 = vpop.eup %9181  ;;  %4080 = vrot.lane.b32.xlu0 %v9180_v7, %s9794_s29 }
0x157d   : > { %v9184_v16 = vpop.eup %9183  ;;  %4078 = vrot.lane.b32.xlu1 %v9182_v63, %s9794_s29  ;;  %v3933_v63 = vadd.f32 %v10711_v40, %v10833_v55 }
0x157e   : > { %v9186_v62 = vpop.eup %9185  ;;  %v3615_v28 = vmul.f32 %v9184_v16, %v3611_v51  ;;  %v3605_v37 = vmul.f32 %v9184_v16, %v10688_v48  ;;  %v3934_v51 = vadd.f32 %v10711_v40, %v10831_v4 }
0x157f   : > { %v3614_v2 = vmul.f32 %v9186_v62, %v3609_v21  ;;  %v9188_v6 = vpop.eup %9187  ;;  %v3604_v60 = vmul.f32 %v9186_v62, %v10690_v54 }
0x1580   : > { %3620 = vrot.lane.b32.xlu0 %v3615_v28, %s9795_s3  ;;  %v9190_v9 = vpop.eup %9189  ;;  %v4067_v58 = vadd.f32 1.0, %v9188_v6 }
0x1581   : > { %3618 = vrot.lane.b32.xlu1 %v3614_v2, %s9795_s3  ;;  %v4066_v0 = vadd.f32 1.0, %v9190_v9 }
0x1582   : > { %9191 = vrcp.f32 %v4067_v58 }
0x1583   : > { %9193 = vrcp.f32 %v4066_v0  ;;  %v7349_v0 = vmul.f32 -1.442695, %v3934_v51 }
0x158c   : > { %v9192_v14 = vpop.eup %9191 }
0x158d   : > { %v9194_v34 = vpop.eup %9193  ;;  %v4075_v48 = vmul.f32 %v9192_v14, %v10698_v22 }
0x158e   : > { %v4074_v54 = vmul.f32 %v9194_v34, %v10700_v33 }
0x15ee   : > { %v4081_v13 = vpop.permute.xlu0 %4080 }
0x15ef   : > { %v4085_v36 = vmul.f32 %v9192_v14, %v4081_v13  ;;  %v4079_v32 = vpop.permute.xlu1 %4078 }
0x15f0   : > { %v4084_v23 = vmul.f32 %v9194_v34, %v4079_v32 }
0x15f1   : > { %4090 = vrot.lane.b32.xlu0 %v4085_v36, %s9795_s3 }
0x15f2   : > { %4088 = vrot.lane.b32.xlu1 %v4084_v23, %s9795_s3  ;;  %v3621_v56 = vpop.permute.xlu0 %3620 }
0x15f3   : > { %v10845_v44 = vadd.f32 %v3621_v56, %v3605_v37  ;;  %v3619_v49 = vpop.permute.xlu1 %3618 }
0x15f4   : > { %v10847_v45 = vadd.f32 %v3619_v49, %v3604_v60 }
0x15f5   : > { %9195 = vtanh.f32 %v10845_v44 }
0x15f6   : > { %9197 = vtanh.f32 %v10847_v45 }
0x15ff   : > { %v9196_v53 = vpop.eup %9195 }
0x1600   : > { %v9198_v8 = vpop.eup %9197  ;;  %3632 = vrot.lane.b32.xlu0 %v9196_v53, %s9794_s29 }
0x1601   : > { %3630 = vrot.lane.b32.xlu1 %v9198_v8, %s9794_s29 }
0x1663   : > { %v4091_v10 = vpop.permute.xlu0 %4090 }
0x1664   : > { %v10855_v15 = vadd.f32 %v4091_v10, %v4075_v48  ;;  %v4089_v3 = vpop.permute.xlu1 %4088 }
0x1665   : > { %v10857_v19 = vadd.f32 %v4089_v3, %v4074_v54 }
0x1666   : > { %9199 = vtanh.f32 %v10855_v15 }
0x1667   : > { %9201 = vtanh.f32 %v10857_v19 }
0x1668   : > { %9203 = vtanh.f32 %v3934_v51 }
0x1669   : > { %9205 = vtanh.f32 %v3933_v63 }
0x166a   : > { %9207 = vpow2.f32 %v7349_v0 }
0x1670   : > { %v9200_v11 = vpop.eup %9199 }
0x1671   : > { %v9202_v26 = vpop.eup %9201  ;;  %4102 = vrot.lane.b32.xlu0 %v9200_v11, %s9794_s29 }
0x1672   : > { %4100 = vrot.lane.b32.xlu1 %v9202_v26, %s9794_s29  ;;  %v3633_v29 = vpop.permute.xlu0 %3632  ;;  %v9204_v4 = vpop.eup %9203 }
0x1673   : > { %v3637_v22 = vmul.f32 %v9184_v16, %v3633_v29  ;;  %v3631_v7 = vpop.permute.xlu1 %3630  ;;  %v1069_v16 = vld [vmem:[%s10163_s17 + $0x48] sm:$0xff]  ;;  %v9206_v55 = vpop.eup %9205 }
0x1674   : > { %v3636_v33 = vmul.f32 %v9186_v62, %v3631_v7  ;;  %v9208_v23 = vpop.eup %9207 }
0x1675   : > { %4112 = vrot.lane.b32.xlu0 %v3637_v22, %s9795_s3  ;;  %v3942_v53 = vadd.f32 1.0, %v9208_v23 }
0x1676   : > { %4110 = vrot.lane.b32.xlu1 %v3636_v33, %s9795_s3 }
0x16e3   : > { %v4103_v21 = vpop.permute.xlu0 %4102 }
0x16e4   : > { %v4107_v28 = vmul.f32 %v9192_v14, %v4103_v21  ;;  %v4101_v2 = vpop.permute.xlu1 %4100  ;;  %v7348_v14 = vmul.f32 -1.442695, %v3933_v63 }
0x16e5   : > { %v4106_v20 = vmul.f32 %v9194_v34, %v4101_v2 }
0x16e6   : > { %4197 = vrot.lane.b32.xlu0 %v4107_v28, %s9795_s3  ;;  %9209 = vpow2.f32 %v7348_v14 }
0x16e7   : > { %4195 = vrot.lane.b32.xlu1 %v4106_v20, %s9795_s3  ;;  %v4113_v6 = vpop.permute.xlu0 %4112 }
0x16e8   : > { %v4111_v62 = vpop.permute.xlu1 %4110 }
0x16e9   : > { %8086 = vmatprep.mubr.msk.f32.mxu1 %vm866_vm0, %v4111_v62 }
0x16ea   : > { %1124 = vperm.xlu0 %8945, %v1069_v16   ;;  %8087 = vmatmul.mubr.msk.f32.vlgmr.msra.gmra.mrb[16].mxu1 %vm866_vm0, %v4113_v6 }
0x16eb   : > { %1119 = vperm.xlu1 %8946, %v1068_v31   ;;  %8572 = vmatpush3.bf16.msra.mxu1 %v10252_v30 }
0x16ec   : > { %8574 = vmatprep.subr.bf16.mxu1 %v10257_v35 }
0x16ee   : > { %3955 = vrot.lane.b32.xlu0 %v9204_v4, %s9794_s29 }
0x16ef   : > { %3953 = vrot.lane.b32.xlu1 %v9206_v55, %s9794_s29  ;;  %8576 = vmatpush3.bf16.msra.mxu1 %v10257_v35 }
0x16f0   : > { %8578 = vmatprep.subr.bf16.mxu1 %v10270_v39  ;;  %v9210_v37 = vpop.eup %9209 }
0x16f1   : > { %v3941_v10 = vadd.f32 1.0, %v9210_v37 }
0x1758   : > { %v10883_v58 = vpop.permute.xlu0 %4197 }
0x1759   : > { %v10881_v9 = vpop.permute.xlu1 %4195 }
0x175a   : > { %8097 = vmatprep.mubr.msk.f32.mxu1 %vm866_vm0, %v10881_v9 }
0x175b   : > { %8098 = vmatmul.mubr.msk.f32.vlgmr.msra.gmra.mrb[16].mxu1 %vm866_vm0, %v10883_v58 }
0x175c   : > { %8580 = vmatpush3.bf16.msra.mxu1 %v10270_v39  ;;  %8108 = vmatprep.mubr.msk.f32.mxu1 %vm866_vm0, %v10811_v41 }
0x175d   : > { %8582 = vmatprep.subr.bf16.mxu1 %v10286_v52 }
0x1760   : > { %8584 = vmatpush3.bf16.msra.mxu1 %v10286_v52 }
0x1761   : > { %8610 = vmatprep.subr.bf16.mxu1 %v10245_v25 }
0x1763   : > { %8109 = vmatmul.mubr.msk.f32.vlgmr.msra.gmra.mrb[18].mxu1 %vm866_vm0, %v10813_v59 }
0x1764   : > { %8612 = vmatpush3.bf16.msra.mxu1 %v10245_v25 }
0x1765   : > { %8614 = vmatprep.subr.bf16.mxu1 %v10247_v27 }
0x1768   : > { %8616 = vmatpush3.bf16.msra.mxu1 %v10247_v27 }
0x1769   : > { %8618 = vmatprep.subr.bf16.mxu1 %v10252_v30  ;;  %v1125_v41 = vpop.permute.xlu0 %1124 }
0x176a   : > { %v1120_v34 = vpop.permute.xlu1 %1119  ;;  %v1172_v59 = vmul.f32 %v10753_v5, %v1125_v41 }
0x176b   : > { %v1171_v32 = vmul.f32 %v10753_v5, %v1120_v34 }
0x176c   : > { %v1195_v56 = vadd.f32 %v10760_v17, %v1172_v59 }
0x176d   : > { %v1194_v49 = vadd.f32 %v10760_v17, %v1171_v32  ;;  %v3956_v11 = vpop.permute.xlu0 %3955 }
0x176e   : > { %v3954_v29 = vpop.permute.xlu1 %3953 }
0x182e   : > { %v10901_v13 = vpop.f32.mrb[16].mxu1 }
0x182f   : > { %v10903_v36 = vpop.f32.mrb[17].mxu1 }
0x1836   : > { %v8110_v60 = vpop.f32.mrb[18].mxu1 }
0x1837   : > { %v4404_v8 = vadd.f32 %v8110_v60, %v1195_v56  ;;  %v4394_v48 = vpop.f32.mrb[19].mxu1 }
0x1838   : > { %v4403_v54 = vadd.f32 %v4394_v48, %v1194_v49 }
0x1839   : > { %9211 = vtanh.f32 %v4404_v8  ;;  %v7363_v63 = vmul.f32 -1.442695, %v4404_v8 }
0x183a   : > { %9213 = vtanh.f32 %v4403_v54  ;;  %v7362_v21 = vmul.f32 -1.442695, %v4403_v54 }
0x183b   : > { %9215 = vrcp.f32 %v3942_v53 }
0x183c   : > { %9217 = vrcp.f32 %v3941_v10 }
0x183d   : > { %9219 = vpow2.f32 %v7363_v63 }
0x183e   : > { %9221 = vpow2.f32 %v7362_v21 }
0x1843   : > { %v9212_v3 = vpop.eup %9211 }
0x1844   : > { %v9214_v26 = vpop.eup %9213  ;;  %4425 = vrot.lane.b32.xlu0 %v9212_v3, %s9794_s29 }
0x1845   : > { %v9216_v22 = vpop.eup %9215  ;;  %4423 = vrot.lane.b32.xlu1 %v9214_v26, %s9794_s29  ;;  %v4278_v26 = vadd.f32 %v10795_v1, %v10903_v36 }
0x1846   : > { %v9218_v7 = vpop.eup %9217  ;;  %v3960_v33 = vmul.f32 %v9216_v22, %v3956_v11  ;;  %v3950_v14 = vmul.f32 %v9216_v22, %v10772_v57 }
0x1847   : > { %v3959_v51 = vmul.f32 %v9218_v7, %v3954_v29  ;;  %v9220_v28 = vpop.eup %9219  ;;  %v3949_v34 = vmul.f32 %v9218_v7, %v10774_v12 }
0x1848   : > { %3965 = vrot.lane.b32.xlu0 %v3960_v33, %s9795_s3  ;;  %v9222_v2 = vpop.eup %9221  ;;  %v4412_v20 = vadd.f32 1.0, %v9220_v28 }
0x1849   : > { %3963 = vrot.lane.b32.xlu1 %v3959_v51, %s9795_s3  ;;  %v4411_v16 = vadd.f32 1.0, %v9222_v2 }
0x184a   : > { %9223 = vrcp.f32 %v4412_v20  ;;  %v7358_v20 = vmul.f32 -1.442695, %v4278_v26 }
0x184b   : > { %9225 = vrcp.f32 %v4411_v16 }
0x1854   : > { %v9224_v62 = vpop.eup %9223 }
0x1855   : > { %v9226_v6 = vpop.eup %9225  ;;  %v4420_v57 = vmul.f32 %v9224_v62, %v10782_v18 }
0x1856   : > { %v4419_v12 = vmul.f32 %v9226_v6, %v10784_v24  ;;  %v4279_v24 = vadd.f32 %v10795_v1, %v10901_v13 }
0x1858   : > { %v7359_v2 = vmul.f32 -1.442695, %v4279_v24 }
0x18b6   : > { %v4426_v31 = vpop.permute.xlu0 %4425 }
0x18b7   : > { %v4430_v4 = vmul.f32 %v9224_v62, %v4426_v31  ;;  %v4424_v55 = vpop.permute.xlu1 %4423 }
0x18b8   : > { %v4429_v0 = vmul.f32 %v9226_v6, %v4424_v55 }
0x18b9   : > { %4435 = vrot.lane.b32.xlu0 %v4430_v4, %s9795_s3 }
0x18ba   : > { %4433 = vrot.lane.b32.xlu1 %v4429_v0, %s9795_s3  ;;  %v3966_v41 = vpop.permute.xlu0 %3965 }
0x18bb   : > { %v10917_v59 = vadd.f32 %v3966_v41, %v3950_v14  ;;  %v3964_v32 = vpop.permute.xlu1 %3963 }
0x18bc   : > { %v10919_v23 = vadd.f32 %v3964_v32, %v3949_v34 }
0x18bd   : > { %9227 = vtanh.f32 %v10917_v59 }
0x18be   : > { %9229 = vtanh.f32 %v10919_v23 }
0x18c7   : > { %v9228_v37 = vpop.eup %9227 }
0x18c8   : > { %v9230_v56 = vpop.eup %9229  ;;  %3977 = vrot.lane.b32.xlu0 %v9228_v37, %s9794_s29 }
0x18c9   : > { %3975 = vrot.lane.b32.xlu1 %v9230_v56, %s9794_s29 }
0x192b   : > { %v4436_v60 = vpop.permute.xlu0 %4435 }
0x192c   : > { %v10927_v49 = vadd.f32 %v4436_v60, %v4420_v57  ;;  %v4434_v53 = vpop.permute.xlu1 %4433 }
0x192d   : > { %v10929_v8 = vadd.f32 %v4434_v53, %v4419_v12 }
0x192e   : > { %9231 = vtanh.f32 %v10927_v49 }
0x192f   : > { %9233 = vtanh.f32 %v10929_v8 }
0x1930   : > { %9235 = vtanh.f32 %v4279_v24 }
0x1931   : > { %9237 = vtanh.f32 %v4278_v26 }
0x1932   : > { %9239 = vpow2.f32 %v7359_v2 }
0x1933   : > { %9241 = vpow2.f32 %v7358_v20 }
0x1938   : > { %v9232_v48 = vpop.eup %9231 }
0x1939   : > { %v9234_v10 = vpop.eup %9233  ;;  %4447 = vrot.lane.b32.xlu0 %v9232_v48, %s9794_s29 }
0x193a   : > { %4445 = vrot.lane.b32.xlu1 %v9234_v10, %s9794_s29  ;;  %v3978_v54 = vpop.permute.xlu0 %3977 }
0x193b   : > { %v3982_v18 = vmul.f32 %v9216_v22, %v3978_v54  ;;  %v3976_v3 = vpop.permute.xlu1 %3975 }
0x193c   : > { %v3981_v11 = vmul.f32 %v9218_v7, %v3976_v3  ;;  %v9236_v7 = vpop.eup %9235 }
0x193d   : > { %4457 = vrot.lane.b32.xlu0 %v3982_v18, %s9795_s3  ;;  %v9238_v28 = vpop.eup %9237 }
0x193e   : > { %4455 = vrot.lane.b32.xlu1 %v3981_v11, %s9795_s3 }
0x19ab   : > { %v4448_v29 = vpop.permute.xlu0 %4447 }
0x19ac   : > { %v4452_v33 = vmul.f32 %v9224_v62, %v4448_v29  ;;  %v4446_v51 = vpop.permute.xlu1 %4445  ;;  %v9240_v62 = vpop.eup %9239 }
0x19ad   : > { %v4451_v63 = vmul.f32 %v9226_v6, %v4446_v51  ;;  %v9242_v31 = vpop.eup %9241 }
0x19ae   : > { %4542 = vrot.lane.b32.xlu0 %v4452_v33, %s9795_s3  ;;  %v4286_v0 = vadd.f32 1.0, %v9242_v31 }
0x19af   : > { %4540 = vrot.lane.b32.xlu1 %v4451_v63, %s9795_s3  ;;  %v4458_v21 = vpop.permute.xlu0 %4457 }
0x19b0   : > { %v4456_v22 = vpop.permute.xlu1 %4455 }
0x19b1   : > { %8119 = vmatprep.mubr.msk.f32.mxu0 %vm866_vm0, %v4456_v22 }
0x19b2   : > { %4300 = vrot.lane.b32.xlu0 %v9236_v7, %s9794_s29  ;;  %8120 = vmatmul.mubr.msk.f32.vlgmr.msra.gmra.mrb[24].mxu0 %vm866_vm0, %v4458_v21 }
0x19b3   : > { %4298 = vrot.lane.b32.xlu1 %v9238_v28, %s9794_s29  ;;  %8596 = vmatpush3.bf16.msra.mxu0 %v10338_v46 }
0x19b4   : > { %8598 = vmatprep.subr.bf16.mxu0 %v10342_v50 }
0x19b7   : > { %8600 = vmatpush3.bf16.msra.mxu0 %v10342_v50 }
0x19b8   : > { %8602 = vmatprep.subr.bf16.mxu0 %v10184_v42 }
0x1a20   : > { %v10953_v36 = vpop.permute.xlu0 %4542 }
0x1a21   : > { %v10951_v13 = vpop.permute.xlu1 %4540 }
0x1a22   : > { %8130 = vmatprep.mubr.msk.f32.mxu0 %vm866_vm0, %v10951_v13 }
0x1a23   : > { %8131 = vmatmul.mubr.msk.f32.vlgmr.msra.gmra.mrb[24].mxu0 %vm866_vm0, %v10953_v36 }
0x1a24   : > { %8604 = vmatpush3.bf16.msra.mxu0 %v10184_v42  ;;  %8141 = vmatprep.mubr.msk.f32.mxu0 %vm866_vm0, %v10881_v9  ;;  %v4301_v34 = vpop.permute.xlu0 %4300 }
0x1a25   : > { %8606 = vmatprep.subr.bf16.mxu0 %v10189_v47  ;;  %v4299_v37 = vpop.permute.xlu1 %4298 }
0x1a28   : > { %8608 = vmatpush3.bf16.msra.mxu0 %v10189_v47 }
0x1a29   : > { %8634 = vmatprep.subr.bf16.mxu0 %v10328_v38 }
0x1a2b   : > { %8142 = vmatmul.mubr.msk.f32.vlgmr.msra.gmra.mrb[10].mxu0 %vm866_vm0, %v10883_v58  ;;  %v4287_v58 = vadd.f32 1.0, %v9240_v62 }
0x1a2c   : > { %8636 = vmatpush3.bf16.msra.mxu0 %v10328_v38 }
0x1a2d   : > { %8638 = vmatprep.subr.bf16.mxu0 %v10331_v43 }
0x1a30   : > { %8640 = vmatpush3.bf16.msra.mxu0 %v10331_v43 }
0x1a31   : > { %8642 = vmatprep.subr.bf16.mxu0 %v10338_v46 }
0x1af6   : > { %v10971_v9 = vpop.f32.mrb[24].mxu0 }
0x1af7   : > { %v10973_v16 = vpop.f32.mrb[25].mxu0 }
0x1afe   : > { %v8143_v6 = vpop.f32.mrb[10].mxu0 }
0x1aff   : > { %v8771_v4 = vadd.f32 %v10676_v61, %v8143_v6  ;;  %v4739_v55 = vpop.f32.mrb[11].mxu0 }
0x1b00   : > { %v8772_v14 = vadd.f32 %v10676_v61, %v4739_v55 }
0x1b01   : > { %9243 = vtanh.f32 %v8771_v4  ;;  %v7373_v61 = vmul.f32 -1.442695, %v8771_v4 }
0x1b02   : > { %9245 = vtanh.f32 %v8772_v14  ;;  %v7372_v53 = vmul.f32 -1.442695, %v8772_v14 }
0x1b03   : > { %9247 = vrcp.f32 %v4287_v58 }
0x1b04   : > { %9249 = vrcp.f32 %v4286_v0 }
0x1b05   : > { %9251 = vpow2.f32 %v7373_v61  ;;  %v1070_v61 = vld [vmem:[%s10163_s17 + $0x50] sm:$0xff] }
0x1b06   : > { %9253 = vpow2.f32 %v7372_v53 }
0x1b0b   : > { %v9244_v41 = vpop.eup %9243 }
0x1b0c   : > { %v9246_v32 = vpop.eup %9245  ;;  %4770 = vrot.lane.b32.xlu0 %v9244_v41, %s9794_s29  ;;  %v4624_v41 = vadd.f32 %v10711_v40, %v10971_v9 }
0x1b0d   : > { %v9248_v56 = vpop.eup %9247  ;;  %4768 = vrot.lane.b32.xlu1 %v9246_v32, %s9794_s29 }
0x1b0e   : > { %v9250_v57 = vpop.eup %9249  ;;  %v4305_v60 = vmul.f32 %v9248_v56, %v4301_v34  ;;  %v4295_v51 = vmul.f32 %v9248_v56, %v10845_v44  ;;  %v4623_v34 = vadd.f32 %v10711_v40, %v10973_v16 }
0x1b0f   : > { %v4304_v12 = vmul.f32 %v9250_v57, %v4299_v37  ;;  %v9252_v48 = vpop.eup %9251  ;;  %v4294_v22 = vmul.f32 %v9250_v57, %v10847_v45 }
0x1b10   : > { %4310 = vrot.lane.b32.xlu0 %v4305_v60, %s9795_s3  ;;  %v9254_v10 = vpop.eup %9253  ;;  %v4757_v54 = vadd.f32 1.0, %v9252_v48 }
0x1b11   : > { %4308 = vrot.lane.b32.xlu1 %v4304_v12, %s9795_s3  ;;  %v4756_v18 = vadd.f32 1.0, %v9254_v10  ;;  %v7369_v10 = vmul.f32 -1.442695, %v4624_v41 }
0x1b12   : > { %9255 = vrcp.f32 %v4757_v54  ;;  %v7368_v54 = vmul.f32 -1.442695, %v4623_v34 }
0x1b13   : > { %9257 = vrcp.f32 %v4756_v18 }
0x1b1c   : > { %v9256_v3 = vpop.eup %9255 }
0x1b1d   : > { %v9258_v24 = vpop.eup %9257  ;;  %v4765_v44 = vmul.f32 %v9256_v3, %v10855_v15 }
0x1b1e   : > { %v4764_v45 = vmul.f32 %v9258_v24, %v10857_v19 }
0x1b7e   : > { %v4771_v11 = vpop.permute.xlu0 %4770 }
0x1b7f   : > { %v4775_v26 = vmul.f32 %v9256_v3, %v4771_v11  ;;  %v4769_v29 = vpop.permute.xlu1 %4768 }
0x1b80   : > { %v4774_v33 = vmul.f32 %v9258_v24, %v4769_v29 }
0x1b81   : > { %4780 = vrot.lane.b32.xlu0 %v4775_v26, %s9795_s3 }
0x1b82   : > { %4778 = vrot.lane.b32.xlu1 %v4774_v33, %s9795_s3  ;;  %v4311_v63 = vpop.permute.xlu0 %4310 }
0x1b83   : > { %v10985_v7 = vadd.f32 %v4311_v63, %v4295_v51  ;;  %v4309_v21 = vpop.permute.xlu1 %4308 }
0x1b84   : > { %v10987_v28 = vadd.f32 %v4309_v21, %v4294_v22 }
0x1b85   : > { %9259 = vtanh.f32 %v10985_v7 }
0x1b86   : > { %9261 = vtanh.f32 %v10987_v28 }
0x1b8f   : > { %v9260_v2 = vpop.eup %9259 }
0x1b90   : > { %v9262_v20 = vpop.eup %9261  ;;  %4322 = vrot.lane.b32.xlu0 %v9260_v2, %s9794_s29 }
0x1b91   : > { %4320 = vrot.lane.b32.xlu1 %v9262_v20, %s9794_s29 }
0x1bf3   : > { %v4781_v62 = vpop.permute.xlu0 %4780 }
0x1bf4   : > { %v10995_v31 = vadd.f32 %v4781_v62, %v4765_v44  ;;  %v4779_v6 = vpop.permute.xlu1 %4778 }
0x1bf5   : > { %v10997_v58 = vadd.f32 %v4779_v6, %v4764_v45 }
0x1bf6   : > { %9263 = vtanh.f32 %v10995_v31 }
0x1bf7   : > { %9265 = vtanh.f32 %v10997_v58 }
0x1bf8   : > { %9267 = vtanh.f32 %v4624_v41 }
0x1bf9   : > { %9269 = vtanh.f32 %v4623_v34 }
0x1bfa   : > { %9271 = vpow2.f32 %v7369_v10 }
0x1bfb   : > { %9273 = vpow2.f32 %v7368_v54 }
0x1c00   : > { %v9264_v4 = vpop.eup %9263 }
0x1c01   : > { %v9266_v55 = vpop.eup %9265  ;;  %4792 = vrot.lane.b32.xlu0 %v9264_v4, %s9794_s29 }
0x1c02   : > { %4790 = vrot.lane.b32.xlu1 %v9266_v55, %s9794_s29  ;;  %v4323_v0 = vpop.permute.xlu0 %4322  ;;  %v9268_v40 = vpop.eup %9267 }
0x1c03   : > { %v4327_v15 = vmul.f32 %v9248_v56, %v4323_v0  ;;  %v4321_v14 = vpop.permute.xlu1 %4320  ;;  %v1071_v56 = vld [vmem:[%s10163_s17 + $0x58] sm:$0xff]  ;;  %v9270_v9 = vpop.eup %9269 }
0x1c04   : > { %v4326_v19 = vmul.f32 %v9250_v57, %v4321_v14  ;;  %v9272_v26 = vpop.eup %9271 }
0x1c05   : > { %4802 = vrot.lane.b32.xlu0 %v4327_v15, %s9795_s3  ;;  %v9274_v29 = vpop.eup %9273  ;;  %v4632_v22 = vadd.f32 1.0, %v9272_v26 }
0x1c06   : > { %4800 = vrot.lane.b32.xlu1 %v4326_v19, %s9795_s3  ;;  %v4631_v20 = vadd.f32 1.0, %v9274_v29 }
0x1c73   : > { %v4793_v32 = vpop.permute.xlu0 %4792 }
0x1c74   : > { %v4797_v37 = vmul.f32 %v9256_v3, %v4793_v32  ;;  %v4791_v60 = vpop.permute.xlu1 %4790 }
0x1c75   : > { %v4796_v12 = vmul.f32 %v9258_v24, %v4791_v60 }
0x1c76   : > { %4887 = vrot.lane.b32.xlu0 %v4797_v37, %s9795_s3 }
0x1c77   : > { %4885 = vrot.lane.b32.xlu1 %v4796_v12, %s9795_s3  ;;  %v4803_v53 = vpop.permute.xlu0 %4802 }
0x1c78   : > { %v4801_v57 = vpop.permute.xlu1 %4800 }
0x1c79   : > { %8152 = vmatprep.mubr.msk.f32.mxu1 %vm866_vm0, %v4801_v57 }
0x1c7a   : > { %1134 = vperm.xlu0 %8945, %v1071_v56   ;;  %8153 = vmatmul.mubr.msk.f32.vlgmr.msra.gmra.mrb[20].mxu1 %vm866_vm0, %v4803_v53 }
0x1c7b   : > { %1129 = vperm.xlu1 %8946, %v1070_v61   ;;  %8620 = vmatpush3.bf16.msra.mxu1 %v10252_v30 }
0x1c7c   : > { %8622 = vmatprep.subr.bf16.mxu1 %v10257_v35 }
0x1c7e   : > { %4645 = vrot.lane.b32.xlu0 %v9268_v40, %s9794_s29 }
0x1c7f   : > { %4643 = vrot.lane.b32.xlu1 %v9270_v9, %s9794_s29  ;;  %8624 = vmatpush3.bf16.msra.mxu1 %v10257_v35 }
0x1c80   : > { %8626 = vmatprep.subr.bf16.mxu1 %v10270_v39 }
0x1ce8   : > { %v11023_v48 = vpop.permute.xlu0 %4887 }
0x1ce9   : > { %v11021_v16 = vpop.permute.xlu1 %4885 }
0x1cea   : > { %8163 = vmatprep.mubr.msk.f32.mxu1 %vm866_vm0, %v11021_v16 }
0x1ceb   : > { %8164 = vmatmul.mubr.msk.f32.vlgmr.msra.gmra.mrb[20].mxu1 %vm866_vm0, %v11023_v48 }
0x1cec   : > { %8628 = vmatpush3.bf16.msra.mxu1 %v10270_v39  ;;  %8174 = vmatprep.mubr.msk.f32.mxu1 %vm866_vm0, %v10951_v13 }
0x1ced   : > { %8630 = vmatprep.subr.bf16.mxu1 %v10286_v52 }
0x1cf0   : > { %8632 = vmatpush3.bf16.msra.mxu1 %v10286_v52 }
0x1cf1   : > { %8658 = vmatprep.subr.bf16.mxu1 %v10245_v25 }
0x1cf3   : > { %8175 = vmatmul.mubr.msk.f32.vlgmr.msra.gmra.mrb[22].mxu1 %vm866_vm0, %v10953_v36 }
0x1cf4   : > { %8660 = vmatpush3.bf16.msra.mxu1 %v10245_v25 }
0x1cf5   : > { %8662 = vmatprep.subr.bf16.mxu1 %v10247_v27 }
0x1cf8   : > { %8664 = vmatpush3.bf16.msra.mxu1 %v10247_v27 }
0x1cf9   : > { %8666 = vmatprep.subr.bf16.mxu1 %v10252_v30  ;;  %v1135_v13 = vpop.permute.xlu0 %1134 }
0x1cfa   : > { %v1130_v3 = vpop.permute.xlu1 %1129  ;;  %v1174_v36 = vmul.f32 %v10753_v5, %v1135_v13 }
0x1cfb   : > { %v1173_v24 = vmul.f32 %v10753_v5, %v1130_v3 }
0x1cfc   : > { %v1197_v33 = vadd.f32 %v10760_v17, %v1174_v36 }
0x1cfd   : > { %v1196_v63 = vadd.f32 %v10760_v17, %v1173_v24  ;;  %v4646_v45 = vpop.permute.xlu0 %4645 }
0x1cfe   : > { %v4644_v5 = vpop.permute.xlu1 %4643 }
0x1dbe   : > { %v11041_v18 = vpop.f32.mrb[20].mxu1 }
0x1dbf   : > { %v11043_v11 = vpop.f32.mrb[21].mxu1 }
0x1dc6   : > { %v8176_v51 = vpop.f32.mrb[22].mxu1 }
0x1dc7   : > { %v5094_v21 = vadd.f32 %v8176_v51, %v1197_v33  ;;  %v5084_v2 = vpop.f32.mrb[23].mxu1 }
0x1dc8   : > { %v5093_v44 = vadd.f32 %v5084_v2, %v1196_v63 }
0x1dc9   : > { %9275 = vtanh.f32 %v5094_v21  ;;  %v7383_v15 = vmul.f32 -1.442695, %v5094_v21 }
0x1dca   : > { %9277 = vtanh.f32 %v5093_v44  ;;  %v7382_v14 = vmul.f32 -1.442695, %v5093_v44 }
0x1dcb   : > { %9279 = vrcp.f32 %v4632_v22 }
0x1dcc   : > { %9281 = vrcp.f32 %v4631_v20  ;;  %v4968_v20 = vadd.f32 %v10795_v1, %v11043_v11 }
0x1dcd   : > { %9283 = vpow2.f32 %v7383_v15 }
0x1dce   : > { %9285 = vpow2.f32 %v7382_v14 }
0x1dd3   : > { %v9276_v62 = vpop.eup %9275 }
0x1dd4   : > { %v9278_v6 = vpop.eup %9277  ;;  %5115 = vrot.lane.b32.xlu0 %v9276_v62, %s9794_s29 }
0x1dd5   : > { %v9280_v4 = vpop.eup %9279  ;;  %5113 = vrot.lane.b32.xlu1 %v9278_v6, %s9794_s29 }
0x1dd6   : > { %v9282_v55 = vpop.eup %9281  ;;  %v4650_v17 = vmul.f32 %v9280_v4, %v4646_v45  ;;  %v4640_v53 = vmul.f32 %v9280_v4, %v10917_v59 }
0x1dd7   : > { %v4649_v0 = vmul.f32 %v9282_v55, %v4644_v5  ;;  %v9284_v19 = vpop.eup %9283  ;;  %v4639_v9 = vmul.f32 %v9282_v55, %v10919_v23 }
0x1dd8   : > { %4655 = vrot.lane.b32.xlu0 %v4650_v17, %s9795_s3  ;;  %v9286_v41 = vpop.eup %9285  ;;  %v5102_v34 = vadd.f32 1.0, %v9284_v19 }
0x1dd9   : > { %4653 = vrot.lane.b32.xlu1 %v4649_v0, %s9795_s3  ;;  %v5101_v32 = vadd.f32 1.0, %v9286_v41  ;;  %v7378_v0 = vmul.f32 -1.442695, %v4968_v20 }
0x1dda   : > { %9287 = vrcp.f32 %v5102_v34  ;;  %v11118_v34 = vld [vmem:[%s11547_s4] ss:$0 sm:$0xff] }
0x1ddb   : > { %9289 = vrcp.f32 %v5101_v32 }
0x1de4   : > { %v9288_v37 = vpop.eup %9287 }
0x1de5   : > { %v9290_v12 = vpop.eup %9289  ;;  %v5110_v59 = vmul.f32 %v9288_v37, %v10927_v49 }
0x1de6   : > { %v5109_v23 = vmul.f32 %v9290_v12, %v10929_v8  ;;  %v4969_v8 = vadd.f32 %v10795_v1, %v11041_v18 }
0x1de8   : > { %v7379_v11 = vmul.f32 -1.442695, %v4969_v8 }
0x1e46   : > { %v5116_v60 = vpop.permute.xlu0 %5115 }
0x1e47   : > { %v5120_v56 = vmul.f32 %v9288_v37, %v5116_v60  ;;  %v5114_v57 = vpop.permute.xlu1 %5113 }
0x1e48   : > { %v5119_v61 = vmul.f32 %v9290_v12, %v5114_v57 }
0x1e49   : > { %5125 = vrot.lane.b32.xlu0 %v5120_v56, %s9795_s3 }
0x1e4a   : > { %5123 = vrot.lane.b32.xlu1 %v5119_v61, %s9795_s3  ;;  %v4656_v40 = vpop.permute.xlu0 %4655 }
0x1e4b   : > { %v11057_v10 = vadd.f32 %v4656_v40, %v4640_v53  ;;  %v4654_v54 = vpop.permute.xlu1 %4653 }
0x1e4c   : > { %v11059_v13 = vadd.f32 %v4654_v54, %v4639_v9 }
0x1e4d   : > { %9291 = vtanh.f32 %v11057_v10 }
0x1e4e   : > { %9293 = vtanh.f32 %v11059_v13 }
0x1e57   : > { %v9292_v3 = vpop.eup %9291 }
0x1e58   : > { %v9294_v36 = vpop.eup %9293  ;;  %4667 = vrot.lane.b32.xlu0 %v9292_v3, %s9794_s29 }
0x1e59   : > { %4665 = vrot.lane.b32.xlu1 %v9294_v36, %s9794_s29 }
0x1ebb   : > { %v5126_v24 = vpop.permute.xlu0 %5125 }
0x1ebc   : > { %v11067_v26 = vadd.f32 %v5126_v24, %v5110_v59  ;;  %v5124_v29 = vpop.permute.xlu1 %5123 }
0x1ebd   : > { %v11069_v33 = vadd.f32 %v5124_v29, %v5109_v23 }
0x1ebe   : > { %9295 = vtanh.f32 %v11067_v26 }
0x1ebf   : > { %9297 = vtanh.f32 %v11069_v33 }
0x1ec0   : > { %9299 = vtanh.f32 %v4969_v8 }
0x1ec1   : > { %9301 = vtanh.f32 %v4968_v20 }
0x1ec2   : > { %9303 = vpow2.f32 %v7379_v11 }
0x1ec3   : > { %9305 = vpow2.f32 %v7378_v0 }
0x1ec8   : > { %v9296_v51 = vpop.eup %9295 }
0x1ec9   : > { %v9298_v63 = vpop.eup %9297  ;;  %5137 = vrot.lane.b32.xlu0 %v9296_v51, %s9794_s29 }
0x1eca   : > { %5135 = vrot.lane.b32.xlu1 %v9298_v63, %s9794_s29  ;;  %v4668_v22 = vpop.permute.xlu0 %4667 }
0x1ecb   : > { %v4672_v49 = vmul.f32 %v9280_v4, %v4668_v22  ;;  %v4666_v21 = vpop.permute.xlu1 %4665  ;;  %v9300_v4 = vpop.eup %9299 }
0x1ecc   : > { %v4671_v2 = vmul.f32 %v9282_v55, %v4666_v21  ;;  %v9302_v17 = vpop.eup %9301 }
0x1ecd   : > { %5147 = vrot.lane.b32.xlu0 %v4672_v49, %s9795_s3  ;;  %v9304_v14 = vpop.eup %9303 }
0x1ece   : > { %5145 = vrot.lane.b32.xlu1 %v4671_v2, %s9795_s3  ;;  %v9306_v19 = vpop.eup %9305 }
0x1ecf   : > { %v4976_v60 = vadd.f32 1.0, %v9306_v19 }
0x1f3b   : > { %v5138_v44 = vpop.permute.xlu0 %5137 }
0x1f3c   : > { %v5142_v62 = vmul.f32 %v9288_v37, %v5138_v44  ;;  %v5136_v45 = vpop.permute.xlu1 %5135 }
0x1f3d   : > { %v5141_v6 = vmul.f32 %v9290_v12, %v5136_v45 }
0x1f3e   : > { %5232 = vrot.lane.b32.xlu0 %v5142_v62, %s9795_s3 }
0x1f3f   : > { %5230 = vrot.lane.b32.xlu1 %v5141_v6, %s9795_s3  ;;  %v5148_v55 = vpop.permute.xlu0 %5147 }
0x1f40   : > { %v5146_v5 = vpop.permute.xlu1 %5145 }
0x1f41   : > { %8185 = vmatprep.mubr.msk.f32.mxu0 %vm866_vm0, %v5146_v5 }
0x1f42   : > { %4990 = vrot.lane.b32.xlu0 %v9300_v4, %s9794_s29  ;;  %8186 = vmatmul.mubr.msk.f32.vlgmr.msra.gmra.mrb[26].mxu0 %vm866_vm0, %v5148_v55 }
0x1f43   : > { %4988 = vrot.lane.b32.xlu1 %v9302_v17, %s9794_s29  ;;  %8644 = vmatpush3.bf16.msra.mxu0 %v10338_v46 }
0x1f44   : > { %8646 = vmatprep.subr.bf16.mxu0 %v10342_v50 }
0x1f47   : > { %8648 = vmatpush3.bf16.msra.mxu0 %v10342_v50 }
0x1f48   : > { %8650 = vmatprep.subr.bf16.mxu0 %v10184_v42 }
0x1fb0   : > { %v11093_v18 = vpop.permute.xlu0 %5232 }
0x1fb1   : > { %v11091_v1 = vpop.permute.xlu1 %5230 }
0x1fb2   : > { %8196 = vmatprep.mubr.msk.f32.mxu0 %vm866_vm0, %v11091_v1 }
0x1fb3   : > { %8197 = vmatmul.mubr.msk.f32.vlgmr.msra.gmra.mrb[26].mxu0 %vm866_vm0, %v11093_v18 }
0x1fb4   : > { %8652 = vmatpush3.bf16.msra.mxu0 %v10184_v42  ;;  %8207 = vmatprep.mubr.msk.f32.mxu0 %vm866_vm0, %v11021_v16  ;;  %v4991_v57 = vpop.permute.xlu0 %4990 }
0x1fb5   : > { %8654 = vmatprep.subr.bf16.mxu0 %v10189_v47  ;;  %v4989_v53 = vpop.permute.xlu1 %4988 }
0x1fb8   : > { %8656 = vmatpush3.bf16.msra.mxu0 %v10189_v47 }
0x1fb9   : > { %8682 = vmatprep.subr.bf16.mxu0 %v10328_v38 }
0x1fbb   : > { %8208 = vmatmul.mubr.msk.f32.vlgmr.msra.gmra.mrb[12].mxu0 %vm866_vm0, %v11023_v48  ;;  %v4977_v48 = vadd.f32 1.0, %v9304_v14 }
0x1fbc   : > { %8684 = vmatpush3.bf16.msra.mxu0 %v10328_v38 }
0x1fbd   : > { %8686 = vmatprep.subr.bf16.mxu0 %v10331_v43 }
0x1fc0   : > { %8688 = vmatpush3.bf16.msra.mxu0 %v10331_v43 }
0x1fc1   : > { %8690 = vmatprep.subr.bf16.mxu0 %v10338_v46 }
0x2086   : > { %v11111_v16 = vpop.f32.mrb[26].mxu0 }
0x2087   : > { %v11113_v15 = vpop.f32.mrb[27].mxu0 }
0x208e   : > { %v8209_v41 = vpop.f32.mrb[12].mxu0 }
0x208f   : > { %v8773_v32 = vadd.f32 %v11118_v34, %v8209_v41  ;;  %v5429_v37 = vpop.f32.mrb[13].mxu0 }
0x2090   : > { %v8774_v12 = vadd.f32 %v11118_v34, %v5429_v37  ;;  %v11153_v37 = vld [vmem:[%s11619_s26] ss:$0 sm:$0xff] }
0x2091   : > { %9307 = vtanh.f32 %v8773_v32  ;;  %v7393_v36 = vmul.f32 -1.442695, %v8773_v32 }
0x2092   : > { %9309 = vtanh.f32 %v8774_v12  ;;  %v7392_v59 = vmul.f32 -1.442695, %v8774_v12  ;;  %v5313_v12 = vadd.f32 %v11153_v37, %v11113_v15 }
0x2093   : > { %9311 = vrcp.f32 %v4977_v48 }
0x2094   : > { %9313 = vrcp.f32 %v4976_v60  ;;  %v5314_v60 = vadd.f32 %v11153_v37, %v11111_v16 }
0x2095   : > { %9315 = vpow2.f32 %v7393_v36 }
0x2096   : > { %9317 = vpow2.f32 %v7392_v59 }
0x209b   : > { %v9308_v56 = vpop.eup %9307 }
0x209c   : > { %v9310_v61 = vpop.eup %9309  ;;  %5460 = vrot.lane.b32.xlu0 %v9308_v56, %s9794_s29 }
0x209d   : > { %v9312_v40 = vpop.eup %9311  ;;  %5458 = vrot.lane.b32.xlu1 %v9310_v61, %s9794_s29 }
0x209e   : > { %v9314_v9 = vpop.eup %9313  ;;  %v4995_v54 = vmul.f32 %v9312_v40, %v4991_v57  ;;  %v4985_v20 = vmul.f32 %v9312_v40, %v10985_v7 }
0x209f   : > { %v4994_v3 = vmul.f32 %v9314_v9, %v4989_v53  ;;  %v9316_v24 = vpop.eup %9315  ;;  %v4984_v62 = vmul.f32 %v9314_v9, %v10987_v28 }
0x20a0   : > { %5000 = vrot.lane.b32.xlu0 %v4995_v54, %s9795_s3  ;;  %v9318_v23 = vpop.eup %9317  ;;  %v5447_v29 = vadd.f32 1.0, %v9316_v24  ;;  %v1072_v54 = vld [vmem:[%s10163_s17 + $0x60] sm:$0xff]  ;;  %v7389_v24 = vmul.f32 -1.442695, %v5314_v60 }
0x20a1   : > { %4998 = vrot.lane.b32.xlu1 %v4994_v3, %s9795_s3  ;;  %v5446_v51 = vadd.f32 1.0, %v9318_v23  ;;  %v7388_v23 = vmul.f32 -1.442695, %v5313_v12 }
0x20a2   : > { %9319 = vrcp.f32 %v5447_v29 }
0x20a3   : > { %9321 = vrcp.f32 %v5446_v51 }
0x20ac   : > { %v9320_v63 = vpop.eup %9319 }
0x20ad   : > { %v9322_v49 = vpop.eup %9321  ;;  %v5455_v7 = vmul.f32 %v9320_v63, %v10995_v31 }
0x20ae   : > { %v5454_v28 = vmul.f32 %v9322_v49, %v10997_v58 }
0x210e   : > { %v5461_v22 = vpop.permute.xlu0 %5460 }
0x210f   : > { %v5465_v21 = vmul.f32 %v9320_v63, %v5461_v22  ;;  %v5459_v2 = vpop.permute.xlu1 %5458  ;;  %v11195_v22 = vld [vmem:[#allocation10] ss:$0 sm:$0xff] }
0x2110   : > { %v5464_v8 = vmul.f32 %v9322_v49, %v5459_v2 }
0x2111   : > { %5470 = vrot.lane.b32.xlu0 %v5465_v21, %s9795_s3  ;;  %v11202_v21 = vld [vmem:[%s11616_s0] ss:$0 sm:$0xff] }
0x2112   : > { %5468 = vrot.lane.b32.xlu1 %v5464_v8, %s9795_s3  ;;  %v5001_v44 = vpop.permute.xlu0 %5000 }
0x2113   : > { %v11130_v45 = vadd.f32 %v5001_v44, %v4985_v20  ;;  %v4999_v6 = vpop.permute.xlu1 %4998 }
0x2114   : > { %v11132_v5 = vadd.f32 %v4999_v6, %v4984_v62 }
0x2115   : > { %9323 = vtanh.f32 %v11130_v45 }
0x2116   : > { %9325 = vtanh.f32 %v11132_v5 }
0x211f   : > { %v9324_v4 = vpop.eup %9323 }
0x2120   : > { %v9326_v55 = vpop.eup %9325  ;;  %5012 = vrot.lane.b32.xlu0 %v9324_v4, %s9794_s29 }
0x2121   : > { %5010 = vrot.lane.b32.xlu1 %v9326_v55, %s9794_s29 }
0x2183   : > { %v5471_v17 = vpop.permute.xlu0 %5470 }
0x2184   : > { %v11140_v11 = vadd.f32 %v5471_v17, %v5455_v7  ;;  %v5469_v0 = vpop.permute.xlu1 %5468 }
0x2185   : > { %v11142_v14 = vadd.f32 %v5469_v0, %v5454_v28 }
0x2186   : > { %9327 = vtanh.f32 %v11140_v11 }
0x2187   : > { %9329 = vtanh.f32 %v11142_v14 }
0x2188   : > { %9331 = vtanh.f32 %v5314_v60 }
0x2189   : > { %9333 = vtanh.f32 %v5313_v12 }
0x218a   : > { %9335 = vpow2.f32 %v7389_v24 }
0x218b   : > { %9337 = vpow2.f32 %v7388_v23 }
0x2190   : > { %v9328_v19 = vpop.eup %9327 }
0x2191   : > { %v9330_v41 = vpop.eup %9329  ;;  %5482 = vrot.lane.b32.xlu0 %v9328_v19, %s9794_s29 }
0x2192   : > { %5480 = vrot.lane.b32.xlu1 %v9330_v41, %s9794_s29  ;;  %v5013_v48 = vpop.permute.xlu0 %5012  ;;  %v9332_v16 = vpop.eup %9331 }
0x2193   : > { %v5017_v31 = vmul.f32 %v9312_v40, %v5013_v48  ;;  %v5011_v32 = vpop.permute.xlu1 %5010  ;;  %v1073_v40 = vld [vmem:[%s10163_s17 + $0x68] sm:$0xff]  ;;  %v9334_v15 = vpop.eup %9333 }
0x2194   : > { %v5016_v58 = vmul.f32 %v9314_v9, %v5011_v32 }
0x2195   : > { %5492 = vrot.lane.b32.xlu0 %v5017_v31, %s9795_s3 }
0x2196   : > { %5490 = vrot.lane.b32.xlu1 %v5016_v58, %s9795_s3 }
0x2203   : > { %v5483_v56 = vpop.permute.xlu0 %5482 }
0x2204   : > { %v5487_v57 = vmul.f32 %v9320_v63, %v5483_v56  ;;  %v5481_v61 = vpop.permute.xlu1 %5480 }
0x2205   : > { %v5486_v53 = vmul.f32 %v9322_v49, %v5481_v61  ;;  %v9336_v49 = vpop.eup %9335 }
0x2206   : > { %5577 = vrot.lane.b32.xlu0 %v5487_v57, %s9795_s3  ;;  %v5322_v44 = vadd.f32 1.0, %v9336_v49 }
0x2207   : > { %5575 = vrot.lane.b32.xlu1 %v5486_v53, %s9795_s3  ;;  %v5493_v3 = vpop.permute.xlu0 %5492 }
0x2208   : > { %v5491_v9 = vpop.permute.xlu1 %5490 }
0x2209   : > { %8218 = vmatprep.mubr.msk.f32.mxu1 %vm866_vm0, %v5491_v9 }
0x220a   : > { %1144 = vperm.xlu0 %8945, %v1073_v40   ;;  %8219 = vmatmul.mubr.msk.f32.vlgmr.msra.gmra.mrb[24].mxu1 %vm866_vm0, %v5493_v3 }
0x220b   : > { %1139 = vperm.xlu1 %8946, %v1072_v54   ;;  %8668 = vmatpush3.bf16.msra.mxu1 %v10252_v30 }
0x220c   : > { %8670 = vmatprep.subr.bf16.mxu1 %v10257_v35 }
0x220e   : > { %5335 = vrot.lane.b32.xlu0 %v9332_v16, %s9794_s29 }
0x220f   : > { %5333 = vrot.lane.b32.xlu1 %v9334_v15, %s9794_s29  ;;  %8672 = vmatpush3.bf16.msra.mxu1 %v10257_v35 }
0x2210   : > { %8674 = vmatprep.subr.bf16.mxu1 %v10270_v39 }
0x2278   : > { %v11173_v59 = vpop.permute.xlu0 %5577 }
0x2279   : > { %v11171_v36 = vpop.permute.xlu1 %5575 }
0x227a   : > { %8229 = vmatprep.mubr.msk.f32.mxu1 %vm866_vm0, %v11171_v36 }
0x227b   : > { %8230 = vmatmul.mubr.msk.f32.vlgmr.msra.gmra.mrb[24].mxu1 %vm866_vm0, %v11173_v59 }
0x227c   : > { %8676 = vmatpush3.bf16.msra.mxu1 %v10270_v39  ;;  %8240 = vmatprep.mubr.msk.f32.mxu1 %vm866_vm0, %v11091_v1 }
0x227d   : > { %8678 = vmatprep.subr.bf16.mxu1 %v10286_v52 }
0x2280   : > { %8680 = vmatpush3.bf16.msra.mxu1 %v10286_v52 }
0x2281   : > { %8706 = vmatprep.subr.bf16.mxu1 %v10245_v25 }
0x2283   : > { %8241 = vmatmul.mubr.msk.f32.vlgmr.msra.gmra.mrb[26].mxu1 %vm866_vm0, %v11093_v18 }
0x2284   : > { %8708 = vmatpush3.bf16.msra.mxu1 %v10245_v25 }
0x2285   : > { %8710 = vmatprep.subr.bf16.mxu1 %v10247_v27 }
0x2288   : > { %8712 = vmatpush3.bf16.msra.mxu1 %v10247_v27  ;;  %v9338_v27 = vpop.eup %9337 }
0x2289   : > { %8714 = vmatprep.subr.bf16.mxu1 %v10252_v30  ;;  %v1145_v1 = vpop.permute.xlu0 %1144  ;;  %v5321_v4 = vadd.f32 1.0, %v9338_v27 }
0x228a   : > { %v1140_v51 = vpop.permute.xlu1 %1139  ;;  %v1176_v25 = vmul.f32 %v11195_v22, %v1145_v1 }
0x228b   : > { %v1175_v18 = vmul.f32 %v11195_v22, %v1140_v51 }
0x228c   : > { %v1199_v2 = vadd.f32 %v11202_v21, %v1176_v25 }
0x228d   : > { %v1198_v20 = vadd.f32 %v11202_v21, %v1175_v18  ;;  %v5336_v17 = vpop.permute.xlu0 %5335 }
0x228e   : > { %v5334_v0 = vpop.permute.xlu1 %5333 }
0x234e   : > { %v11191_v29 = vpop.f32.mrb[24].mxu1 }
0x234f   : > { %v11193_v63 = vpop.f32.mrb[25].mxu1 }
0x2356   : > { %v8242_v8 = vpop.f32.mrb[26].mxu1 }
0x2357   : > { %v5784_v62 = vadd.f32 %v8242_v8, %v1199_v2  ;;  %v5774_v6 = vpop.f32.mrb[27].mxu1 }
0x2358   : > { %v5783_v55 = vadd.f32 %v5774_v6, %v1198_v20 }
0x2359   : > { %9339 = vtanh.f32 %v5784_v62  ;;  %v7403_v32 = vmul.f32 -1.442695, %v5784_v62 }
0x235a   : > { %9341 = vtanh.f32 %v5783_v55  ;;  %v7402_v58 = vmul.f32 -1.442695, %v5783_v55 }
0x235b   : > { %9343 = vrcp.f32 %v5322_v44 }
0x235c   : > { %9345 = vrcp.f32 %v5321_v4 }
0x235d   : > { %9347 = vpow2.f32 %v7403_v32 }
0x235e   : > { %9349 = vpow2.f32 %v7402_v58 }
0x2363   : > { %v9340_v7 = vpop.eup %9339 }
0x2364   : > { %v9342_v28 = vpop.eup %9341  ;;  %5805 = vrot.lane.b32.xlu0 %v9340_v7, %s9794_s29 }
0x2365   : > { %v9344_v19 = vpop.eup %9343  ;;  %5803 = vrot.lane.b32.xlu1 %v9342_v28, %s9794_s29 }
0x2366   : > { %v9346_v41 = vpop.eup %9345  ;;  %v5340_v48 = vmul.f32 %v9344_v19, %v5336_v17  ;;  %v5330_v16 = vmul.f32 %v9344_v19, %v11057_v10 }
0x2367   : > { %v5339_v31 = vmul.f32 %v9346_v41, %v5334_v0  ;;  %v9348_v60 = vpop.eup %9347  ;;  %v5329_v24 = vmul.f32 %v9346_v41, %v11059_v13 }
0x2368   : > { %5345 = vrot.lane.b32.xlu0 %v5340_v48, %s9795_s3  ;;  %v9350_v12 = vpop.eup %9349  ;;  %v5792_v56 = vadd.f32 1.0, %v9348_v60 }
0x2369   : > { %5343 = vrot.lane.b32.xlu1 %v5339_v31, %s9795_s3  ;;  %v5791_v57 = vadd.f32 1.0, %v9350_v12 }
0x236a   : > { %9351 = vrcp.f32 %v5792_v56 }
0x236b   : > { %9353 = vrcp.f32 %v5791_v57 }
0x2374   : > { %v9352_v61 = vpop.eup %9351 }
0x2375   : > { %v9354_v40 = vpop.eup %9353  ;;  %v5800_v10 = vmul.f32 %v9352_v61, %v11067_v26 }
0x2376   : > { %v5799_v13 = vmul.f32 %v9354_v40, %v11069_v33  ;;  %v11237_v33 = vld [vmem:[%s11617_s19] ss:$0 sm:$0xff] }
0x2377   : > { %v5659_v55 = vadd.f32 %v11237_v33, %v11191_v29  ;;  %v5658_v7 = vadd.f32 %v11237_v33, %v11193_v63 }
0x2379   : > { %v7398_v58 = vmul.f32 -1.442695, %v5658_v7 }
0x23d6   : > { %v5806_v53 = vpop.permute.xlu0 %5805 }
0x23d7   : > { %v5810_v9 = vmul.f32 %v9352_v61, %v5806_v53  ;;  %v5804_v54 = vpop.permute.xlu1 %5803 }
0x23d8   : > { %v5809_v3 = vmul.f32 %v9354_v40, %v5804_v54 }
0x23d9   : > { %5815 = vrot.lane.b32.xlu0 %v5810_v9, %s9795_s3 }
0x23da   : > { %5813 = vrot.lane.b32.xlu1 %v5809_v3, %s9795_s3  ;;  %v5346_v15 = vpop.permute.xlu0 %5345 }
0x23db   : > { %v11214_v23 = vadd.f32 %v5346_v15, %v5330_v16  ;;  %v5344_v1 = vpop.permute.xlu1 %5343 }
0x23dc   : > { %v11216_v51 = vadd.f32 %v5344_v1, %v5329_v24 }
0x23dd   : > { %9355 = vtanh.f32 %v11214_v23 }
0x23de   : > { %9357 = vtanh.f32 %v11216_v51 }
0x23e7   : > { %v9356_v25 = vpop.eup %9355 }
0x23e8   : > { %v9358_v18 = vpop.eup %9357  ;;  %5357 = vrot.lane.b32.xlu0 %v9356_v25, %s9794_s29 }
0x23e9   : > { %5355 = vrot.lane.b32.xlu1 %v9358_v18, %s9794_s29 }
0x244b   : > { %v5816_v49 = vpop.permute.xlu0 %5815 }
0x244c   : > { %v11224_v27 = vadd.f32 %v5816_v49, %v5800_v10  ;;  %v5814_v2 = vpop.permute.xlu1 %5813 }
0x244d   : > { %v11226_v8 = vadd.f32 %v5814_v2, %v5799_v13 }
0x244e   : > { %9359 = vtanh.f32 %v11224_v27 }
0x244f   : > { %9361 = vtanh.f32 %v11226_v8 }
0x2450   : > { %9363 = vtanh.f32 %v5659_v55 }
0x2451   : > { %9365 = vtanh.f32 %v5658_v7 }
0x2458   : > { %v9360_v20 = vpop.eup %9359 }
0x2459   : > { %v9362_v44 = vpop.eup %9361  ;;  %5827 = vrot.lane.b32.xlu0 %v9360_v20, %s9794_s29 }
0x245a   : > { %5825 = vrot.lane.b32.xlu1 %v9362_v44, %s9794_s29  ;;  %v5358_v62 = vpop.permute.xlu0 %5357  ;;  %v9364_v48 = vpop.eup %9363 }
0x245b   : > { %v5362_v26 = vmul.f32 %v9344_v19, %v5358_v62  ;;  %v5356_v6 = vpop.permute.xlu1 %5355  ;;  %v9366_v32 = vpop.eup %9365 }
0x245c   : > { %v5361_v4 = vmul.f32 %v9346_v41, %v5356_v6 }
0x245d   : > { %5837 = vrot.lane.b32.xlu0 %v5362_v26, %s9795_s3 }
0x245e   : > { %5835 = vrot.lane.b32.xlu1 %v5361_v4, %s9795_s3 }
0x24cb   : > { %v5828_v17 = vpop.permute.xlu0 %5827 }
0x24cc   : > { %v5832_v28 = vmul.f32 %v9352_v61, %v5828_v17  ;;  %v5826_v0 = vpop.permute.xlu1 %5825 }
0x24cd   : > { %v5831_v19 = vmul.f32 %v9354_v40, %v5826_v0 }
0x24ce   : > { %5922 = vrot.lane.b32.xlu0 %v5832_v28, %s9795_s3 }
0x24cf   : > { %5920 = vrot.lane.b32.xlu1 %v5831_v19, %s9795_s3  ;;  %v5838_v31 = vpop.permute.xlu0 %5837 }
0x24d0   : > { %v5836_v41 = vpop.permute.xlu1 %5835 }
0x24d1   : > { %8251 = vmatprep.mubr.msk.f32.mxu0 %vm866_vm0, %v5836_v41 }
0x24d2   : > { %5680 = vrot.lane.b32.xlu0 %v9364_v48, %s9794_s29  ;;  %8252 = vmatmul.mubr.msk.f32.vlgmr.msra.gmra.mrb[28].mxu0 %vm866_vm0, %v5838_v31 }
0x24d3   : > { %5678 = vrot.lane.b32.xlu1 %v9366_v32, %s9794_s29  ;;  %8692 = vmatpush3.bf16.msra.mxu0 %v10338_v46 }
0x24d4   : > { %8694 = vmatprep.subr.bf16.mxu0 %v10342_v50 }
0x24d7   : > { %8696 = vmatpush3.bf16.msra.mxu0 %v10342_v50 }
0x24d8   : > { %8698 = vmatprep.subr.bf16.mxu0 %v10184_v42 }
0x2540   : > { %v11255_v63 = vpop.permute.xlu0 %5922 }
0x2541   : > { %v11253_v29 = vpop.permute.xlu1 %5920 }
0x2542   : > { %8262 = vmatprep.mubr.msk.f32.mxu0 %vm866_vm0, %v11253_v29 }
0x2543   : > { %8263 = vmatmul.mubr.msk.f32.vlgmr.msra.gmra.mrb[28].mxu0 %vm866_vm0, %v11255_v63 }
0x2544   : > { %8700 = vmatpush3.bf16.msra.mxu0 %v10184_v42  ;;  %8273 = vmatprep.mubr.msk.f32.mxu0 %vm866_vm0, %v11171_v36  ;;  %v7399_v42 = vmul.f32 -1.442695, %v5659_v55  ;;  %v5681_v40 = vpop.permute.xlu0 %5680 }
0x2545   : > { %8702 = vmatprep.subr.bf16.mxu0 %v10189_v47  ;;  %v5679_v54 = vpop.permute.xlu1 %5678 }
0x2546   : > { %9367 = vpow2.f32 %v7399_v42 }
0x2547   : > { %9369 = vpow2.f32 %v7398_v58 }
0x2548   : > { %8704 = vmatpush3.bf16.msra.mxu0 %v10189_v47 }
0x2549   : > { %8730 = vmatprep.subr.bf16.mxu0 %v10328_v38 }
0x254b   : > { %8274 = vmatmul.mubr.msk.f32.vlgmr.msra.gmra.mrb[14].mxu0 %vm866_vm0, %v11173_v59 }
0x254c   : > { %8732 = vmatpush3.bf16.msra.mxu0 %v10328_v38 }
0x254d   : > { %8734 = vmatprep.subr.bf16.mxu0 %v10331_v43 }
0x2550   : > { %8736 = vmatpush3.bf16.msra.mxu0 %v10331_v43  ;;  %v9368_v60 = vpop.eup %9367 }
0x2551   : > { %8738 = vmatprep.subr.bf16.mxu0 %v10338_v46  ;;  %v9370_v12 = vpop.eup %9369  ;;  %v5667_v59 = vadd.f32 1.0, %v9368_v60 }
0x2552   : > { %v5666_v61 = vadd.f32 1.0, %v9370_v12 }
0x2616   : > { %v11273_v36 = vpop.f32.mrb[28].mxu0 }
0x2617   : > { %v11275_v47 = vpop.f32.mrb[29].mxu0 }
0x261e   : > { %v8275_v56 = vpop.f32.mrb[14].mxu0 }
0x261f   : > { %v8775_v38 = vadd.f32 %v11118_v34, %v8275_v56  ;;  %v6119_v57 = vpop.f32.mrb[15].mxu0 }
0x2620   : > { %v8776_v43 = vadd.f32 %v11118_v34, %v6119_v57 }
0x2621   : > { %9371 = vtanh.f32 %v8775_v38  ;;  %v7413_v34 = vmul.f32 -1.442695, %v8775_v38 }
0x2622   : > { %9373 = vtanh.f32 %v8776_v43  ;;  %v7412_v1 = vmul.f32 -1.442695, %v8776_v43 }
0x2623   : > { %9375 = vrcp.f32 %v5667_v59  ;;  %v6003_v59 = vadd.f32 %v11153_v37, %v11275_v47 }
0x2624   : > { %9377 = vrcp.f32 %v5666_v61 }
0x2625   : > { %9379 = vpow2.f32 %v7413_v34 }
0x2626   : > { %9381 = vpow2.f32 %v7412_v1 }
0x262b   : > { %v9372_v53 = vpop.eup %9371 }
0x262c   : > { %v9374_v9 = vpop.eup %9373  ;;  %6150 = vrot.lane.b32.xlu0 %v9372_v53, %s9794_s29  ;;  %v1075_v53 = vld [vmem:[%s10163_s17 + $0x78] sm:$0xff] }
0x262d   : > { %v9376_v3 = vpop.eup %9375  ;;  %6148 = vrot.lane.b32.xlu1 %v9374_v9, %s9794_s29  ;;  %v1074_v9 = vld [vmem:[%s10163_s17 + $0x70] sm:$0xff]  ;;  %s11402_s17 = sshll.u32 %s10158_s20, 4 }
0x262e   : > { %v9378_v16 = vpop.eup %9377  ;;  %v5685_v15 = vmul.f32 %v9376_v3, %v5681_v40  ;;  %v5675_v6 = vmul.f32 %v9376_v3, %v11130_v45  ;;  %s819_s11 = scalar_lea.vmem [#allocation15], %s11402_s17 }
0x262f   : > { %v5684_v24 = vmul.f32 %v9378_v16, %v5679_v54  ;;  %v9380_v25 = vpop.eup %9379  ;;  %v5674_v55 = vmul.f32 %v9378_v16, %v11132_v5  ;;  %s6991_s13 = sshll.u32 %s819_s11, 4  ;;  %s11413_s13 = int_to_ptr.vmem [resolvable:$true] %s6991_s13 }
0x2630   : > { %5690 = vrot.lane.b32.xlu0 %v5685_v15, %s9795_s3  ;;  %v9382_v18 = vpop.eup %9381  ;;  %v6137_v10 = vadd.f32 1.0, %v9380_v25  ;;  %s9645_s27 = scalar_lea.vmem %s11413_s13, 256 }
0x2631   : > { %5688 = vrot.lane.b32.xlu1 %v5684_v24, %s9795_s3  ;;  %v6136_v49 = vadd.f32 1.0, %v9382_v18  ;;  %p9646_p6 = scmp.ne.s32.totalorder %s11413_s13, %s9645_s27 }
0x2632   : > { %9383 = vrcp.f32 %v6137_v10 }
0x2633   : > { %9385 = vrcp.f32 %v6136_v49  ;;  %p9647_p2 = pnand %p9646_p6, %p11623_p10 }
0x2635   : > { %p9648_p0 = pneg %p9647_p2 }
0x263c   : > { %v9384_v13 = vpop.eup %9383 }
0x263d   : > { %v9386_v20 = vpop.eup %9385  ;;  %v6145_v45 = vmul.f32 %v9384_v13, %v11140_v11 }
0x263e   : > { %v6144_v5 = vmul.f32 %v9386_v20, %v11142_v14  ;;  %v6004_v14 = vadd.f32 %v11153_v37, %v11273_v36 }
0x269e   : > { %v6151_v2 = vpop.permute.xlu0 %6150 }
0x269f   : > { %v6155_v44 = vmul.f32 %v9384_v13, %v6151_v2  ;;  %v6149_v62 = vpop.permute.xlu1 %6148 }
0x26a0   : > { %v6154_v26 = vmul.f32 %v9386_v20, %v6149_v62 }
0x26a1   : > { %6160 = vrot.lane.b32.xlu0 %v6155_v44, %s9795_s3 }
0x26a2   : > { %6158 = vrot.lane.b32.xlu1 %v6154_v26, %s9795_s3  ;;  %v5691_v4 = vpop.permute.xlu0 %5690 }
0x26a3   : > { %v11287_v7 = vadd.f32 %v5691_v4, %v5675_v6  ;;  %v5689_v17 = vpop.permute.xlu1 %5688 }
0x26a4   : > { %v11289_v28 = vadd.f32 %v5689_v17, %v5674_v55 }
0x26a5   : > { %9387 = vtanh.f32 %v11287_v7 }
0x26a6   : > { %9389 = vtanh.f32 %v11289_v28 }
0x26af   : > { %v9388_v0 = vpop.eup %9387 }
0x26b0   : > { %v9390_v19 = vpop.eup %9389  ;;  %5702 = vrot.lane.b32.xlu0 %v9388_v0, %s9794_s29 }
0x26b1   : > { %5700 = vrot.lane.b32.xlu1 %v9390_v19, %s9794_s29 }
0x2713   : > { %v6161_v41 = vpop.permute.xlu0 %6160 }
0x2714   : > { %v6165_v48 = vadd.f32 %v6161_v41, %v6145_v45  ;;  %v6159_v31 = vpop.permute.xlu1 %6158 }
0x2715   : > { %v6164_v32 = vadd.f32 %v6159_v31, %v6144_v5 }
0x2716   : > { %9391 = vtanh.f32 %v6165_v48 }
0x2717   : > { %9393 = vtanh.f32 %v6164_v32 }
0x2718   : > { %9395 = vtanh.f32 %v6004_v14 }
0x2719   : > { %9397 = vtanh.f32 %v6003_v59 }
0x2720   : > { %v9392_v42 = vpop.eup %9391 }
0x2721   : > { %v9394_v58 = vpop.eup %9393  ;;  %6172 = vrot.lane.b32.xlu0 %v9392_v42, %s9794_s29 }
0x2722   : > { %6170 = vrot.lane.b32.xlu1 %v9394_v58, %s9794_s29  ;;  %v5703_v60 = vpop.permute.xlu0 %5702  ;;  %v9396_v36 = vpop.eup %9395 }
0x2723   : > { %v5707_v12 = vmul.f32 %v9376_v3, %v5703_v60  ;;  %v5701_v56 = vpop.permute.xlu1 %5700  ;;  %v9398_v47 = vpop.eup %9397 }
0x2724   : > { %v5706_v11 = vmul.f32 %v9378_v16, %v5701_v56 }
0x2725   : > { %6182 = vrot.lane.b32.xlu0 %v5707_v12, %s9795_s3 }
0x2726   : > { %6180 = vrot.lane.b32.xlu1 %v5706_v11, %s9795_s3 }
0x2793   : > { %v6173_v38 = vpop.permute.xlu0 %6172 }
0x2794   : > { %v6177_v57 = vmul.f32 %v9384_v13, %v6173_v38  ;;  %v6171_v61 = vpop.permute.xlu1 %6170 }
0x2795   : > { %v6176_v43 = vmul.f32 %v9386_v20, %v6171_v61 }
0x2796   : > { %6267 = vrot.lane.b32.xlu0 %v6177_v57, %s9795_s3 }
0x2797   : > { %6265 = vrot.lane.b32.xlu1 %v6176_v43, %s9795_s3  ;;  %v6183_v54 = vpop.permute.xlu0 %6182 }
0x2798   : > { %v6181_v40 = vpop.permute.xlu1 %6180 }
0x2799   : > { %8284 = vmatprep.mubr.msk.f32.mxu1 %vm866_vm0, %v6181_v40 }
0x279a   : > { %1154 = vperm.xlu0 %8945, %v1075_v53   ;;  %8285 = vmatmul.mubr.msk.f32.vlgmr.msra.gmra.mrb[28].mxu1 %vm866_vm0, %v6183_v54 }
0x279b   : > { %1149 = vperm.xlu1 %8946, %v1074_v9   ;;  %8716 = vmatpush3.bf16.msra.mxu1 %v10252_v30  ;;  %v7409_v30 = vmul.f32 -1.442695, %v6004_v14 }
0x279c   : > { %8718 = vmatprep.subr.bf16.mxu1 %v10257_v35 }
0x279d   : > { %9399 = vpow2.f32 %v7409_v30 }
0x279e   : > { %6025 = vrot.lane.b32.xlu0 %v9396_v36, %s9794_s29 }
0x279f   : > { %6023 = vrot.lane.b32.xlu1 %v9398_v47, %s9794_s29  ;;  %8720 = vmatpush3.bf16.msra.mxu1 %v10257_v35  ;;  %v7408_v35 = vmul.f32 -1.442695, %v6003_v59 }
0x27a0   : > { %8722 = vmatprep.subr.bf16.mxu1 %v10270_v39 }
0x27a1   : > { %9401 = vpow2.f32 %v7408_v35 }
0x27a7   : > { %v9400_v25 = vpop.eup %9399 }
0x27a8   : > { %v6012_v49 = vadd.f32 1.0, %v9400_v25 }
0x27ab   : > { %v9402_v18 = vpop.eup %9401 }
0x27ac   : > { %v6011_v20 = vadd.f32 1.0, %v9402_v18 }
0x2808   : > { %v6268_v16 = vpop.permute.xlu0 %6267 }
0x2809   : > { %v6266_v3 = vpop.permute.xlu1 %6265 }
0x280a   : > { %8295 = vmatprep.mubr.msk.f32.mxu1 %vm866_vm0, %v6266_v3 }
0x280b   : > { %8296 = vmatmul.mubr.msk.f32.vlgmr.msra.gmra.mrb[28].mxu1 %vm866_vm0, %v6268_v16 }
0x280c   : > { %8724 = vmatpush3.bf16.msra.mxu1 %v10270_v39  ;;  %8306 = vmatprep.mubr.msk.f32.mxu1 %vm866_vm0, %v11253_v29 }
0x280d   : > { %8726 = vmatprep.subr.bf16.mxu1 %v10286_v52 }
0x2810   : > { %8728 = vmatpush3.bf16.msra.mxu1 %v10286_v52 }
0x2813   : > { %8307 = vmatmul.mubr.msk.f32.vlgmr.msra.gmra.mrb[30].mxu1 %vm866_vm0, %v11255_v63 }
0x2819   : > { %v1155_v15 = vpop.permute.xlu0 %1154 }
0x281a   : > { %v1150_v34 = vpop.permute.xlu1 %1149  ;;  %v1178_v39 = vmul.f32 %v11195_v22, %v1155_v15 }
0x281b   : > { %v1177_v29 = vmul.f32 %v11195_v22, %v1150_v34 }
0x281c   : > { %v1201_v52 = vadd.f32 %v11202_v21, %v1178_v39 }
0x281d   : > { %v1200_v63 = vadd.f32 %v11202_v21, %v1177_v29  ;;  %v6026_v26 = vpop.permute.xlu0 %6025 }
0x281e   : > { %v6024_v22 = vpop.permute.xlu1 %6023 }
0x28de   : > { %v11326_v24 = vpop.f32.mrb[28].mxu1 }
0x28df   : > { %v11328_v1 = vpop.f32.mrb[29].mxu1 }
0x28e6   : > { %v8308_v10 = vpop.f32.mrb[30].mxu1 }
0x28e7   : > { %v6474_v13 = vadd.f32 %v8308_v10, %v1201_v52  ;;  %v6464_v2 = vpop.f32.mrb[31].mxu1 }
0x28e8   : > { %v6473_v44 = vadd.f32 %v6464_v2, %v1200_v63 }
0x28e9   : > { %9403 = vtanh.f32 %v6474_v13  ;;  %v7423_v0 = vmul.f32 -1.442695, %v6474_v13  ;;  %v6349_v13 = vadd.f32 %v11237_v33, %v11326_v24 }
0x28ea   : > { %9405 = vtanh.f32 %v6473_v44  ;;  %v7422_v19 = vmul.f32 -1.442695, %v6473_v44 }
0x28eb   : > { %9407 = vrcp.f32 %v6012_v49 }
0x28ec   : > { %9409 = vrcp.f32 %v6011_v20 }
0x28ed   : > { %9411 = vpow2.f32 %v7423_v0 }
0x28ee   : > { %9413 = vpow2.f32 %v7422_v19 }
0x28f3   : > { %v9404_v62 = vpop.eup %9403 }
0x28f4   : > { %v9406_v6 = vpop.eup %9405  ;;  %6495 = vrot.lane.b32.xlu0 %v9404_v62, %s9794_s29  ;;  %v7419_v62 = vmul.f32 -1.442695, %v6349_v13 }
0x28f5   : > { %v9408_v4 = vpop.eup %9407  ;;  %6493 = vrot.lane.b32.xlu1 %v9406_v6, %s9794_s29 }
0x28f6   : > { %v9410_v55 = vpop.eup %9409  ;;  %v6030_v21 = vmul.f32 %v9408_v4, %v6026_v26  ;;  %v6020_v56 = vmul.f32 %v9408_v4, %v11214_v23 }
0x28f7   : > { %v6029_v17 = vmul.f32 %v9410_v55, %v6024_v22  ;;  %v9412_v45 = vpop.eup %9411  ;;  %v6019_v14 = vmul.f32 %v9410_v55, %v11216_v51 }
0x28f8   : > { %6035 = vrot.lane.b32.xlu0 %v6030_v21, %s9795_s3  ;;  %v9414_v41 = vpop.eup %9413  ;;  %v6482_v5 = vadd.f32 1.0, %v9412_v45 }
0x28f9   : > { %6033 = vrot.lane.b32.xlu1 %v6029_v17, %s9795_s3  ;;  %v6481_v48 = vadd.f32 1.0, %v9414_v41 }
0x28fa   : > { %9415 = vrcp.f32 %v6482_v5 }
0x28fb   : > { %9417 = vrcp.f32 %v6481_v48 }
0x2904   : > { %v9416_v31 = vpop.eup %9415 }
0x2905   : > { %v9418_v42 = vpop.eup %9417  ;;  %v6490_v23 = vmul.f32 %v9416_v31, %v11224_v27 }
0x2906   : > { %v6489_v51 = vmul.f32 %v9418_v42, %v11226_v8 }
0x2966   : > { %v6496_v32 = vpop.permute.xlu0 %6495 }
0x2967   : > { %v6500_v58 = vmul.f32 %v9416_v31, %v6496_v32  ;;  %v6494_v60 = vpop.permute.xlu1 %6493 }
0x2968   : > { %v6499_v12 = vmul.f32 %v9418_v42, %v6494_v60 }
0x2969   : > { %6505 = vrot.lane.b32.xlu0 %v6500_v58, %s9795_s3 }
0x296a   : > { %6503 = vrot.lane.b32.xlu1 %v6499_v12, %s9795_s3  ;;  %v6036_v11 = vpop.permute.xlu0 %6035 }
0x296b   : > { %v11342_v59 = vadd.f32 %v6036_v11, %v6020_v56  ;;  %v6034_v38 = vpop.permute.xlu1 %6033 }
0x296c   : > { %v11344_v57 = vadd.f32 %v6034_v38, %v6019_v14 }
0x296d   : > { %9419 = vtanh.f32 %v11342_v59 }
0x296e   : > { %9421 = vtanh.f32 %v11344_v57 }
0x2977   : > { %v9420_v61 = vpop.eup %9419 }
0x2978   : > { %v9422_v43 = vpop.eup %9421  ;;  %6047 = vrot.lane.b32.xlu0 %v9420_v61, %s9794_s29 }
0x2979   : > { %6045 = vrot.lane.b32.xlu1 %v9422_v43, %s9794_s29 }
0x29db   : > { %v6506_v53 = vpop.permute.xlu0 %6505 }
0x29dc   : > { %v6510_v40 = vadd.f32 %v6506_v53, %v6490_v23  ;;  %v6504_v9 = vpop.permute.xlu1 %6503 }
0x29dd   : > { %v6509_v54 = vadd.f32 %v6504_v9, %v6489_v51 }
0x29de   : > { %9423 = vtanh.f32 %v6510_v40 }
0x29df   : > { %9425 = vtanh.f32 %v6509_v54 }
0x29e8   : > { %v9424_v36 = vpop.eup %9423 }
0x29e9   : > { %v9426_v47 = vpop.eup %9425  ;;  %6517 = vrot.lane.b32.xlu0 %v9424_v36, %s9794_s29  ;;  %v6770_v36 = vld [vmem:[#allocation13 + $0x20] sm:$0xff] }
0x29ea   : > { %6515 = vrot.lane.b32.xlu1 %v9426_v47, %s9794_s29  ;;  %v6048_v3 = vpop.permute.xlu0 %6047  ;;  %v6772_v47 = vld [vmem:[#allocation13 + $0x30] sm:$0xff] }
0x29eb   : > { %v6052_v16 = vmul.f32 %v9408_v4, %v6048_v3  ;;  %v6046_v30 = vpop.permute.xlu1 %6045 }
0x29ec   : > { %v6051_v35 = vmul.f32 %v9410_v55, %v6046_v30 }
0x29ed   : > { %6527 = vrot.lane.b32.xlu0 %v6052_v16, %s9795_s3 }
0x29ee   : > { %6525 = vrot.lane.b32.xlu1 %v6051_v35, %s9795_s3 }
0x2a5b   : > { %v6518_v27 = vpop.permute.xlu0 %6517 }
0x2a5c   : > { %v6522_v8 = vmul.f32 %v9416_v31, %v6518_v27  ;;  %v6516_v15 = vpop.permute.xlu1 %6515  ;;  %v6766_v27 = vld [vmem:[#allocation13] sm:$0xff] }
0x2a5d   : > { %v6521_v34 = vmul.f32 %v9418_v42, %v6516_v15 }
0x2a5e   : > { %6612 = vrot.lane.b32.xlu0 %v6522_v8, %s9795_s3  ;;  %v6767_v8 = vld [vmem:[#allocation13 + $0x8] sm:$0xff] }
0x2a5f   : > { %6610 = vrot.lane.b32.xlu1 %v6521_v34, %s9795_s3  ;;  %v6528_v29 = vpop.permute.xlu0 %6527  ;;  %v8753_v15 = vpack.c.bf16 %v6767_v8, %v6766_v27 }
0x2a60   : > { %v6526_v39 = vpop.permute.xlu1 %6525 }
0x2a61   : > { %8317 = vmatprep.mubr.msk.f32.mxu0 %vm866_vm0, %v6526_v39 }
0x2a62   : > { %8318 = vmatmul.mubr.msk.f32.vlgmr.msra.gmra.mrb[30].mxu0 %vm866_vm0, %v6528_v29 }
0x2a63   : > { %8740 = vmatpush3.bf16.msra.mxu0 %v10338_v46  ;;  %v6348_v46 = vadd.f32 %v11237_v33, %v11328_v1 }
0x2a64   : > { %8742 = vmatprep.subr.bf16.mxu0 %v10342_v50 }
0x2a65   : > { %v7418_v33 = vmul.f32 -1.442695, %v6348_v46 }
0x2a67   : > { %8744 = vmatpush3.bf16.msra.mxu0 %v10342_v50 }
0x2ad0   : > { %v6613_v18 = vpop.permute.xlu0 %6612 }
0x2ad1   : > { %v6611_v25 = vpop.permute.xlu1 %6610 }
0x2ad2   : > { %8328 = vmatprep.mubr.msk.f32.mxu0 %vm866_vm0, %v6611_v25 }
0x2ad3   : > { %8329 = vmatmul.mubr.msk.f32.vlgmr.msra.gmra.mrb[30].mxu0 %vm866_vm0, %v6613_v18 }
0x2ba6   : > { %v8330_v52 = vpop.f32.mrb[30].mxu0 }
0x2ba7   : > { %v6694_v10 = vadd.f32 %v11153_v37, %v8330_v52  ;;  %v6684_v63 = vpop.f32.mrb[31].mxu0 }
0x2ba8   : > { %v6693_v49 = vadd.f32 %v11153_v37, %v6684_v63 }
0x2ba9   : > { %9427 = vtanh.f32 %v6694_v10  ;;  %v7429_v37 = vmul.f32 -1.442695, %v6694_v10 }
0x2baa   : > { %9429 = vtanh.f32 %v6693_v49  ;;  %v7428_v24 = vmul.f32 -1.442695, %v6693_v49  ;;  %v6768_v49 = vld [vmem:[#allocation13 + $0x10] sm:$0xff] }
0x2bab   : > { %9431 = vtanh.f32 %v6349_v13  ;;  %v6769_v13 = vld [vmem:[#allocation13 + $0x18] sm:$0xff] }
0x2bac   : > { %9433 = vtanh.f32 %v6348_v46 }
0x2bad   : > { %9435 = vpow2.f32 %v7429_v37  ;;  %v7434_v37 = vld [vmem:[%s11620_s28] ss:$0 sm:$0xff] }
0x2bae   : > { %9437 = vpow2.f32 %v7428_v24 }
0x2baf   : > { %9439 = vpow2.f32 %v7419_v62 }
0x2bb0   : > { %9441 = vpow2.f32 %v7418_v33 }
0x2bb3   : > { %v9428_v50 = vpop.eup %9427 }
0x2bb4   : > { %v9430_v2 = vpop.eup %9429  ;;  %6715 = vrot.lane.b32.xlu0 %v9428_v50, %s9794_s29  ;;  %v8757_v50 = vpack.c.bf16 %v6769_v13, %v6768_v49 }
0x2bb5   : > { %6713 = vrot.lane.b32.xlu1 %v9430_v2, %s9794_s29  ;;  %v9432_v20 = vpop.eup %9431 }
0x2bb6   : > { %v9434_v44 = vpop.eup %9433 }
0x2bb7   : > { %v9436_v1 = vpop.eup %9435 }
0x2bb8   : > { %6370 = vrot.lane.b32.xlu0 %v9432_v20, %s9794_s29  ;;  %v9438_v26 = vpop.eup %9437  ;;  %v6702_v6 = vadd.f32 1.0, %v9436_v1 }
0x2bb9   : > { %6368 = vrot.lane.b32.xlu1 %v9434_v44, %s9794_s29  ;;  %v9440_v22 = vpop.eup %9439  ;;  %v6701_v4 = vadd.f32 1.0, %v9438_v26 }
0x2bba   : > { %v9442_v55 = vpop.eup %9441  ;;  %v6357_v21 = vadd.f32 1.0, %v9440_v22  ;;  %9443 = vrcp.f32 %v6702_v6 }
0x2bbb   : > { %v6356_v17 = vadd.f32 1.0, %v9442_v55  ;;  %9445 = vrcp.f32 %v6701_v4 }
0x2bbc   : > { %9447 = vrcp.f32 %v6357_v21 }
0x2bbd   : > { %9449 = vrcp.f32 %v6356_v17 }
0x2bc4   : > { %v9444_v0 = vpop.eup %9443 }
0x2bc5   : > { %v9446_v45 = vpop.eup %9445  ;;  %v6710_v56 = vmul.f32 %v9444_v0, %v11342_v59  ;;  %v6771_v59 = vld [vmem:[#allocation13 + $0x28] sm:$0xff] }
0x2bc6   : > { %v9448_v31 = vpop.eup %9447  ;;  %v6709_v14 = vmul.f32 %v9446_v45, %v11344_v57  ;;  %v8745_v3 = vpack.c.bf16 %v6771_v59, %v6770_v36  ;;  %v6773_v57 = vld [vmem:[#allocation13 + $0x38] sm:$0xff] }
0x2bc7   : > { %v9450_v42 = vpop.eup %9449  ;;  %v6365_v23 = vmul.f32 %v9448_v31, %v11287_v7  ;;  %v8749_v16 = vpack.c.bf16 %v6773_v57, %v6772_v47 }
0x2bc8   : > { %v6364_v51 = vmul.f32 %v9450_v42, %v11289_v28  ;;  %8746 = vmatprep.subr.bf16.mxu1 %v8745_v3 }
0x2bc9   : > { %8748 = vmatpush3.bf16.msra.mxu1 %v8745_v3 }
0x2bca   : > { %8750 = vmatprep.subr.bf16.mxu1 %v8749_v16 }
0x2bcd   : > { %8752 = vmatpush3.bf16.msra.mxu1 %v8749_v16 }
0x2bce   : > { %8754 = vmatprep.subr.bf16.mxu1 %v8753_v15 }
0x2c26   : > { %v6716_v19 = vpop.permute.xlu0 %6715 }
0x2c27   : > { %v6720_v41 = vmul.f32 %v9444_v0, %v6716_v19  ;;  %v6714_v5 = vpop.permute.xlu1 %6713 }
0x2c28   : > { %v6719_v48 = vmul.f32 %v9446_v45, %v6714_v5 }
0x2c29   : > { %6725 = vrot.lane.b32.xlu0 %v6720_v41, %s9795_s3 }
0x2c2a   : > { %v6371_v32 = vpop.permute.xlu0 %6370  ;;  %6723 = vrot.lane.b32.xlu1 %v6719_v48, %s9795_s3 }
0x2c2b   : > { %v6375_v58 = vmul.f32 %v9448_v31, %v6371_v32  ;;  %v6369_v60 = vpop.permute.xlu1 %6368 }
0x2c2c   : > { %v6374_v12 = vmul.f32 %v9450_v42, %v6369_v60 }
0x2c2d   : > { %6380 = vrot.lane.b32.xlu0 %v6375_v58, %s9795_s3 }
0x2c2e   : > { %6378 = vrot.lane.b32.xlu1 %v6374_v12, %s9795_s3 }
0x2c9b   : > { %v6726_v11 = vpop.permute.xlu0 %6725 }
0x2c9c   : > { %v6730_v38 = vadd.f32 %v6726_v11, %v6710_v56  ;;  %v6724_v61 = vpop.permute.xlu1 %6723 }
0x2c9d   : > { %v6729_v43 = vadd.f32 %v6724_v61, %v6709_v14 }
0x2c9e   : > { %9451 = vtanh.f32 %v6730_v38 }
0x2c9f   : > { %9453 = vtanh.f32 %v6729_v43  ;;  %v6381_v53 = vpop.permute.xlu0 %6380 }
0x2ca0   : > { %v6385_v40 = vadd.f32 %v6381_v53, %v6365_v23  ;;  %v6379_v9 = vpop.permute.xlu1 %6378 }
0x2ca1   : > { %v6384_v54 = vadd.f32 %v6379_v9, %v6364_v51 }
0x2ca2   : > { %9455 = vtanh.f32 %v6385_v40 }
0x2ca3   : > { %9457 = vtanh.f32 %v6384_v54 }
0x2ca8   : > { %v9452_v30 = vpop.eup %9451 }
0x2ca9   : > { %v9454_v7 = vpop.eup %9453  ;;  %6737 = vrot.lane.b32.xlu0 %v9452_v30, %s9794_s29 }
0x2caa   : > { %6735 = vrot.lane.b32.xlu1 %v9454_v7, %s9794_s29 }
0x2cac   : > { %v9456_v28 = vpop.eup %9455 }
0x2cad   : > { %v9458_v35 = vpop.eup %9457  ;;  %6392 = vrot.lane.b32.xlu0 %v9456_v28, %s9794_s29 }
0x2cae   : > { %6390 = vrot.lane.b32.xlu1 %v9458_v35, %s9794_s29 }
0x2d1b   : > { %v6738_v34 = vpop.permute.xlu0 %6737 }
0x2d1c   : > { %v6742_v39 = vmul.f32 %v9444_v0, %v6738_v34  ;;  %v6736_v29 = vpop.permute.xlu1 %6735 }
0x2d1d   : > { %v6741_v25 = vmul.f32 %v9446_v45, %v6736_v29 }
0x2d1e   : > { %6776 = vrot.lane.b32.xlu0 %v6742_v39, %s9795_s3 }
0x2d1f   : > { %v6393_v18 = vpop.permute.xlu0 %6392  ;;  %6774 = vrot.lane.b32.xlu1 %v6741_v25, %s9795_s3 }
0x2d20   : > { %v6397_v52 = vmul.f32 %v9448_v31, %v6393_v18  ;;  %v6391_v10 = vpop.permute.xlu1 %6390 }
0x2d21   : > { %v6396_v63 = vmul.f32 %v9450_v42, %v6391_v10 }
0x2d22   : > { %6747 = vrot.lane.b32.xlu0 %v6397_v52, %s9795_s3 }
0x2d23   : > { %6745 = vrot.lane.b32.xlu1 %v6396_v63, %s9795_s3 }
0x2d90   : > { %v6777_v2 = vpop.permute.xlu0 %6776 }
0x2d91   : > { %v6775_v46 = vpop.permute.xlu1 %6774 }
0x2d92   : > { %8339 = vmatprep.mubr.msk.f32.mxu1 %vm866_vm0, %v6775_v46 }
0x2d93   : > { %8340 = vmatmul.mubr.msk.f32.vlgmr.msra.gmra.mrb[32].mxu1 %vm866_vm0, %v6777_v2 }
0x2d94   : > { %8756 = vmatpush3.bf16.msra.mxu1 %v8753_v15  ;;  %v11397_v44 = vpop.permute.xlu0 %6747 }
0x2d95   : > { %v11393_v20 = vpop.permute.xlu1 %6745  ;;  %8758 = vmatprep.subr.bf16.mxu1 %v8757_v50 }
0x2d96   : > { %8350 = vmatprep.mubr.msk.f32.mxu1 %vm866_vm0, %v11393_v20 }
0x2d98   : > { %8760 = vmatpush3.bf16.msra.mxu1 %v8757_v50 }
0x2d9b   : > { %8351 = vmatmul.mubr.msk.f32.vlgmr.msra.gmra.mrb[32].mxu1 %vm866_vm0, %v11397_v44 }
0x2e6e   : > { %v8352_v24 = vpop.f32.mrb[32].mxu1 }
0x2e6f   : > { %v6944_v62 = vadd.f32 %v8352_v24, %v7434_v37  ;;  %v6927_v33 = vpop.f32.mrb[33].mxu1 }
0x2e70   : > { %v6943_v1 = vadd.f32 %v7434_v37, %v6927_v33 }
0x2e71   : > { %6946 = vst [vmem:[%s819_s11 + $0x8] sm:$0xff] %v6944_v62  ;;  %6949 = vmax.xlane.f32.xlu0 %v6944_v62 }
0x2e72   : > { %6945 = vst [vmem:[%s819_s11] sm:$0xff] %v6943_v1  ;;  %6947 = vmax.xlane.f32.xlu1 %v6943_v1 }
0x2efe   : > { %v6950_v26 = vpop.xlane.xlu0 %6949 }
0x2eff   : > { %v6952_v6 = vsub.f32 %v6944_v62, %v6950_v26  ;;  %v6948_v22 = vpop.xlane.xlu1 %6947 }
0x2f00   : > { %v6951_v4 = vsub.f32 %v6943_v1, %v6948_v22 }
0x2f01   : > { %v6955_v55 = vmul.f32 1.442695, %v6952_v6 }
0x2f02   : > { %v6953_v21 = vmul.f32 1.442695, %v6951_v4 }
0x2f03   : > { %9459 = vpow2.f32 %v6955_v55 }
0x2f04   : > { %9461 = vpow2.f32 %v6953_v21 }
0x2f0d   : > { %v9460_v17 = vpop.eup %9459 }
0x2f0e   : > { %v9462_v0 = vpop.eup %9461  ;;  %6959 = vadd.xlane.f32.xlu1 %v9460_v17 }
0x2f0f   : > { %6957 = vadd.xlane.f32.xlu0 %v9462_v0 }
0x2f1f   : > { %6755 = vrot.lane.b32.xlu1 %v6742_v39, %s9794_s29 }
0x2f25   : > { %6753 = vrot.lane.b32.xlu0 %v6741_v25, %s9794_s29  ;;  %s9797_s29 = smov [#allocation15]  }
0x2f26   : > { %s9649_s3 = sshll.u32 %s9797_s29, 4  ;;  %s9650_s3 = int_to_ptr.vmem [resolvable:$false] %s9649_s3 }
0x2f27   : > { %s9651_s14 = scalar_lea.vmem %s9650_s3, 512  ;;  %p9652_p12 = scmp.lt.s32.totalorder %s11413_s13, %s9650_s3 }
0x2f28   : > { %p9653_p11 = scmp.lt.s32.totalorder %s9651_s14, %s9645_s27 }
0x2f2a   : > { %p9654_p4 = por %p9653_p11, %p9652_p12 }
0x2f2c   : > { %p9655_p7 = pnand %p9654_p4, %p9648_p0 }
0x2f2e   : > { %9658 = shalt.err (!%p9655_p7)
}
0x2f2f   : > { %s9659_s28 = scalar_lea.hbm %s11419_s15, 256  ;;  %s9663_s21 = scalar_lea.hbm %s11622_s16, 512 }
0x2f30   : > { %p9660_p8 = scmp.ne.s32.totalorder %s11419_s15, %s9659_s28  ;;  %p9664_p1 = scmp.lt.u32.totalorder %s11419_s15, %s11622_s16 }
0x2f31   : > { %p9665_p3 = scmp.lt.u32.totalorder %s9663_s21, %s9659_s28  ;;  %p9667_p2 = scmp.lt.u32.totalorder %s9659_s28, %s11419_s15 }
0x2f32   : > { %p9661_p9 = pnand %p9660_p8, %p11623_p10 }
0x2f33   : > { %p9666_p6 = por %p9665_p3, %p9664_p1 }
0x2f34   : > { %p9662_p13 = pneg %p9661_p9 }
0x2f35   : > { %p9668_p0 = por %p9667_p2, %p9666_p6 }
0x2f37   : > { %p9669_p12 = pnand %p9668_p0, %p9662_p13 }
0x2f39   : > { %9672 = shalt.err (!%p9669_p12)
}
0x2f3a   : > { %s11576_s27 = smov 128   ;;  %s11578_s14 = smov 8   ;;  %vm6761_vm1 = vcmask 523264  }
0x2f3b   : > { %8851 = dma.vmem_to_hbm [thread:$0]  (%p11623_p10), %s11413_s13, 256, %s11419_s15, %s6968_s6, %s11576_s27, %s11576_s27, %s11578_s14  }
0x2f3c   : > { %s833_s28 = scalar_lea.vmem [#allocation18], %s11402_s17  ;;  %s826_s20 = scalar_lea.vmem [#allocation16], %s11402_s17 }
0x2f3d   : > { %s7007_s13 = sshll.u32 %s826_s20, 4  ;;  %s6972_s15 = sand.u32 1, %s9908_s25   ;;  %s11455_s13 = int_to_ptr.vmem [resolvable:$true] %s7007_s13 }
0x2f3e   : > { %s7023_s6 = sshll.u32 %s833_s28, 4  ;;  %s11624_s21 = sld [smem:[#allocation38_spill]]  ;;  %s11463_s6 = int_to_ptr.vmem [resolvable:$true] %s7023_s6 }
0x2f3f   : > { %s11626_s27 = sld [smem:[#allocation39_spill]]  ;;  %s11471_s14 = scalar_lea.sflag [#allocation17], %s6972_s15 }
0x2f40   : > { %s9673_s0 = scalar_lea.vmem %s11455_s13, 256  ;;  %s9800_s1 = smov [#allocation16]  }
0x2f41   : > { %p9674_p11 = scmp.ne.s32.totalorder %s11455_s13, %s9673_s0  ;;  %s9677_s11 = sshll.u32 %s9800_s1, 4  ;;  %s9678_s11 = int_to_ptr.vmem [resolvable:$false] %s9677_s11 }
0x2f42   : > { %s9679_s9 = scalar_lea.vmem %s9678_s11, 512  ;;  %p9680_p8 = scmp.lt.s32.totalorder %s11455_s13, %s9678_s11 }
0x2f43   : > { %p9675_p4 = pnand %p9674_p11, %p11623_p10  ;;  %p9681_p9 = scmp.lt.s32.totalorder %s9679_s9, %s9673_s0 }
0x2f44   : > { %s11625_s29 = smov %s11624_s21  ;;  %s11461_s3 = scalar_lea.hbm %s11624_s21, %s11411_s18 }
0x2f45   : > { %p9676_p7 = pneg %p9675_p4  ;;  %p9682_p13 = por %p9681_p9, %p9680_p8 }
0x2f47   : > { %p9683_p1 = pnand %p9682_p13, %p9676_p7 }
0x2f9b   : > { %v6960_v19 = vpop.xlane.xlu1 %6959 }
0x2f9c   : > { %9463 = vrcp.f32 %v6960_v19  ;;  %v6958_v45 = vpop.xlane.xlu0 %6957 }
0x2f9d   : > { %9465 = vrcp.f32 %v6958_v45 }
0x2f9f   : > { %v6756_v41 = vpop.permute.xlu1 %6755 }
0x2fa0   : > { %v6760_v5 = vsel %vm866_vm0, %v11397_v44, %v6756_v41  ;;  %v6754_v48 = vpop.permute.xlu0 %6753 }
0x2fa1   : > { %v6763_v31 = vsel %vm6761_vm1, %v6760_v5, 0.0  ;;  %v6759_v32 = vsel %vm866_vm0, %v11393_v20, %v6754_v48 }
0x2fa2   : > { %6765 = vst [vmem:[%s833_s28 + $0x8] sm:$0xff] %v6763_v31  ;;  %v6762_v42 = vsel %vm6761_vm1, %v6759_v32, 0.0 }
0x2fa3   : > { %6764 = vst [vmem:[%s833_s28] sm:$0xff] %v6762_v42  ;;  %s11469_s28 = scalar_lea.hbm %s11626_s27, %s11411_s18 }
0x2fa6   : > { %v9464_v58 = vpop.eup %9463 }
0x2fa7   : > { %v9466_v60 = vpop.eup %9465  ;;  %v6964_v12 = vmul.f32 %v9464_v58, %v9460_v17 }
0x2fa8   : > { %v6962_v56 = vmul.f32 %v9466_v60, %v9462_v0 }
0x2fa9   : > { %6966 = vst [vmem:[%s826_s20 + $0x8] sm:$0xff] %v6964_v12 }
0x2faa   : > { %6965 = vst [vmem:[%s826_s20] sm:$0xff] %v6962_v56 }
0x2fab   : > { %9686 = shalt.err (!%p9683_p1)
}
0x2fac   : > { %s9687_s18 = scalar_lea.hbm %s11461_s3, 256  ;;  %s9691_s1 = scalar_lea.hbm %s11625_s29, 512 }
0x2fad   : > { %p9688_p3 = scmp.ne.s32.totalorder %s11461_s3, %s9687_s18  ;;  %p9692_p0 = scmp.lt.u32.totalorder %s11461_s3, %s11625_s29 }
0x2fae   : > { %p9693_p12 = scmp.lt.u32.totalorder %s9691_s1, %s9687_s18  ;;  %p9695_p4 = scmp.lt.u32.totalorder %s9687_s18, %s11461_s3 }
0x2faf   : > { %p9689_p6 = pnand %p9688_p3, %p11623_p10 }
0x2fb0   : > { %p9694_p11 = por %p9693_p12, %p9692_p0 }
0x2fb1   : > { %p9690_p2 = pneg %p9689_p6 }
0x2fb2   : > { %p9696_p7 = por %p9695_p4, %p9694_p11 }
0x2fb4   : > { %p9697_p8 = pnand %p9696_p7, %p9690_p2 }
0x2fb6   : > { %9700 = shalt.err (!%p9697_p8)
}
0x2fb7   : > { %s11627_s0 = smov 8   ;;  %s11628_s25 = smov 128  }
0x2fb8   : > { %8852 = dma.vmem_to_hbm [thread:$0]  (%p11623_p10), %s11455_s13, 256, %s11461_s3, %s11471_s14, %s11628_s25, %s11628_s25, %s11627_s0  }
0x2fb9   : > { %s9701_s11 = scalar_lea.vmem %s11463_s6, 256  ;;  %s9801_s9 = smov [#allocation18]  }
0x2fba   : > { %p9702_p9 = scmp.ne.s32.totalorder %s11463_s6, %s9701_s11  ;;  %s9705_s18 = sshll.u32 %s9801_s9, 4  ;;  %s9706_s18 = int_to_ptr.vmem [resolvable:$false] %s9705_s18 }
0x2fbb   : > { %s9707_s20 = scalar_lea.vmem %s9706_s18, 512  ;;  %p9708_p3 = scmp.lt.s32.totalorder %s11463_s6, %s9706_s18 }
0x2fbc   : > { %p9703_p13 = pnand %p9702_p9, %p11623_p10  ;;  %p9709_p6 = scmp.lt.s32.totalorder %s9707_s20, %s9701_s11 }
0x2fbe   : > { %p9704_p1 = pneg %p9703_p13  ;;  %p9710_p2 = por %p9709_p6, %p9708_p3 }
0x2fc0   : > { %p9711_p0 = pnand %p9710_p2, %p9704_p1 }
0x2fc2   : > { %9714 = shalt.err (!%p9711_p0)
}
0x2fc3   : > { %s9715_s13 = scalar_lea.hbm %s11469_s28, 256  ;;  %s9719_s1 = scalar_lea.hbm %s11626_s27, 512 }
0x2fc4   : > { %p9716_p12 = scmp.ne.s32.totalorder %s11469_s28, %s9715_s13  ;;  %p9720_p7 = scmp.lt.u32.totalorder %s11469_s28, %s11626_s27 }
0x2fc5   : > { %p9721_p8 = scmp.lt.u32.totalorder %s9719_s1, %s9715_s13  ;;  %p9723_p13 = scmp.lt.u32.totalorder %s9715_s13, %s11469_s28 }
0x2fc6   : > { %p9717_p11 = pnand %p9716_p12, %p11623_p10 }
0x2fc7   : > { %p9722_p9 = por %p9721_p8, %p9720_p7 }
0x2fc8   : > { %p9718_p4 = pneg %p9717_p11 }
0x2fc9   : > { %p9724_p1 = por %p9723_p13, %p9722_p9 }
0x2fcb   : > { %p9725_p3 = pnand %p9724_p1, %p9718_p4 }
0x2fcd   : > { %9728 = shalt.err (!%p9725_p3)
}
0x2fce   : > { %8853 = dma.vmem_to_hbm [thread:$0]  (%p11623_p10), %s11463_s6, 256, %s11469_s28, %s11471_s14, %s11628_s25, %s11628_s25, %s11627_s0  }
0x2fcf PF: > { %s11629_s11 = sld [smem:[#allocation25_spill]]  ;;  %s11630_s9 = sld [smem:[#allocation29_spill]] }
0x2fd5   : > { %s7038_s18 = sand.u32 1, %s11629_s11   ;;  %p11631_p6 = scmp.ne.s32.totalorder %s11630_s9, 0 }
0x2fd6   : > { %s7039_s20 = scalar_lea.sflag [#allocation6], %s7038_s18 }
0x2fd7   : > { %p8877_p2 = pnand %p7238_p5, %p11631_p6 }
0x2fd9   : > { %9762 = dma.done.wait (!%p8877_p2), %s7039_s20, 256  }
0x2fda   : > { %9764 = vsyncadd (!%p8877_p2), %s7039_s20, 4294967040  ;;  %s11632_s30 = sadd.s32 4294967294, %s9783_s24  }
0x2fdb   : > { %s7047_s13 = sand.u32 1, %s11632_s30  }
0x2fdc   : > { %s7048_s3 = scalar_lea.sflag [#allocation17], %s7047_s13 }
0x2fdd   : > { %9766 = dma.done.wait (!%p8877_p2), %s7048_s3, 512  }
0x2fde   : > { %9768 = vsyncadd (!%p8877_p2), %s7048_s3, 4294966784  ;;  %s11633_s24 = sld [smem:[#allocation26_spill]]  ;;  %s11634_s14 = sld [smem:[#allocation27_spill]] }
0x2fdf   : > { %s11635_s21 = smov %s9775_s22  ;;  %s11636_s22 = smov %s9779_s23 }
0x2fe4   : > { %p34_p10 = scmp.ge.s32.totalorder %s11633_s24, 4   ;;  %s11637_s23 = smov %s11634_s14 }
0x2fe6   :  { %36 = sbr.rel (!%p34_p10) target bundleno = 20 (0x14), region = 257 }
0x2fed   :  { %7062 = vsyncpa [#allocation5], 1 }
0x2fee   :  { %7064 = vsyncpa [#allocation5 + $0x1], 1 }
0x2fef   :  { %7065 = vsyncpa [#allocation8], 1 }
0x2ff0   :  { %7066 = vsyncpa [#allocation11], 1 }
0x2ff1   :  { %7067 = vsyncpa [#allocation14], 1 }
0x2ff2   :  { %7068 = vsyncpa [#allocation6], 1 }
0x2ff3   :  { %7070 = vsyncpa [#allocation6 + $0x1], 1 }
0x2ff4   :  { %7071 = vsyncpa [#allocation17], 1 }
0x2ff5   :  { %7073 = vsyncpa [#allocation17 + $0x1], 1 }

</bundles_post_ra>
